<compile_context>
chip_gen: v5e
topology: v5e:2x2
jax: 0.10.0
libtpu: 0.0.40
codegen_flags: <defaults>
</compile_context>

<pallas_src>
import jax
import jax.numpy as jnp
from jax.experimental import pallas as pl
from jax.experimental.pallas import tpu as pltpu

EPS = 1e-5
LANE = 128
# Scoped-VMEM budget: double-buffered (patches + conv-out + skip + out) tiles plus
# the (9*Cp, Cp) weight block stay far below this; 48 MiB is safe on v5e/v6e
# (128 MiB physical) and on v7x (64 MiB physical).
VMEM_LIMIT = 48 * 1024 * 1024


def _round_up(x, m):
    return (x + m - 1) // m * m


def _pick_tile_m(m_rows, target=256):
    """Largest divisor of m_rows that is a multiple of 8 and <= target (else m_rows).

    target=256 keeps the double-buffered working set comfortably inside v7x's
    64 MiB VMEM at realistic channel counts; sweep toward 512-1024 on v6e.
    """
    best = None
    for t in range(8, min(m_rows, target) + 1, 8):
        if m_rows % t == 0:
            best = t
    return best if best is not None else m_rows


# ----------------------------- Pallas kernels ------------------------------ #

def _conv_stats_kernel(patches_ref, w_ref, b_ref, y_ref, stats_ref):
    """3x3 conv as a single K=9*Cp matmul + bias, plus per-tile BN statistics.

    patches_ref: (TM, 9*Cp) bf16   w_ref: (9*Cp, Cp) bf16   b_ref: (1, Cp) f32
    y_ref:       (TM, Cp)   f32    stats_ref: (8, Cp) f32 (row0=sum, row1=sumsq)
    """
    acc = jnp.dot(patches_ref[...], w_ref[...], preferred_element_type=jnp.float32)
    acc = acc + b_ref[...]
    y_ref[...] = acc
    s = jnp.sum(acc, axis=0, keepdims=True)
    ss = jnp.sum(acc * acc, axis=0, keepdims=True)
    stats_ref[...] = jnp.concatenate(
        [s, ss, jnp.zeros((6, s.shape[1]), jnp.float32)], axis=0)


def _bn_act_kernel(y_ref, scale_ref, shift_ref, o_ref):
    """Normalize + affine + ReLU (no skip)."""
    o_ref[...] = jnp.maximum(
        y_ref[...] * scale_ref[...] + shift_ref[...], 0.0).astype(o_ref.dtype)


def _bn_skip_act_kernel(y_ref, scale_ref, shift_ref, skip_ref, o_ref):
    """Normalize + affine + residual add + ReLU."""
    o_ref[...] = jnp.maximum(
        y_ref[...] * scale_ref[...] + shift_ref[...] + skip_ref[...], 0.0
    ).astype(o_ref.dtype)


# --------------------------- pallas_call wrappers --------------------------- #

def _conv_stats(patches, w, b, tm):
    """Tiled conv+bias pass; returns conv output and per-channel sum / sumsq."""
    m_rows, k_dim = patches.shape
    cp = w.shape[1]
    nt = m_rows // tm
    y, stats = pl.pallas_call(
        _conv_stats_kernel,
        out_shape=(
            jax.ShapeDtypeStruct((m_rows, cp), jnp.float32),
            jax.ShapeDtypeStruct((nt * 8, cp), jnp.float32),
        ),
        grid=(nt,),
        in_specs=[
            pl.BlockSpec((tm, k_dim), lambda i: (i, 0)),
            pl.BlockSpec((k_dim, cp), lambda i: (0, 0)),
            pl.BlockSpec((1, cp), lambda i: (0, 0)),
        ],
        out_specs=(
            pl.BlockSpec((tm, cp), lambda i: (i, 0)),
            pl.BlockSpec((8, cp), lambda i: (i, 0)),
        ),
        compiler_params=pltpu.CompilerParams(
            dimension_semantics=("parallel",),
            vmem_limit_bytes=VMEM_LIMIT),
    )(patches, w, b)
    stats = stats.reshape(nt, 8, cp)
    return y, jnp.sum(stats[:, 0, :], axis=0), jnp.sum(stats[:, 1, :], axis=0)


def _bn_act(y, scale, shift, skip, tm, out_dtype):
    """Tiled normalize (+optional skip) + ReLU pass."""
    m_rows, cp = y.shape
    nt = m_rows // tm
    tile = pl.BlockSpec((tm, cp), lambda i: (i, 0))
    vec = pl.BlockSpec((1, cp), lambda i: (0, 0))
    if skip is None:
        kernel, in_specs, args = _bn_act_kernel, [tile, vec, vec], (y, scale, shift)
    else:
        kernel, in_specs, args = (_bn_skip_act_kernel, [tile, vec, vec, tile],
                                  (y, scale, shift, skip))
    return pl.pallas_call(
        kernel,
        out_shape=jax.ShapeDtypeStruct((m_rows, cp), out_dtype),
        grid=(nt,),
        in_specs=in_specs,
        out_specs=tile,
        compiler_params=pltpu.CompilerParams(
            dimension_semantics=("parallel",),
            vmem_limit_bytes=VMEM_LIMIT),
    )(*args)


# --------------------------------- glue ------------------------------------ #

def _im2col(x_nhwc):
    """(N, H, W, Cp) -> (N*H*W, 9*Cp), 3x3 / padding=1, tap-major along last dim."""
    # TODO(synk): build the 9 taps inside the conv kernel from halo row-tiles
    # (overlapping windows + on-chip shifts) to avoid materializing 9x the
    # activation bytes in HBM; kept as wrapper glue here for robustness.
    n, h, w, cp = x_nhwc.shape
    xp = jnp.pad(x_nhwc, ((0, 0), (1, 1), (1, 1), (0, 0)))
    taps = [xp[:, ky:ky + h, kx:kx + w, :].reshape(n * h * w, cp)
            for ky in range(3) for kx in range(3)]
    return jnp.concatenate(taps, axis=-1)


def _weight_matrix(w_oihw, cp):
    """(C_out, C_in, 3, 3) -> (9*Cp, Cp) bf16; row order = (tap, c_in), col = c_out."""
    c_out, c_in, _, _ = w_oihw.shape
    w = jnp.transpose(w_oihw, (2, 3, 1, 0))                        # (3, 3, C_in, C_out)
    w = jnp.pad(w, ((0, 0), (0, 0), (0, cp - c_in), (0, cp - c_out)))
    return w.reshape(9 * cp, cp).astype(jnp.bfloat16)


def _pad_row(v, cp):
    return jnp.pad(v.astype(jnp.float32), (0, cp - v.shape[0])).reshape(1, cp)


def _bn_scale_shift(sum_c, sumsq_c, m_rows, gamma, beta, cp):
    """Fold batch stats + affine params into per-channel scale/shift (f32, O(C))."""
    mean = sum_c / m_rows
    var = jnp.maximum(sumsq_c / m_rows - mean * mean, 0.0)          # biased, train mode
    g = jnp.pad(gamma.astype(jnp.float32), (0, cp - gamma.shape[0]))
    b = jnp.pad(beta.astype(jnp.float32), (0, cp - beta.shape[0]))
    scale = g * jax.lax.rsqrt(var + EPS)
    shift = b - mean * scale
    return scale.reshape(1, cp), shift.reshape(1, cp)


def resblock_forward(x_nchw, params):
    x = jnp.transpose(x_nchw, (0, 2, 3, 1)).astype(jnp.float32)     # NHWC
    n, h, w, c = x.shape
    cp = _round_up(c, LANE)                                         # lane-dense channels
    m_rows = n * h * w
    tm = _pick_tile_m(m_rows)

    x = jnp.pad(x, ((0, 0), (0, 0), (0, 0), (0, cp - c)))
    identity = x.reshape(m_rows, cp)                                # f32 residual

    # ---- stage 1: relu(bn1(conv1(x))) ---- (no skip kernel variant)
    y1, s1, ss1 = _conv_stats(_im2col(x.astype(jnp.bfloat16)),
                              _weight_matrix(params["w1"], cp),
                              _pad_row(params["b1"], cp), tm)
    scale1, shift1 = _bn_scale_shift(s1, ss1, m_rows, params["g1"], params["be1"], cp)
    out1 = _bn_act(y1, scale1, shift1, None, tm, jnp.bfloat16)      # (M, Cp) bf16

    # ---- stage 2: relu(bn2(conv2(out1)) + identity) ----
    # TODO(synk): fuse stage-1 normalize with stage-2 tap construction per M-tile
    # (needs halo exchange); BN's global batch stats force the conv/normalize
    # split regardless.
    y2, s2, ss2 = _conv_stats(_im2col(out1.reshape(n, h, w, cp)),
                              _weight_matrix(params["w2"], cp),
                              _pad_row(params["b2"], cp), tm)
    scale2, shift2 = _bn_scale_shift(s2, ss2, m_rows, params["g2"], params["be2"], cp)
    out2 = _bn_act(y2, scale2, shift2, identity, tm, jnp.float32)   # (M, Cp) f32

    out = out2[:, :c].reshape(n, h, w, c)
    return jnp.transpose(out, (0, 3, 1, 2))                         # back to NCHW


# ------------------------------ reference ---------------------------------- #

def resblock_reference(x_nchw, params):
    """Pure-JAX f32 reference matching torch semantics (for validation)."""
    def conv(x, w, b):
        y = jax.lax.conv_general_dilated(
            x, w, window_strides=(1, 1), padding=((1, 1), (1, 1)),
            dimension_numbers=("NCHW", "OIHW", "NCHW"))
        return y + b[None, :, None, None]

    def bn(x, g, be):
        mean = jnp.mean(x, axis=(0, 2, 3), keepdims=True)
        var = jnp.mean((x - mean) ** 2, axis=(0, 2, 3), keepdims=True)
        return (x - mean) * jax.lax.rsqrt(var + EPS) * g[None, :, None, None] \
            + be[None, :, None, None]

    out = jax.nn.relu(bn(conv(x_nchw, params["w1"], params["b1"]), params["g1"], params["be1"]))
    out = bn(conv(out, params["w2"], params["b2"]), params["g2"], params["be2"])
    return jax.nn.relu(out + x_nchw)


def make_params(channels, key):
    k1, k2 = jax.random.split(key)
    scale = 1.0 / jnp.sqrt(channels * 9.0)
    return {
        "w1": jax.random.normal(k1, (channels, channels, 3, 3), jnp.float32) * scale,
        "b1": jnp.linspace(-0.1, 0.1, channels, dtype=jnp.float32),
        "g1": 1.0 + 0.05 * jnp.arange(channels, dtype=jnp.float32),
        "be1": 0.02 * jnp.arange(channels, dtype=jnp.float32),
        "w2": jax.random.normal(k2, (channels, channels, 3, 3), jnp.float32) * scale,
        "b2": jnp.linspace(0.1, -0.1, channels, dtype=jnp.float32),
        "g2": 1.0 - 0.03 * jnp.arange(channels, dtype=jnp.float32),
        "be2": -0.01 * jnp.arange(channels, dtype=jnp.float32),
    }


if __name__ == "__main__":
    key = jax.random.PRNGKey(0)
    kx, kp = jax.random.split(key)

    N, C, H, W = 2, 4, 16, 16
    x = jax.random.normal(kx, (N, C, H, W), jnp.float32)
    params = make_params(C, kp)

    out = jax.block_until_ready(jax.jit(resblock_forward)(x, params))
    ref = jax.block_until_ready(resblock_reference(x, params))

    assert out.shape == (N, C, H, W), out.shape
    # bf16 matmul operands (f32 accumulation) vs the all-f32 reference.
    err = float(jnp.max(jnp.abs(out - ref)))
    assert jnp.allclose(out, ref, atol=5e-2, rtol=5e-2), err
    print("KERNEL_OK")
</pallas_src>

<mosaic_0001>
module attributes {stable_mosaic.version = 11 : i64} {
  func.func @_conv_stats_kernel(%arg0: i32, %arg1: memref<256x1152xbf16, #tpu.memory_space<vmem>>, %arg2: memref<1152x128xbf16, #tpu.memory_space<vmem>>, %arg3: memref<1x128xf32, #tpu.memory_space<vmem>>, %arg4: memref<256x128xf32, #tpu.memory_space<vmem>>, %arg5: memref<8x128xf32, #tpu.memory_space<vmem>>) attributes {dimension_semantics = [#tpu.dimension_semantics<parallel>], iteration_bounds = array<i64: 2>, scalar_prefetch = 0 : i64, scratch_operands = 0 : i64, tpu.core_type = #tpu.core_type<tc>, window_params = [{transform_indices = @transform_0, window_bounds = array<i64: 256, 1152>}, {pipeline_mode = #tpu.pipeline_mode<synchronous>, transform_indices = @transform_1, window_bounds = array<i64: 1152, 128>}, {pipeline_mode = #tpu.pipeline_mode<synchronous>, transform_indices = @transform_2, window_bounds = array<i64: 1, 128>}, {transform_indices = @transform_3, window_bounds = array<i64: 256, 128>}, {transform_indices = @transform_4, window_bounds = array<i64: 8, 128>}]} {
    %c0 = arith.constant 0 : index
    %c0_0 = arith.constant 0 : index
    %0 = vector.load %arg1[%c0, %c0_0] : memref<256x1152xbf16, #tpu.memory_space<vmem>>, vector<256x1152xbf16>
    %c0_1 = arith.constant 0 : index
    %c0_2 = arith.constant 0 : index
    %1 = vector.load %arg2[%c0_1, %c0_2] : memref<1152x128xbf16, #tpu.memory_space<vmem>>, vector<1152x128xbf16>
    %cst = arith.constant dense<0.000000e+00> : vector<256x128xf32>
    %2 = tpu.matmul %0, %1, %cst {dimension_numbers = #tpu.dot_dimension_numbers<[1], [0], [0], [1], [0, 0, 1, 1], [], []>} : vector<256x1152xbf16>, vector<1152x128xbf16>, vector<256x128xf32> -> vector<256x128xf32>
    %c0_3 = arith.constant 0 : index
    %c0_4 = arith.constant 0 : index
    %3 = vector.load %arg3[%c0_3, %c0_4] : memref<1x128xf32, #tpu.memory_space<vmem>>, vector<1x128xf32>
    %4 = vector.broadcast %3 : vector<1x128xf32> to vector<256x128xf32>
    %5 = arith.addf %2, %4 : vector<256x128xf32>
    %c0_5 = arith.constant 0 : index
    %c0_6 = arith.constant 0 : index
    %6 = vector.load %arg4[%c0_5, %c0_6] : memref<256x128xf32, #tpu.memory_space<vmem>>, vector<256x128xf32>
    tpu.vector_store %arg4[%c0_5, %c0_6], %5 {strides = array<i32>} : memref<256x128xf32, #tpu.memory_space<vmem>>, vector<256x128xf32>,
    %cst_7 = arith.constant dense<0.000000e+00> : vector<128xf32>
    %7 = vector.multi_reduction <add>, %5, %cst_7 [0] : vector<256x128xf32> to vector<128xf32>
    %8 = vector.shape_cast %7 : vector<128xf32> to vector<1x128xf32>
    %9 = arith.mulf %5, %5 : vector<256x128xf32>
    %cst_8 = arith.constant dense<0.000000e+00> : vector<128xf32>
    %10 = vector.multi_reduction <add>, %9, %cst_8 [0] : vector<256x128xf32> to vector<128xf32>
    %11 = vector.shape_cast %10 : vector<128xf32> to vector<1x128xf32>
    %cst_9 = arith.constant 0.000000e+00 : f32
    %12 = vector.broadcast %cst_9 : f32 to vector<6x128xf32>
    %13 = tpu.concatenate %8, %11, %12 in 0 : vector<1x128xf32>, vector<1x128xf32>, vector<6x128xf32> -> vector<8x128xf32>
    %c0_10 = arith.constant 0 : index
    %c0_11 = arith.constant 0 : index
    %14 = vector.load %arg5[%c0_10, %c0_11] : memref<8x128xf32, #tpu.memory_space<vmem>>, vector<8x128xf32>
    tpu.vector_store %arg5[%c0_10, %c0_11], %13 {strides = array<i32>} : memref<8x128xf32, #tpu.memory_space<vmem>>, vector<8x128xf32>,
    return
  }
  func.func @transform_0(%arg0: i32) -> (i32, i32) {
    %c0_i32 = arith.constant 0 : i32
    %c0_i32_0 = arith.constant 0 : i32
    return %arg0, %c0_i32 : i32, i32
  }
  func.func @transform_1(%arg0: i32) -> (i32, i32) {
    %c0_i32 = arith.constant 0 : i32
    %c0_i32_0 = arith.constant 0 : i32
    %c0_i32_1 = arith.constant 0 : i32
    return %c0_i32, %c0_i32_0 : i32, i32
  }
  func.func @transform_2(%arg0: i32) -> (i32, i32) {
    %c0_i32 = arith.constant 0 : i32
    %c0_i32_0 = arith.constant 0 : i32
    %c0_i32_1 = arith.constant 0 : i32
    return %c0_i32, %c0_i32_0 : i32, i32
  }
  func.func @transform_3(%arg0: i32) -> (i32, i32) {
    %c0_i32 = arith.constant 0 : i32
    %c0_i32_0 = arith.constant 0 : i32
    return %arg0, %c0_i32 : i32, i32
  }
  func.func @transform_4(%arg0: i32) -> (i32, i32) {
    %c0_i32 = arith.constant 0 : i32
    %c0_i32_0 = arith.constant 0 : i32
    return %arg0, %c0_i32 : i32, i32
  }
}

module attributes {stable_mosaic.version = 11 : i64} {
  func.func @_bn_act_kernel(%arg0: i32, %arg1: memref<256x128xf32, #tpu.memory_space<vmem>>, %arg2: memref<1x128xf32, #tpu.memory_space<vmem>>, %arg3: memref<1x128xf32, #tpu.memory_space<vmem>>, %arg4: memref<256x128xbf16, #tpu.memory_space<vmem>>) attributes {dimension_semantics = [#tpu.dimension_semantics<parallel>], iteration_bounds = array<i64: 2>, scalar_prefetch = 0 : i64, scratch_operands = 0 : i64, tpu.core_type = #tpu.core_type<tc>, window_params = [{transform_indices = @transform_0, window_bounds = array<i64: 256, 128>}, {pipeline_mode = #tpu.pipeline_mode<synchronous>, transform_indices = @transform_1, window_bounds = array<i64: 1, 128>}, {pipeline_mode = #tpu.pipeline_mode<synchronous>, transform_indices = @transform_2, window_bounds = array<i64: 1, 128>}, {transform_indices = @transform_3, window_bounds = array<i64: 256, 128>}]} {
    %c0 = arith.constant 0 : index
    %c0_0 = arith.constant 0 : index
    %0 = vector.load %arg1[%c0, %c0_0] : memref<256x128xf32, #tpu.memory_space<vmem>>, vector<256x128xf32>
    %c0_1 = arith.constant 0 : index
    %c0_2 = arith.constant 0 : index
    %1 = vector.load %arg2[%c0_1, %c0_2] : memref<1x128xf32, #tpu.memory_space<vmem>>, vector<1x128xf32>
    %2 = vector.broadcast %1 : vector<1x128xf32> to vector<256x128xf32>
    %3 = arith.mulf %0, %2 : vector<256x128xf32>
    %c0_3 = arith.constant 0 : index
    %c0_4 = arith.constant 0 : index
    %4 = vector.load %arg3[%c0_3, %c0_4] : memref<1x128xf32, #tpu.memory_space<vmem>>, vector<1x128xf32>
    %5 = vector.broadcast %4 : vector<1x128xf32> to vector<256x128xf32>
    %6 = arith.addf %3, %5 : vector<256x128xf32>
    %cst = arith.constant 0.000000e+00 : f32
    %7 = vector.broadcast %cst : f32 to vector<256x128xf32>
    %8 = arith.maximumf %6, %7 : vector<256x128xf32>
    %9 = arith.truncf %8 : vector<256x128xf32> to vector<256x128xbf16>
    %c0_5 = arith.constant 0 : index
    %c0_6 = arith.constant 0 : index
    %10 = vector.load %arg4[%c0_5, %c0_6] : memref<256x128xbf16, #tpu.memory_space<vmem>>, vector<256x128xbf16>
    tpu.vector_store %arg4[%c0_5, %c0_6], %9 {strides = array<i32>} : memref<256x128xbf16, #tpu.memory_space<vmem>>, vector<256x128xbf16>,
    return
  }
  func.func @transform_0(%arg0: i32) -> (i32, i32) {
    %c0_i32 = arith.constant 0 : i32
    %c0_i32_0 = arith.constant 0 : i32
    return %arg0, %c0_i32 : i32, i32
  }
  func.func @transform_1(%arg0: i32) -> (i32, i32) {
    %c0_i32 = arith.constant 0 : i32
    %c0_i32_0 = arith.constant 0 : i32
    %c0_i32_1 = arith.constant 0 : i32
    return %c0_i32, %c0_i32_0 : i32, i32
  }
  func.func @transform_2(%arg0: i32) -> (i32, i32) {
    %c0_i32 = arith.constant 0 : i32
    %c0_i32_0 = arith.constant 0 : i32
    %c0_i32_1 = arith.constant 0 : i32
    return %c0_i32, %c0_i32_0 : i32, i32
  }
  func.func @transform_3(%arg0: i32) -> (i32, i32) {
    %c0_i32 = arith.constant 0 : i32
    %c0_i32_0 = arith.constant 0 : i32
    return %arg0, %c0_i32 : i32, i32
  }
}

module attributes {stable_mosaic.version = 11 : i64} {
  func.func @_bn_skip_act_kernel(%arg0: i32, %arg1: memref<256x128xf32, #tpu.memory_space<vmem>>, %arg2: memref<1x128xf32, #tpu.memory_space<vmem>>, %arg3: memref<1x128xf32, #tpu.memory_space<vmem>>, %arg4: memref<256x128xf32, #tpu.memory_space<vmem>>, %arg5: memref<256x128xf32, #tpu.memory_space<vmem>>) attributes {dimension_semantics = [#tpu.dimension_semantics<parallel>], iteration_bounds = array<i64: 2>, scalar_prefetch = 0 : i64, scratch_operands = 0 : i64, tpu.core_type = #tpu.core_type<tc>, window_params = [{transform_indices = @transform_0, window_bounds = array<i64: 256, 128>}, {pipeline_mode = #tpu.pipeline_mode<synchronous>, transform_indices = @transform_1, window_bounds = array<i64: 1, 128>}, {pipeline_mode = #tpu.pipeline_mode<synchronous>, transform_indices = @transform_2, window_bounds = array<i64: 1, 128>}, {transform_indices = @transform_3, window_bounds = array<i64: 256, 128>}, {transform_indices = @transform_4, window_bounds = array<i64: 256, 128>}]} {
    %c0 = arith.constant 0 : index
    %c0_0 = arith.constant 0 : index
    %0 = vector.load %arg1[%c0, %c0_0] : memref<256x128xf32, #tpu.memory_space<vmem>>, vector<256x128xf32>
    %c0_1 = arith.constant 0 : index
    %c0_2 = arith.constant 0 : index
    %1 = vector.load %arg2[%c0_1, %c0_2] : memref<1x128xf32, #tpu.memory_space<vmem>>, vector<1x128xf32>
    %2 = vector.broadcast %1 : vector<1x128xf32> to vector<256x128xf32>
    %3 = arith.mulf %0, %2 : vector<256x128xf32>
    %c0_3 = arith.constant 0 : index
    %c0_4 = arith.constant 0 : index
    %4 = vector.load %arg3[%c0_3, %c0_4] : memref<1x128xf32, #tpu.memory_space<vmem>>, vector<1x128xf32>
    %5 = vector.broadcast %4 : vector<1x128xf32> to vector<256x128xf32>
    %6 = arith.addf %3, %5 : vector<256x128xf32>
    %c0_5 = arith.constant 0 : index
    %c0_6 = arith.constant 0 : index
    %7 = vector.load %arg4[%c0_5, %c0_6] : memref<256x128xf32, #tpu.memory_space<vmem>>, vector<256x128xf32>
    %8 = arith.addf %6, %7 : vector<256x128xf32>
    %cst = arith.constant 0.000000e+00 : f32
    %9 = vector.broadcast %cst : f32 to vector<256x128xf32>
    %10 = arith.maximumf %8, %9 : vector<256x128xf32>
    %c0_7 = arith.constant 0 : index
    %c0_8 = arith.constant 0 : index
    %11 = vector.load %arg5[%c0_7, %c0_8] : memref<256x128xf32, #tpu.memory_space<vmem>>, vector<256x128xf32>
    tpu.vector_store %arg5[%c0_7, %c0_8], %10 {strides = array<i32>} : memref<256x128xf32, #tpu.memory_space<vmem>>, vector<256x128xf32>,
    return
  }
  func.func @transform_0(%arg0: i32) -> (i32, i32) {
    %c0_i32 = arith.constant 0 : i32
    %c0_i32_0 = arith.constant 0 : i32
    return %arg0, %c0_i32 : i32, i32
  }
  func.func @transform_1(%arg0: i32) -> (i32, i32) {
    %c0_i32 = arith.constant 0 : i32
    %c0_i32_0 = arith.constant 0 : i32
    %c0_i32_1 = arith.constant 0 : i32
    return %c0_i32, %c0_i32_0 : i32, i32
  }
  func.func @transform_2(%arg0: i32) -> (i32, i32) {
    %c0_i32 = arith.constant 0 : i32
    %c0_i32_0 = arith.constant 0 : i32
    %c0_i32_1 = arith.constant 0 : i32
    return %c0_i32, %c0_i32_0 : i32, i32
  }
  func.func @transform_3(%arg0: i32) -> (i32, i32) {
    %c0_i32 = arith.constant 0 : i32
    %c0_i32_0 = arith.constant 0 : i32
    return %arg0, %c0_i32 : i32, i32
  }
  func.func @transform_4(%arg0: i32) -> (i32, i32) {
    %c0_i32 = arith.constant 0 : i32
    %c0_i32_0 = arith.constant 0 : i32
    return %arg0, %c0_i32 : i32, i32
  }
}

</mosaic_0001>

<bundles_post_ra>
// kernel: resblock_forward.5
= control target key start
LH: loop header
LB: loop body
LE: loop exit
PB: predicated region body
PF: predicated region fallthrough
CT: control target
= control target key end

     0   :  { %s574_s12 = smov 0   ;;  %s721_s0 = inlined_call_operand.vmem [shape: f32[512,128], index: 0, kind: input, shape index: {}]   ;;  %s722_s1 = inlined_call_operand.vmem [shape: f32[1,128], index: 1, kind: input, shape index: {}]   ;;  %s723_s2 = inlined_call_operand.vmem [shape: f32[1,128], index: 2, kind: input, shape index: {}]   ;;  %s724_s3 = inlined_call_operand.vmem [shape: bf16[512,128], index: 3, kind: output, shape index: {}]  }
   0x1 LB: > { %s430_s13 = sadd.s32 4294967295, %s552_s12   ;;  %p434_p0 = scmp.ge.s32.totalorder %s552_s12, 1  ;;  %s552_s12 = sphi %s574_s12, %s13_s12  }
   0x2   : > { %p138_p1 = scmp.lt.s32.totalorder %s552_s12, 3 }
   0x4   : > { %p139_p2 = pnand %p434_p0, %p138_p1 }
   0x5   : > { %s435_s14 = sshll.u32 (!%p139_p2), %s430_s13, 5 }
   0x6   : > { %142 = sbr.rel (%p139_p2) target bundleno = 49 (0x31), region = 32  ;;  %p163_p3 = scmp.lt.s32.totalorder (!%p139_p2), %s435_s14, 63 }
   0xb   : > { %s726_s14 = smov (!%p163_p3, %s435_s14), 63  ;;  %v587_v0 = vld [vmem:[%s722_s1] ss:$0 sm:$0xff] }
   0xc   : > { %s436_s17 = sshll.u32 %s726_s14, 3  ;;  %v598_v1 = vld [vmem:[%s723_s2] ss:$0 sm:$0xff]  ;;  %s438_s23 = sshll.u32 %s726_s14, 2 }
   0xd   : > { %s593_s20 = scalar_lea.vmem %s721_s0, %s436_s17  ;;  %s630_s26 = scalar_lea.vmem %s724_s3, %s438_s23 }
   0xe   : > { %v174_v2 = vld [vmem:[%s593_s20] sm:$0xff]  ;;  %v175_v3 = vld [vmem:[%s593_s20 + $0x8] sm:$0xff]  ;;  %v176_v4 = vld [vmem:[%s593_s20 + $0x10] sm:$0xff] }
   0xf   : > { %v210_v5 = vmul.f32 %v587_v0, %v174_v2  ;;  %v211_v6 = vmul.f32 %v587_v0, %v175_v3  ;;  %v177_v7 = vld [vmem:[%s593_s20 + $0x18] sm:$0xff]  ;;  %v212_v8 = vmul.f32 %v587_v0, %v176_v4  ;;  %v178_v9 = vld [vmem:[%s593_s20 + $0x20] sm:$0xff]  ;;  %v179_v10 = vld [vmem:[%s593_s20 + $0x28] sm:$0xff] }
  0x10   : > { %v213_v11 = vmul.f32 %v587_v0, %v177_v7  ;;  %v214_v12 = vmul.f32 %v587_v0, %v178_v9  ;;  %v215_v13 = vmul.f32 %v587_v0, %v179_v10  ;;  %v180_v14 = vld [vmem:[%s593_s20 + $0x30] sm:$0xff]  ;;  %v181_v15 = vld [vmem:[%s593_s20 + $0x38] sm:$0xff]  ;;  %v182_v24 = vld [vmem:[%s593_s20 + $0x40] sm:$0xff] }
  0x11   : > { %v246_v16 = vadd.f32 %v598_v1, %v210_v5  ;;  %v247_v17 = vadd.f32 %v598_v1, %v211_v6  ;;  %v248_v18 = vadd.f32 %v598_v1, %v212_v8  ;;  %v216_v19 = vmul.f32 %v587_v0, %v180_v14  ;;  %v183_v25 = vld [vmem:[%s593_s20 + $0x48] sm:$0xff]  ;;  %v184_v30 = vld [vmem:[%s593_s20 + $0x50] sm:$0xff]  ;;  %v185_v35 = vld [vmem:[%s593_s20 + $0x58] sm:$0xff] }
  0x12   : > { %v249_v20 = vadd.f32 %v598_v1, %v213_v11  ;;  %v250_v21 = vadd.f32 %v598_v1, %v214_v12  ;;  %v251_v22 = vadd.f32 %v598_v1, %v215_v13  ;;  %v217_v23 = vmul.f32 %v587_v0, %v181_v15  ;;  %v186_v36 = vld [vmem:[%s593_s20 + $0x60] sm:$0xff]  ;;  %v187_v41 = vld [vmem:[%s593_s20 + $0x68] sm:$0xff]  ;;  %v188_v42 = vld [vmem:[%s593_s20 + $0x70] sm:$0xff] }
  0x13   : > { %v278_v26 = vmax.f32 %v246_v16, 0.0  ;;  %v279_v27 = vmax.f32 %v247_v17, 0.0  ;;  %v280_v28 = vmax.f32 %v248_v18, 0.0  ;;  %v252_v29 = vadd.f32 %v598_v1, %v216_v19  ;;  %v189_v51 = vld [vmem:[%s593_s20 + $0x78] sm:$0xff]  ;;  %v190_v56 = vld [vmem:[%s593_s20 + $0x80] sm:$0xff]  ;;  %v191_v61 = vld [vmem:[%s593_s20 + $0x88] sm:$0xff] }
  0x14   : > { %v281_v31 = vmax.f32 %v249_v20, 0.0  ;;  %v282_v32 = vmax.f32 %v250_v21, 0.0  ;;  %v283_v33 = vmax.f32 %v251_v22, 0.0  ;;  %v253_v34 = vadd.f32 %v598_v1, %v217_v23  ;;  %v192_v4 = vld [vmem:[%s593_s20 + $0x90] sm:$0xff]  ;;  %v193_v5 = vld [vmem:[%s593_s20 + $0x98] sm:$0xff]  ;;  %v194_v10 = vld [vmem:[%s593_s20 + $0xa0] sm:$0xff] }
  0x15   : > { %v444_v37 = vpack.c.bf16 %v279_v27, %v278_v26  ;;  %v284_v38 = vmax.f32 %v252_v29, 0.0  ;;  %v218_v39 = vmul.f32 %v587_v0, %v182_v24  ;;  %v219_v40 = vmul.f32 %v587_v0, %v183_v25  ;;  %v195_v15 = vld [vmem:[%s593_s20 + $0xa8] sm:$0xff]  ;;  %v196_v20 = vld [vmem:[%s593_s20 + $0xb0] sm:$0xff]  ;;  %v197_v25 = vld [vmem:[%s593_s20 + $0xb8] sm:$0xff] }
  0x16   : > { %v449_v43 = vpack.c.bf16 %v281_v31, %v280_v28  ;;  %v454_v44 = vpack.c.bf16 %v283_v33, %v282_v32  ;;  %v285_v45 = vmax.f32 %v253_v34, 0.0  ;;  %v220_v46 = vmul.f32 %v587_v0, %v184_v30  ;;  %v198_v30 = vld [vmem:[%s593_s20 + $0xc0] sm:$0xff] }
  0x17   : > { %445 = vst [vmem:[%s630_s26] sm:$0xff] %v444_v37   ;;  %v254_v47 = vadd.f32 %v598_v1, %v218_v39  ;;  %v255_v48 = vadd.f32 %v598_v1, %v219_v40  ;;  %v221_v49 = vmul.f32 %v587_v0, %v185_v35  ;;  %v222_v50 = vmul.f32 %v587_v0, %v186_v36  ;;  %v199_v35 = vld [vmem:[%s593_s20 + $0xc8] sm:$0xff]  ;;  %v200_v40 = vld [vmem:[%s593_s20 + $0xd0] sm:$0xff] }
  0x18   : > { %521 = vst [vmem:[%s630_s26 + $0x8] sm:$0xff] %v449_v43   ;;  %v459_v52 = vpack.c.bf16 %v285_v45, %v284_v38  ;;  %v256_v53 = vadd.f32 %v598_v1, %v220_v46  ;;  %v223_v54 = vmul.f32 %v587_v0, %v187_v41  ;;  %v224_v55 = vmul.f32 %v587_v0, %v188_v42  ;;  %v201_v41 = vld [vmem:[%s593_s20 + $0xd8] sm:$0xff]  ;;  %v202_v46 = vld [vmem:[%s593_s20 + $0xe0] sm:$0xff] }
  0x19   : > { %522 = vst [vmem:[%s630_s26 + $0x10] sm:$0xff] %v454_v44   ;;  %v286_v57 = vmax.f32 %v254_v47, 0.0  ;;  %v287_v58 = vmax.f32 %v255_v48, 0.0  ;;  %v257_v59 = vadd.f32 %v598_v1, %v221_v49  ;;  %v258_v60 = vadd.f32 %v598_v1, %v222_v50 }
  0x1a   : > { %523 = vst [vmem:[%s630_s26 + $0x18] sm:$0xff] %v459_v52   ;;  %v288_v62 = vmax.f32 %v256_v53, 0.0  ;;  %v259_v63 = vadd.f32 %v598_v1, %v223_v54  ;;  %v225_v2 = vmul.f32 %v587_v0, %v189_v51  ;;  %v260_v3 = vadd.f32 %v598_v1, %v224_v55  ;;  %v203_v51 = vld [vmem:[%s593_s20 + $0xe8] sm:$0xff] }
  0x1b   : > { %v464_v6 = vpack.c.bf16 %v287_v58, %v286_v57  ;;  %v289_v7 = vmax.f32 %v257_v59, 0.0  ;;  %v290_v8 = vmax.f32 %v258_v60, 0.0  ;;  %v226_v9 = vmul.f32 %v587_v0, %v190_v56  ;;  %v204_v56 = vld [vmem:[%s593_s20 + $0xf0] sm:$0xff] }
  0x1c   : > { %v291_v11 = vmax.f32 %v259_v63, 0.0  ;;  %v261_v12 = vadd.f32 %v598_v1, %v225_v2  ;;  %v292_v13 = vmax.f32 %v260_v3, 0.0  ;;  %v227_v14 = vmul.f32 %v587_v0, %v191_v61  ;;  %v205_v61 = vld [vmem:[%s593_s20 + $0xf8] sm:$0xff] }
  0x1d   : > { %524 = vst [vmem:[%s630_s26 + $0x20] sm:$0xff] %v464_v6   ;;  %v469_v16 = vpack.c.bf16 %v289_v7, %v288_v62  ;;  %v262_v17 = vadd.f32 %v598_v1, %v226_v9  ;;  %v228_v18 = vmul.f32 %v587_v0, %v192_v4  ;;  %v229_v19 = vmul.f32 %v587_v0, %v193_v5 }
  0x1e   : > { %v474_v21 = vpack.c.bf16 %v291_v11, %v290_v8  ;;  %v293_v22 = vmax.f32 %v261_v12, 0.0  ;;  %v263_v23 = vadd.f32 %v598_v1, %v227_v14  ;;  %v230_v24 = vmul.f32 %v587_v0, %v194_v10 }
  0x1f   : > { %525 = vst [vmem:[%s630_s26 + $0x28] sm:$0xff] %v469_v16   ;;  %v294_v26 = vmax.f32 %v262_v17, 0.0  ;;  %v264_v27 = vadd.f32 %v598_v1, %v228_v18  ;;  %v265_v28 = vadd.f32 %v598_v1, %v229_v19  ;;  %v231_v29 = vmul.f32 %v587_v0, %v195_v15 }
  0x20   : > { %526 = vst [vmem:[%s630_s26 + $0x30] sm:$0xff] %v474_v21   ;;  %v479_v31 = vpack.c.bf16 %v293_v22, %v292_v13  ;;  %v295_v32 = vmax.f32 %v263_v23, 0.0  ;;  %v266_v33 = vadd.f32 %v598_v1, %v230_v24  ;;  %v232_v34 = vmul.f32 %v587_v0, %v196_v20 }
  0x21   : > { %v296_v36 = vmax.f32 %v264_v27, 0.0  ;;  %v297_v37 = vmax.f32 %v265_v28, 0.0  ;;  %v267_v38 = vadd.f32 %v598_v1, %v231_v29  ;;  %v233_v39 = vmul.f32 %v587_v0, %v197_v25 }
  0x22   : > { %527 = vst [vmem:[%s630_s26 + $0x38] sm:$0xff] %v479_v31   ;;  %v484_v42 = vpack.c.bf16 %v295_v32, %v294_v26  ;;  %v298_v43 = vmax.f32 %v266_v33, 0.0  ;;  %v268_v44 = vadd.f32 %v598_v1, %v232_v34  ;;  %v234_v45 = vmul.f32 %v587_v0, %v198_v30 }
  0x23   : > { %v489_v47 = vpack.c.bf16 %v297_v37, %v296_v36  ;;  %v299_v48 = vmax.f32 %v267_v38, 0.0  ;;  %v269_v49 = vadd.f32 %v598_v1, %v233_v39  ;;  %v235_v50 = vmul.f32 %v587_v0, %v199_v35 }
  0x24   : > { %528 = vst [vmem:[%s630_s26 + $0x40] sm:$0xff] %v484_v42   ;;  %v300_v52 = vmax.f32 %v268_v44, 0.0  ;;  %v270_v53 = vadd.f32 %v598_v1, %v234_v45  ;;  %v236_v54 = vmul.f32 %v587_v0, %v200_v40  ;;  %v237_v55 = vmul.f32 %v587_v0, %v201_v41 }
  0x25   : > { %529 = vst [vmem:[%s630_s26 + $0x48] sm:$0xff] %v489_v47   ;;  %v494_v57 = vpack.c.bf16 %v299_v48, %v298_v43  ;;  %v301_v58 = vmax.f32 %v269_v49, 0.0  ;;  %v271_v59 = vadd.f32 %v598_v1, %v235_v50  ;;  %v238_v60 = vmul.f32 %v587_v0, %v202_v46 }
  0x26   : > { %v302_v62 = vmax.f32 %v270_v53, 0.0  ;;  %v272_v63 = vadd.f32 %v598_v1, %v236_v54  ;;  %v273_v2 = vadd.f32 %v598_v1, %v237_v55  ;;  %v239_v3 = vmul.f32 %v587_v0, %v203_v51 }
  0x27   : > { %530 = vst [vmem:[%s630_s26 + $0x50] sm:$0xff] %v494_v57   ;;  %v499_v4 = vpack.c.bf16 %v301_v58, %v300_v52  ;;  %v303_v5 = vmax.f32 %v271_v59, 0.0  ;;  %v274_v6 = vadd.f32 %v598_v1, %v238_v60  ;;  %v240_v7 = vmul.f32 %v587_v0, %v204_v56 }
  0x28   : > { %v304_v8 = vmax.f32 %v272_v63, 0.0  ;;  %v305_v9 = vmax.f32 %v273_v2, 0.0  ;;  %v275_v10 = vadd.f32 %v598_v1, %v239_v3  ;;  %v241_v11 = vmul.f32 %v587_v0, %v205_v61 }
  0x29   : > { %531 = vst [vmem:[%s630_s26 + $0x58] sm:$0xff] %v499_v4   ;;  %v504_v12 = vpack.c.bf16 %v303_v5, %v302_v62  ;;  %v306_v13 = vmax.f32 %v274_v6, 0.0  ;;  %v276_v14 = vadd.f32 %v598_v1, %v240_v7 }
  0x2a   : > { %v509_v15 = vpack.c.bf16 %v305_v9, %v304_v8  ;;  %v307_v16 = vmax.f32 %v275_v10, 0.0  ;;  %v277_v17 = vadd.f32 %v598_v1, %v241_v11 }
  0x2b   : > { %532 = vst [vmem:[%s630_s26 + $0x60] sm:$0xff] %v504_v12   ;;  %v308_v18 = vmax.f32 %v276_v14, 0.0 }
  0x2c   : > { %533 = vst [vmem:[%s630_s26 + $0x68] sm:$0xff] %v509_v15   ;;  %v514_v19 = vpack.c.bf16 %v307_v16, %v306_v13  ;;  %v309_v20 = vmax.f32 %v277_v17, 0.0 }
  0x2e   : > { %534 = vst [vmem:[%s630_s26 + $0x70] sm:$0xff] %v514_v19   ;;  %v519_v21 = vpack.c.bf16 %v309_v20, %v308_v18 }
  0x30   : > { %535 = vst [vmem:[%s630_s26 + $0x78] sm:$0xff] %v519_v21  }
  0x31 PF: > { %s13_s12 = sadd.s32 1, %s552_s12  }
  0x32   : > { %p10_p4 = scmp.ge.s32.totalorder %s13_s12, 4  }
  0x34   :  { %12 = sbr.rel (!%p10_p4) target bundleno = 1 (0x1), region = 62 }

// kernel: resblock_forward.4
= control target key start
LH: loop header
LB: loop body
LE: loop exit
PB: predicated region body
PF: predicated region fallthrough
CT: control target
= control target key end

     0   :  { %s3881_s15 = smov 0   ;;  %s4679_s0 = inlined_call_operand.vmem [shape: bf16[512,1152], index: 0, kind: input, shape index: {}]   ;;  %s4680_s1 = inlined_call_operand.vmem [shape: bf16[1152,128], index: 1, kind: input, shape index: {}]   ;;  %s4681_s2 = inlined_call_operand.vmem [shape: f32[1,128], index: 2, kind: input, shape index: {}]   ;;  %s4682_s3 = inlined_call_operand.vmem [shape: f32[512,128], index: 3, kind: output, shape index: {0}]   ;;  %s4683_s4 = inlined_call_operand.vmem [shape: f32[16,128], index: 4, kind: output, shape index: {1}]  }
   0x1 LB: > { %s3887_s16 = sadd.s32 4294967295, %s3854_s15   ;;  %p2726_p0 = scmp.ge.s32.totalorder %s3854_s15, 1  ;;  %s3854_s15 = sphi %s3881_s15, %s15_s15  }
   0x2   : > { %p167_p1 = scmp.lt.s32.totalorder %s3854_s15, 3 }
   0x4   : > { %p168_p2 = pnand %p2726_p0, %p167_p1 }
   0x5   : > { %s2727_s23 = sshll.u32 (!%p168_p2), %s3887_s16, 5  ;;  %p211_p4 = scmp.lt.s32.totalorder (!%p168_p2), %s3887_s16, 1 }
   0x6   : > { %171 = sbr.rel (%p168_p2) target bundleno = 768 (0x300), region = 32  ;;  %p199_p3 = scmp.lt.s32.totalorder (!%p168_p2), %s2727_s23, 63 }
   0xb   : > { %v3749_v0 = vld [vmem:[%s4680_s1 + $0x38] sm:$0xff]  ;;  %v3748_v1 = vld [vmem:[%s4680_s1 + $0x30] sm:$0xff]  ;;  %v3747_v2 = vld [vmem:[%s4680_s1 + $0x28] sm:$0xff]  ;;  %s4685_s23 = smov (!%p199_p3, %s2727_s23), 63  ;;  %s4687_s16 = smov (!%p211_p4, %s3887_s16), 1  ;;  %vm2630_vm0 = vcmask 1040384  }
   0xc   : > { %3814 = vmatpush.bf16.msra.mxu1 %v3749_v0  ;;  %3815 = vmatpush.bf16.msra.mxu2 %v3749_v0  ;;  %v3746_v3 = vld [vmem:[%s4680_s1 + $0x20] sm:$0xff]  ;;  %v3745_v4 = vld [vmem:[%s4680_s1 + $0x18] sm:$0xff]  ;;  %v3744_v5 = vld [vmem:[%s4680_s1 + $0x10] sm:$0xff]  ;;  %s3838_s30 = smul.u32 36, %s4685_s23  ;;  %s2730_s10 = sshll.u32 %s4685_s23, 3  ;;  %vm2632_vm1 = vcmask 1041408  }
   0xd   : > { %3816 = vmatpush.bf16.msra.mxu3 %v3749_v0  ;;  %1691 = vmatpush.bf16.msra.mxu0 %v3749_v0  ;;  %v3743_v6 = vld [vmem:[%s4680_s1 + $0x8] sm:$0xff]  ;;  %v3742_v7 = vld [vmem:[%s4680_s1] sm:$0xff]  ;;  %v3765_v16 = vld [vmem:[%s4680_s1 + $0xb8] sm:$0xff]  ;;  %s4550_s13 = scalar_lea.vmem %s4682_s3, %s2730_s10  ;;  %s2731_s23 = sshll.u32 %s4687_s16, 3 }
   0xe   : > { %s3919_s9 = scalar_lea.vmem %s4679_s0, %s3838_s30  ;;  %v3773_v17 = vld [vmem:[%s4680_s1 + $0xf8] sm:$0xff]  ;;  %v3764_v24 = vld [vmem:[%s4680_s1 + $0xb0] sm:$0xff]  ;;  %v3763_v28 = vld [vmem:[%s4680_s1 + $0xa8] sm:$0xff]  ;;  %s214_s17 = scalar_lea.vmem %s4683_s4, %s2731_s23 }
   0xf   : > { %v2878_v8 = vld [vmem:[%s3919_s9 + $0x120] sm:$0xf]  ;;  %v3638_v9 = vld [vmem:[%s3919_s9 + $0x140] sm:$0xf0]  ;;  %v3757_v22 = vld [vmem:[%s4680_s1 + $0x78] sm:$0xff] }
  0x10   : > { %3817 = vmatpush.bf16.msra.mxu1 %v3748_v1  ;;  %3818 = vmatpush.bf16.msra.mxu2 %v3748_v1  ;;  %v3022_v10 = vld [vmem:[%s3919_s9 + $0x240] sm:$0xf]  ;;  %v3674_v11 = vld [vmem:[%s3919_s9 + $0x260] sm:$0xf0]  ;;  %v2879_v18 = vor.u32 %v3638_v9, %v2878_v8  ;;  %v3781_v23 = vld [vmem:[%s4680_s1 + $0x138] sm:$0xff] }
  0x11   : > { %3819 = vmatpush.bf16.msra.mxu3 %v3748_v1  ;;  %1692 = vmatpush.bf16.msra.mxu0 %v3748_v1  ;;  %v3166_v12 = vld [vmem:[%s3919_s9 + $0x360] sm:$0xf]  ;;  %v3710_v13 = vld [vmem:[%s3919_s9 + $0x380] sm:$0xf0]  ;;  %v3023_v19 = vor.u32 %v3674_v11, %v3022_v10  ;;  %v3772_v25 = vld [vmem:[%s4680_s1 + $0xf0] sm:$0xff] }
  0x12   : > { %v2734_v14 = vld [vmem:[%s3919_s9] sm:$0xf]  ;;  %v3602_v15 = vld [vmem:[%s3919_s9 + $0x20] sm:$0xf0]  ;;  %v3167_v20 = vor.u32 %v3710_v13, %v3166_v12  ;;  %v3756_v26 = vld [vmem:[%s4680_s1 + $0x70] sm:$0xff] }
  0x13   : > { %v2735_v21 = vor.u32 %v3602_v15, %v2734_v14  ;;  %v3780_v27 = vld [vmem:[%s4680_s1 + $0x130] sm:$0xff]  ;;  %v3771_v29 = vld [vmem:[%s4680_s1 + $0xe8] sm:$0xff]  ;;  %v3762_v33 = vld [vmem:[%s4680_s1 + $0xa0] sm:$0xff] }
  0x14   : > { %3820 = vmatpush.bf16.msra.mxu1 %v3747_v2  ;;  %3821 = vmatpush.bf16.msra.mxu2 %v3747_v2  ;;  %v3755_v30 = vld [vmem:[%s4680_s1 + $0x68] sm:$0xff]  ;;  %v3770_v34 = vld [vmem:[%s4680_s1 + $0xe0] sm:$0xff]  ;;  %v3761_v44 = vld [vmem:[%s4680_s1 + $0x98] sm:$0xff] }
  0x15   : > { %3822 = vmatpush.bf16.msra.mxu3 %v3747_v2  ;;  %1693 = vmatpush.bf16.msra.mxu0 %v3747_v2  ;;  %v3779_v31 = vld [vmem:[%s4680_s1 + $0x128] sm:$0xff]  ;;  %v3754_v42 = vld [vmem:[%s4680_s1 + $0x60] sm:$0xff]  ;;  %v3769_v45 = vld [vmem:[%s4680_s1 + $0xd8] sm:$0xff] }
  0x16   : > { %v2914_v32 = vld [vmem:[%s3919_s9 + $0x168] sm:$0xf]  ;;  %v3647_v35 = vld [vmem:[%s3919_s9 + $0x188] sm:$0xf0]  ;;  %v3778_v43 = vld [vmem:[%s4680_s1 + $0x120] sm:$0xff] }
  0x17   : > { %v3058_v36 = vld [vmem:[%s3919_s9 + $0x288] sm:$0xf]  ;;  %v3683_v37 = vld [vmem:[%s3919_s9 + $0x2a8] sm:$0xf0]  ;;  %v2915_v46 = vor.u32 %v3647_v35, %v2914_v32  ;;  %v3753_v50 = vld [vmem:[%s4680_s1 + $0x58] sm:$0xff] }
  0x18   : > { %3823 = vmatpush.bf16.msra.mxu1 %v3746_v3  ;;  %3824 = vmatpush.bf16.msra.mxu2 %v3746_v3  ;;  %v3202_v38 = vld [vmem:[%s3919_s9 + $0x3a8] sm:$0xf]  ;;  %v3719_v39 = vld [vmem:[%s3919_s9 + $0x3c8] sm:$0xf0]  ;;  %v3059_v47 = vor.u32 %v3683_v37, %v3058_v36  ;;  %v3777_v51 = vld [vmem:[%s4680_s1 + $0x118] sm:$0xff] }
  0x19   : > { %3825 = vmatpush.bf16.msra.mxu3 %v3746_v3  ;;  %1694 = vmatpush.bf16.msra.mxu0 %v3746_v3  ;;  %v2770_v40 = vld [vmem:[%s3919_s9 + $0x48] sm:$0xf]  ;;  %v3611_v41 = vld [vmem:[%s3919_s9 + $0x68] sm:$0xf0]  ;;  %v3203_v48 = vor.u32 %v3719_v39, %v3202_v38  ;;  %v3760_v52 = vld [vmem:[%s4680_s1 + $0x90] sm:$0xff] }
  0x1a   : > { %v2771_v49 = vor.u32 %v3611_v41, %v2770_v40  ;;  %v3768_v53 = vld [vmem:[%s4680_s1 + $0xd0] sm:$0xff]  ;;  %v3759_v56 = vld [vmem:[%s4680_s1 + $0x88] sm:$0xff]  ;;  %v3758_v61 = vld [vmem:[%s4680_s1 + $0x80] sm:$0xff] }
  0x1b   : > { %v3752_v54 = vld [vmem:[%s4680_s1 + $0x50] sm:$0xff]  ;;  %v3767_v57 = vld [vmem:[%s4680_s1 + $0xc8] sm:$0xff]  ;;  %v3766_v62 = vld [vmem:[%s4680_s1 + $0xc0] sm:$0xff] }
  0x1c   : > { %3826 = vmatpush.bf16.msra.mxu1 %v3745_v4  ;;  %3827 = vmatpush.bf16.msra.mxu2 %v3745_v4  ;;  %v3776_v55 = vld [vmem:[%s4680_s1 + $0x110] sm:$0xff]  ;;  %v3751_v58 = vld [vmem:[%s4680_s1 + $0x48] sm:$0xff]  ;;  %v3797_v12 = vld [vmem:[%s4680_s1 + $0x1b8] sm:$0xff] }
  0x1d   : > { %3828 = vmatpush.bf16.msra.mxu3 %v3745_v4  ;;  %1695 = vmatpush.bf16.msra.mxu0 %v3745_v4  ;;  %v3775_v59 = vld [vmem:[%s4680_s1 + $0x108] sm:$0xff]  ;;  %v2950_v60 = vld [vmem:[%s3919_s9 + $0x1b0] sm:$0xf]  ;;  %v3656_v63 = vld [vmem:[%s3919_s9 + $0x1d0] sm:$0xf0] }
  0x1e   : > { %v3094_v0 = vld [vmem:[%s3919_s9 + $0x2d0] sm:$0xf]  ;;  %v3692_v1 = vld [vmem:[%s3919_s9 + $0x2f0] sm:$0xf0]  ;;  %v2951_v8 = vor.u32 %v3656_v63, %v2950_v60  ;;  %v3805_v13 = vld [vmem:[%s4680_s1 + $0x1f8] sm:$0xff] }
  0x1f   : > { %v3238_v2 = vld [vmem:[%s3919_s9 + $0x3f0] sm:$0xf]  ;;  %v3728_v3 = vld [vmem:[%s3919_s9 + $0x410] sm:$0xf0]  ;;  %v3095_v9 = vor.u32 %v3692_v1, %v3094_v0  ;;  %v3789_v14 = vld [vmem:[%s4680_s1 + $0x178] sm:$0xff] }
  0x20   : > { %3829 = vmatpush.bf16.msra.mxu1 %v3744_v5  ;;  %3830 = vmatpush.bf16.msra.mxu2 %v3744_v5  ;;  %v2806_v4 = vld [vmem:[%s3919_s9 + $0x90] sm:$0xf]  ;;  %v3239_v10 = vor.u32 %v3728_v3, %v3238_v2  ;;  %v3813_v15 = vld [vmem:[%s4680_s1 + $0x238] sm:$0xff]  ;;  %v3599_v32 = vld [vmem:[%s3919_s9 + $0xc] sm:$0xf] }
  0x21   : > { %3831 = vmatpush.bf16.msra.mxu3 %v3744_v5  ;;  %1696 = vmatpush.bf16.msra.mxu0 %v3744_v5  ;;  %v3620_v5 = vld [vmem:[%s3919_s9 + $0xb0] sm:$0xf0]  ;;  %v3617_v60 = vld [vmem:[%s3919_s9 + $0x9c] sm:$0xf]  ;;  %v3622_v63 = vld [vmem:[%s3919_s9 + $0xc0] sm:$0xf0] }
  0x22   : > { %v2807_v11 = vor.u32 %v3620_v5, %v2806_v4  ;;  %v3604_v35 = vld [vmem:[%s3919_s9 + $0x30] sm:$0xf0]  ;;  %v3795_v4 = vld [vmem:[%s4680_s1 + $0x1a8] sm:$0xff] }
  0x23   : > { %v3796_v40 = vld [vmem:[%s4680_s1 + $0x1b0] sm:$0xff]  ;;  %v3803_v5 = vld [vmem:[%s4680_s1 + $0x1e8] sm:$0xff] }
  0x24   : > { %3832 = vmatpush.bf16.msra.mxu1 %v3743_v6  ;;  %3833 = vmatpush.bf16.msra.mxu2 %v3743_v6  ;;  %v3804_v41 = vld [vmem:[%s4680_s1 + $0x1f0] sm:$0xff] }
  0x25   : > { %3834 = vmatpush.bf16.msra.mxu3 %v3743_v6  ;;  %1697 = vmatpush.bf16.msra.mxu0 %v3743_v6  ;;  %v3750_v6 = vld [vmem:[%s4680_s1 + $0x40] sm:$0xff] }
  0x28   : > { %3835 = vmatpush.bf16.msra.mxu1 %v3742_v7  ;;  %3836 = vmatpush.bf16.msra.mxu2 %v3742_v7 }
  0x29   : > { %3837 = vmatpush.bf16.msra.mxu3 %v3742_v7  ;;  %1698 = vmatpush.bf16.msra.mxu0 %v3742_v7  ;;  %v3774_v7 = vld [vmem:[%s4680_s1 + $0x100] sm:$0xff] }
  0x2b   : > { %1719 = vmatmul.bf16.vlgmr.msra.gmra.mxu1 %v2879_v18  ;;  %1739 = vmatmul.bf16.vlgmr.msra.gmra.mxu2 %v3023_v19  ;;  %v3130_v18 = vld [vmem:[%s3919_s9 + $0x318] sm:$0xf]  ;;  %v3701_v19 = vld [vmem:[%s3919_s9 + $0x338] sm:$0xf0] }
  0x2c   : > { %1869 = vmatpush.bf16.msrb.mxu2 %v3765_v16  ;;  %1759 = vmatmul.bf16.vlgmr.msra.gmra.mxu3 %v3167_v20  ;;  %v2986_v16 = vld [vmem:[%s3919_s9 + $0x1f8] sm:$0xf] }
  0x2d   : > { %1958 = vmatpush.bf16.msrb.mxu3 %v3773_v17  ;;  %1699 = vmatmul.bf16.vlgmr.msra.gmra.mxu0 %v2735_v21  ;;  %v3665_v17 = vld [vmem:[%s3919_s9 + $0x218] sm:$0xf0]  ;;  %v3274_v20 = vld [vmem:[%s3919_s9 + $0x438] sm:$0xf] }
  0x2e   : > { %1780 = vmatpush.bf16.msrb.mxu1 %v3757_v22  ;;  %2047 = vmatpush.bf16.msrb.mxu0 %v3781_v23  ;;  %v3737_v21 = vld [vmem:[%s3919_s9 + $0x458] sm:$0xf0]  ;;  %v2842_v22 = vld [vmem:[%s3919_s9 + $0xd8] sm:$0xf] }
  0x2f   : > { %v3629_v23 = vld [vmem:[%s3919_s9 + $0xf8] sm:$0xf0] }
  0x30   : > { %1870 = vmatpush.bf16.msrb.mxu2 %v3764_v24  ;;  %v2987_v24 = vor.u32 %v3665_v17, %v2986_v16 }
  0x31   : > { %1959 = vmatpush.bf16.msrb.mxu3 %v3772_v25  ;;  %v3131_v25 = vor.u32 %v3701_v19, %v3130_v18 }
  0x32   : > { %1781 = vmatpush.bf16.msrb.mxu1 %v3756_v26  ;;  %2048 = vmatpush.bf16.msrb.mxu0 %v3780_v27  ;;  %v3275_v26 = vor.u32 %v3737_v21, %v3274_v20  ;;  %v2843_v27 = vor.u32 %v3629_v23, %v2842_v22  ;;  %v4123_v20 = vld [vmem:[%s4681_s2] ss:$0 sm:$0xff]  ;;  %v3634_v21 = vld [vmem:[%s3919_s9 + $0x124] sm:$0xf]  ;;  %v2880_v22 = vld [vmem:[%s3919_s9 + $0x144] sm:$0xf0] }
  0x33   : > { %v2886_v23 = vld [vmem:[%s3919_s9 + $0x128] sm:$0xf] }
  0x34   : > { %1871 = vmatpush.bf16.msrb.mxu2 %v3763_v28  ;;  %v3598_v28 = vld [vmem:[%s3919_s9 + $0x4] sm:$0xf] }
  0x35   : > { %1960 = vmatpush.bf16.msrb.mxu3 %v3771_v29  ;;  %v2736_v29 = vld [vmem:[%s3919_s9 + $0x24] sm:$0xf0] }
  0x36   : > { %1782 = vmatpush.bf16.msrb.mxu1 %v3755_v30  ;;  %2049 = vmatpush.bf16.msrb.mxu0 %v3779_v31  ;;  %v2742_v30 = vld [vmem:[%s3919_s9 + $0x8] sm:$0xf]  ;;  %v3603_v31 = vld [vmem:[%s3919_s9 + $0x28] sm:$0xf0]  ;;  %v2739_v36 = vor.u32 %v3598_v28, %v2736_v29  ;;  %v3640_v28 = vld [vmem:[%s3919_s9 + $0x150] sm:$0xf0]  ;;  %v2883_v29 = vor.u32 %v3634_v21, %v2880_v22 }
  0x37   : > { %v2743_v37 = vor.u32 %v3603_v31, %v2742_v30 }
  0x38   : > { %1872 = vmatpush.bf16.msrb.mxu2 %v3762_v33  ;;  %v2744_v33 = vld [vmem:[%s3919_s9 + $0x2c] sm:$0xf0] }
  0x39   : > { %1961 = vmatpush.bf16.msrb.mxu3 %v3770_v34  ;;  %v2750_v34 = vld [vmem:[%s3919_s9 + $0x10] sm:$0xf]  ;;  %v2747_v38 = vor.u32 %v3599_v32, %v2744_v33 }
  0x3a   : > { %1783 = vmatpush.bf16.msrb.mxu1 %v3754_v42  ;;  %2050 = vmatpush.bf16.msrb.mxu0 %v3778_v43  ;;  %v2751_v39 = vor.u32 %v3604_v35, %v2750_v34  ;;  %v3788_v42 = vld [vmem:[%s4680_s1 + $0x170] sm:$0xff] }
  0x3b   : > { %1724 = vmatmul.bf16.gmra.mxu1 %v2915_v46  ;;  %1744 = vmatmul.bf16.gmra.mxu2 %v3059_v47  ;;  %v3812_v43 = vld [vmem:[%s4680_s1 + $0x230] sm:$0xff] }
  0x3c   : > { %1873 = vmatpush.bf16.msrb.mxu2 %v3761_v44  ;;  %1764 = vmatmul.bf16.gmra.mxu3 %v3203_v48  ;;  %v3607_v44 = vld [vmem:[%s3919_s9 + $0x4c] sm:$0xf]  ;;  %v2778_v46 = vld [vmem:[%s3919_s9 + $0x50] sm:$0xf]  ;;  %v3612_v47 = vld [vmem:[%s3919_s9 + $0x70] sm:$0xf0] }
  0x3d   : > { %1962 = vmatpush.bf16.msrb.mxu3 %v3769_v45  ;;  %1704 = vmatmul.bf16.gmra.mxu0 %v2771_v49  ;;  %v2772_v45 = vld [vmem:[%s3919_s9 + $0x6c] sm:$0xf0]  ;;  %v3608_v48 = vld [vmem:[%s3919_s9 + $0x54] sm:$0xf]  ;;  %v2780_v49 = vld [vmem:[%s3919_s9 + $0x74] sm:$0xf0] }
  0x3e   : > { %1784 = vmatpush.bf16.msrb.mxu1 %v3753_v50  ;;  %2051 = vmatpush.bf16.msrb.mxu0 %v3777_v51  ;;  %v2786_v50 = vld [vmem:[%s3919_s9 + $0x58] sm:$0xf]  ;;  %v3613_v51 = vld [vmem:[%s3919_s9 + $0x78] sm:$0xf0] }
  0x40   : > { %1874 = vmatpush.bf16.msrb.mxu2 %v3760_v52  ;;  %v2775_v52 = vor.u32 %v3607_v44, %v2772_v45 }
  0x41   : > { %1963 = vmatpush.bf16.msrb.mxu3 %v3768_v53  ;;  %v2779_v53 = vor.u32 %v3612_v47, %v2778_v46  ;;  %v3810_v46 = vld [vmem:[%s4680_s1 + $0x220] sm:$0xff]  ;;  %v3643_v47 = vld [vmem:[%s3919_s9 + $0x16c] sm:$0xf] }
  0x42   : > { %1785 = vmatpush.bf16.msrb.mxu1 %v3752_v54  ;;  %2052 = vmatpush.bf16.msrb.mxu0 %v3776_v55  ;;  %v2783_v54 = vor.u32 %v3608_v48, %v2780_v49  ;;  %v2787_v55 = vor.u32 %v3613_v51, %v2786_v50  ;;  %v2916_v48 = vld [vmem:[%s3919_s9 + $0x18c] sm:$0xf0]  ;;  %v3648_v50 = vld [vmem:[%s3919_s9 + $0x190] sm:$0xf0] }
  0x43   : > { %v2922_v49 = vld [vmem:[%s3919_s9 + $0x170] sm:$0xf]  ;;  %v3644_v51 = vld [vmem:[%s3919_s9 + $0x174] sm:$0xf] }
  0x44   : > { %1875 = vmatpush.bf16.msrb.mxu2 %v3759_v56  ;;  %v3616_v56 = vld [vmem:[%s3919_s9 + $0x94] sm:$0xf] }
  0x45   : > { %1964 = vmatpush.bf16.msrb.mxu3 %v3767_v57  ;;  %v2808_v57 = vld [vmem:[%s3919_s9 + $0xb4] sm:$0xf0] }
  0x46   : > { %1786 = vmatpush.bf16.msrb.mxu1 %v3751_v58  ;;  %2053 = vmatpush.bf16.msrb.mxu0 %v3775_v59  ;;  %v2814_v58 = vld [vmem:[%s3919_s9 + $0x98] sm:$0xf]  ;;  %v3621_v59 = vld [vmem:[%s3919_s9 + $0xb8] sm:$0xf0]  ;;  %v2811_v0 = vor.u32 %v3616_v56, %v2808_v57 }
  0x47   : > { %v2815_v1 = vor.u32 %v3621_v59, %v2814_v58  ;;  %v2919_v58 = vor.u32 %v3643_v47, %v2916_v48  ;;  %v2923_v59 = vor.u32 %v3648_v50, %v2922_v49  ;;  %v2988_v47 = vld [vmem:[%s3919_s9 + $0x21c] sm:$0xf0]  ;;  %v3666_v49 = vld [vmem:[%s3919_s9 + $0x220] sm:$0xf0] }
  0x48   : > { %1876 = vmatpush.bf16.msrb.mxu2 %v3758_v61  ;;  %v2816_v61 = vld [vmem:[%s3919_s9 + $0xbc] sm:$0xf0]  ;;  %v3662_v50 = vld [vmem:[%s3919_s9 + $0x204] sm:$0xf] }
  0x49   : > { %1965 = vmatpush.bf16.msrb.mxu3 %v3766_v62  ;;  %v2822_v62 = vld [vmem:[%s3919_s9 + $0xa0] sm:$0xf]  ;;  %v2819_v2 = vor.u32 %v3617_v60, %v2816_v61 }
  0x4a   : > { %1787 = vmatpush.bf16.msrb.mxu1 %v3750_v6  ;;  %2054 = vmatpush.bf16.msrb.mxu0 %v3774_v7  ;;  %v2823_v3 = vor.u32 %v3622_v63, %v2822_v62  ;;  %v3787_v6 = vld [vmem:[%s4680_s1 + $0x168] sm:$0xff]  ;;  %v2994_v48 = vld [vmem:[%s3919_s9 + $0x200] sm:$0xf] }
  0x4b   : > { %1729 = vmatmul.bf16.gmra.mxu1 %v2951_v8  ;;  %1749 = vmatmul.bf16.gmra.mxu2 %v3095_v9  ;;  %v3811_v7 = vld [vmem:[%s4680_s1 + $0x228] sm:$0xff]  ;;  %v3625_v8 = vld [vmem:[%s3919_s9 + $0xdc] sm:$0xf]  ;;  %v2844_v9 = vld [vmem:[%s3919_s9 + $0xfc] sm:$0xf0] }
  0x4c   : > { %1769 = vmatmul.bf16.gmra.mxu3 %v3239_v10  ;;  %2225 = vmatpush.bf16.msra.mxu2 %v3797_v12  ;;  %v2850_v10 = vld [vmem:[%s3919_s9 + $0xe0] sm:$0xf]  ;;  %v3626_v12 = vld [vmem:[%s3919_s9 + $0xe4] sm:$0xf]  ;;  %v2847_v16 = vor.u32 %v3625_v8, %v2844_v9  ;;  %v3652_v9 = vld [vmem:[%s3919_s9 + $0x1b4] sm:$0xf] }
  0x4d   : > { %1709 = vmatmul.bf16.gmra.mxu0 %v2807_v11  ;;  %2314 = vmatpush.bf16.msra.mxu3 %v3805_v13  ;;  %v3630_v11 = vld [vmem:[%s3919_s9 + $0x100] sm:$0xf0]  ;;  %v2852_v13 = vld [vmem:[%s3919_s9 + $0x104] sm:$0xf0] }
  0x4e   : > { %2136 = vmatpush.bf16.msra.mxu1 %v3789_v14  ;;  %2403 = vmatpush.bf16.msra.mxu0 %v3813_v15  ;;  %v2858_v14 = vld [vmem:[%s3919_s9 + $0xe8] sm:$0xf]  ;;  %v3631_v15 = vld [vmem:[%s3919_s9 + $0x108] sm:$0xf0]  ;;  %v2851_v17 = vor.u32 %v3630_v11, %v2850_v10  ;;  %v2855_v18 = vor.u32 %v3626_v12, %v2852_v13  ;;  %v2952_v10 = vld [vmem:[%s3919_s9 + $0x1d4] sm:$0xf0] }
  0x4f   : > { %v2859_v19 = vor.u32 %v3631_v15, %v2858_v14  ;;  %v2958_v11 = vld [vmem:[%s3919_s9 + $0x1b8] sm:$0xf]  ;;  %v3657_v12 = vld [vmem:[%s3919_s9 + $0x1d8] sm:$0xf0]  ;;  %v2960_v14 = vld [vmem:[%s3919_s9 + $0x1dc] sm:$0xf0]  ;;  %v2955_v21 = vor.u32 %v3652_v9, %v2952_v10 }
  0x50   : > { %2226 = vmatpush.bf16.msra.mxu2 %v3796_v40  ;;  %v3653_v13 = vld [vmem:[%s3919_s9 + $0x1bc] sm:$0xf]  ;;  %v2966_v15 = vld [vmem:[%s3919_s9 + $0x1c0] sm:$0xf]  ;;  %v2959_v22 = vor.u32 %v3657_v12, %v2958_v11 }
  0x51   : > { %2315 = vmatpush.bf16.msra.mxu3 %v3804_v41 }
  0x52   : > { %2137 = vmatpush.bf16.msra.mxu1 %v3788_v42  ;;  %2404 = vmatpush.bf16.msra.mxu0 %v3812_v43  ;;  %v3786_v43 = vld [vmem:[%s4680_s1 + $0x160] sm:$0xff] }
  0x54   : > { %2227 = vmatpush.bf16.msra.mxu2 %v3795_v4 }
  0x55   : > { %2316 = vmatpush.bf16.msra.mxu3 %v3803_v5 }
  0x56   : > { %2138 = vmatpush.bf16.msra.mxu1 %v3787_v6  ;;  %2405 = vmatpush.bf16.msra.mxu0 %v3811_v7 }
  0x5a   : > { %2139 = vmatpush.bf16.msra.mxu1 %v3786_v43  ;;  %2406 = vmatpush.bf16.msra.mxu0 %v3810_v46  ;;  %v3809_v43 = vld [vmem:[%s4680_s1 + $0x218] sm:$0xff] }
  0x5b   : > { %1734 = vmatmul.bf16.gmra.mxu1 %v2987_v24  ;;  %1754 = vmatmul.bf16.gmra.mxu2 %v3131_v25  ;;  %v3639_v24 = vld [vmem:[%s3919_s9 + $0x148] sm:$0xf0]  ;;  %v3661_v46 = vld [vmem:[%s3919_s9 + $0x1fc] sm:$0xf] }
  0x5c   : > { %1774 = vmatmul.bf16.gmra.mxu3 %v3275_v26  ;;  %v3635_v25 = vld [vmem:[%s3919_s9 + $0x12c] sm:$0xf]  ;;  %v2888_v26 = vld [vmem:[%s3919_s9 + $0x14c] sm:$0xf0]  ;;  %v2887_v30 = vor.u32 %v3639_v24, %v2886_v23 }
  0x5d   : > { %1714 = vmatmul.bf16.gmra.mxu0 %v2843_v27  ;;  %v2894_v27 = vld [vmem:[%s3919_s9 + $0x130] sm:$0xf]  ;;  %v2891_v32 = vor.u32 %v3635_v25, %v2888_v26  ;;  %v2963_v25 = vor.u32 %v3653_v13, %v2960_v14 }
  0x5e   : > { %v2895_v33 = vor.u32 %v3640_v28, %v2894_v27  ;;  %2407 = vmatpush.bf16.msra.mxu0 %v3809_v43 }
  0x6b   : > { %1788 = vmatmul.bf16.vlgmr.msrb.gmra.mxu1 %v2739_v36  ;;  %1877 = vmatmul.bf16.vlgmr.msrb.gmra.mxu2 %v2743_v37  ;;  %v3794_v36 = vld [vmem:[%s4680_s1 + $0x1a0] sm:$0xff] }
  0x6c   : > { %1966 = vmatmul.bf16.vlgmr.msrb.gmra.mxu3 %v2747_v38  ;;  %v3802_v37 = vld [vmem:[%s4680_s1 + $0x1e0] sm:$0xff]  ;;  %2228 = vmatpush.bf16.msra.mxu2 %v3794_v36 }
  0x6d   : > { %2055 = vmatmul.bf16.vlgmr.msrb.gmra.mxu0 %v2751_v39  ;;  %2317 = vmatpush.bf16.msra.mxu3 %v3802_v37 }
  0x7b   : > { %1793 = vmatmul.bf16.gmra.mxu1 %v2775_v52  ;;  %1882 = vmatmul.bf16.gmra.mxu2 %v2779_v53  ;;  %v2924_v52 = vld [vmem:[%s3919_s9 + $0x194] sm:$0xf0] }
  0x7c   : > { %1971 = vmatmul.bf16.gmra.mxu3 %v2783_v54  ;;  %v2930_v53 = vld [vmem:[%s3919_s9 + $0x178] sm:$0xf]  ;;  %v3649_v54 = vld [vmem:[%s3919_s9 + $0x198] sm:$0xf0]  ;;  %v2927_v62 = vor.u32 %v3644_v51, %v2924_v52  ;;  %v2996_v51 = vld [vmem:[%s3919_s9 + $0x224] sm:$0xf0] }
  0x7d   : > { %2060 = vmatmul.bf16.gmra.mxu0 %v2787_v55  ;;  %v2931_v63 = vor.u32 %v3649_v54, %v2930_v53  ;;  %v3002_v52 = vld [vmem:[%s3919_s9 + $0x208] sm:$0xf]  ;;  %v3667_v53 = vld [vmem:[%s3919_s9 + $0x228] sm:$0xf0] }
  0x8b   : > { %1798 = vmatmul.bf16.gmra.mxu1 %v2811_v0  ;;  %1887 = vmatmul.bf16.gmra.mxu2 %v2815_v1 }
  0x8c   : > { %1976 = vmatmul.bf16.gmra.mxu3 %v2819_v2 }
  0x8d   : > { %2065 = vmatmul.bf16.gmra.mxu0 %v2823_v3 }
  0x9b   : > { %1803 = vmatmul.bf16.gmra.mxu1 %v2847_v16  ;;  %1892 = vmatmul.bf16.gmra.mxu2 %v2851_v17  ;;  %v3658_v16 = vld [vmem:[%s3919_s9 + $0x1e0] sm:$0xf0] }
  0x9c   : > { %1981 = vmatmul.bf16.gmra.mxu3 %v2855_v18  ;;  %v2967_v26 = vor.u32 %v3658_v16, %v2966_v15  ;;  %v3670_v16 = vld [vmem:[%s3919_s9 + $0x244] sm:$0xf] }
  0x9d   : > { %2070 = vmatmul.bf16.gmra.mxu0 %v2859_v19 }
  0xa8   : > { %v1720_v31 = vpop.f32.mrf.mxu1 }
  0xa9   : > { %v4134_v34 = vadd.f32 %v4123_v20, %v1720_v31 }
  0xaa   : > { %v4136_v35 = vpop.f32.mrf.mxu0 }
  0xab   : > { %1808 = vmatmul.bf16.gmra.mxu1 %v2883_v29  ;;  %1897 = vmatmul.bf16.gmra.mxu2 %v2887_v30  ;;  %v3793_v29 = vld [vmem:[%s4680_s1 + $0x198] sm:$0xff] }
  0xac   : > { %1986 = vmatmul.bf16.gmra.mxu3 %v2891_v32  ;;  %v3801_v30 = vld [vmem:[%s4680_s1 + $0x1d8] sm:$0xff]  ;;  %2229 = vmatpush.bf16.msra.mxu2 %v3793_v29 }
  0xad   : > { %2075 = vmatmul.bf16.gmra.mxu0 %v2895_v33  ;;  %2318 = vmatpush.bf16.msra.mxu3 %v3801_v30  ;;  %v1701_v30 = vadd.f32 %v4123_v20, %v4136_v35  ;;  %v3792_v35 = vld [vmem:[%s4680_s1 + $0x190] sm:$0xff] }
  0xae   : > { %v1740_v38 = vpop.f32.mrf.mxu2 }
  0xaf   : > { %v4145_v39 = vadd.f32 %v4123_v20, %v1740_v38  ;;  %v1760_v40 = vpop.f32.mrf.mxu3 }
  0xb0   : > { %v4148_v41 = vadd.f32 %v4123_v20, %v1760_v40  ;;  %v1722_v42 = vpop.f32.mrf.mxu1  ;;  %2230 = vmatpush.bf16.msra.mxu2 %v3792_v35 }
  0xb1   : > { %v4154_v44 = vadd.f32 %v4123_v20, %v1722_v42  ;;  %v3785_v42 = vld [vmem:[%s4680_s1 + $0x158] sm:$0xff] }
  0xb2   : > { %v4156_v45 = vpop.f32.mrf.mxu0  ;;  %2140 = vmatpush.bf16.msra.mxu1 %v3785_v42 }
  0xb6   : > { %v1742_v55 = vpop.f32.mrf.mxu2 }
  0xb7   : > { %v4170_v56 = vadd.f32 %v4123_v20, %v1742_v55  ;;  %v1762_v57 = vpop.f32.mrf.mxu3 }
  0xb8   : > { %v4173_v60 = vadd.f32 %v4123_v20, %v1762_v57  ;;  %v1725_v61 = vpop.f32.mrf.mxu1 }
  0xb9   : > { %v4176_v0 = vadd.f32 %v4123_v20, %v1725_v61 }
  0xba   : > { %v4178_v1 = vpop.f32.mrf.mxu0 }
  0xbb   : > { %1813 = vmatmul.bf16.gmra.mxu1 %v2919_v58  ;;  %1902 = vmatmul.bf16.gmra.mxu2 %v2923_v59  ;;  %v2991_v58 = vor.u32 %v3661_v46, %v2988_v47  ;;  %v2995_v59 = vor.u32 %v3666_v49, %v2994_v48 }
  0xbc   : > { %1991 = vmatmul.bf16.gmra.mxu3 %v2927_v62 }
  0xbd   : > { %2080 = vmatmul.bf16.gmra.mxu0 %v2931_v63  ;;  %v2999_v63 = vor.u32 %v3662_v50, %v2996_v51  ;;  %v3800_v51 = vld [vmem:[%s4680_s1 + $0x1d0] sm:$0xff] }
  0xbe   : > { %v1745_v2 = vpop.f32.mrf.mxu2  ;;  %2319 = vmatpush.bf16.msra.mxu3 %v3800_v51 }
  0xbf   : > { %v4181_v3 = vadd.f32 %v4123_v20, %v1745_v2  ;;  %v1765_v4 = vpop.f32.mrf.mxu3  ;;  %v3003_v2 = vor.u32 %v3667_v53, %v3002_v52  ;;  %v1703_v53 = vadd.f32 %v4123_v20, %v4156_v45  ;;  %v3060_v45 = vld [vmem:[%s3919_s9 + $0x2ac] sm:$0xf0] }
  0xc0   : > { %v4184_v5 = vadd.f32 %v4123_v20, %v1765_v4  ;;  %v1727_v6 = vpop.f32.mrf.mxu1 }
  0xc1   : > { %v4187_v7 = vadd.f32 %v4123_v20, %v1727_v6 }
  0xc2   : > { %v4189_v8 = vpop.f32.mrf.mxu0 }
  0xc3   : > { %v1708_v51 = vadd.f32 %v4123_v20, %v4189_v8 }
  0xc6   : > { %v1747_v17 = vpop.f32.mrf.mxu2 }
  0xc7   : > { %v4200_v18 = vadd.f32 %v4123_v20, %v1747_v17  ;;  %v1767_v19 = vpop.f32.mrf.mxu3  ;;  %v3024_v17 = vld [vmem:[%s3919_s9 + $0x264] sm:$0xf0] }
  0xc8   : > { %v4203_v23 = vadd.f32 %v4123_v20, %v1767_v19  ;;  %v1730_v24 = vpop.f32.mrf.mxu1  ;;  %v3030_v19 = vld [vmem:[%s3919_s9 + $0x248] sm:$0xf] }
  0xc9   : > { %v4206_v27 = vadd.f32 %v4123_v20, %v1730_v24  ;;  %v3032_v24 = vld [vmem:[%s3919_s9 + $0x26c] sm:$0xf0] }
  0xca   : > { %v4208_v28 = vpop.f32.mrf.mxu0 }
  0xcb   : > { %1818 = vmatmul.bf16.gmra.mxu1 %v2955_v21  ;;  %1907 = vmatmul.bf16.gmra.mxu2 %v2959_v22  ;;  %v3675_v21 = vld [vmem:[%s3919_s9 + $0x268] sm:$0xf0]  ;;  %v1711_v8 = vadd.f32 %v4123_v20, %v4208_v28 }
  0xcc   : > { %1996 = vmatmul.bf16.gmra.mxu3 %v2963_v25  ;;  %v3671_v22 = vld [vmem:[%s3919_s9 + $0x24c] sm:$0xf]  ;;  %v3038_v25 = vld [vmem:[%s3919_s9 + $0x250] sm:$0xf]  ;;  %v3031_v42 = vor.u32 %v3675_v21, %v3030_v19  ;;  %v3680_v19 = vld [vmem:[%s3919_s9 + $0x294] sm:$0xf] }
  0xcd   : > { %2085 = vmatmul.bf16.gmra.mxu0 %v2967_v26  ;;  %v3676_v26 = vld [vmem:[%s3919_s9 + $0x270] sm:$0xf0]  ;;  %v3035_v47 = vor.u32 %v3671_v22, %v3032_v24  ;;  %v3068_v21 = vld [vmem:[%s3919_s9 + $0x2b4] sm:$0xf0]  ;;  %v3685_v24 = vld [vmem:[%s3919_s9 + $0x2b8] sm:$0xf0] }
  0xce   : > { %v1750_v31 = vpop.f32.mrf.mxu2  ;;  %v3039_v48 = vor.u32 %v3676_v26, %v3038_v25  ;;  %v3074_v22 = vld [vmem:[%s3919_s9 + $0x298] sm:$0xf]  ;;  %v1706_v26 = vadd.f32 %v4123_v20, %v4178_v1  ;;  %v3791_v28 = vld [vmem:[%s4680_s1 + $0x188] sm:$0xff] }
  0xcf   : > { %v4217_v32 = vadd.f32 %v4123_v20, %v1750_v31  ;;  %v1770_v33 = vpop.f32.mrf.mxu3  ;;  %2231 = vmatpush.bf16.msra.mxu2 %v3791_v28 }
  0xd0   : > { %v4220_v36 = vadd.f32 %v4123_v20, %v1770_v33  ;;  %v1732_v37 = vpop.f32.mrf.mxu1 }
  0xd1   : > { %v4223_v38 = vadd.f32 %v4123_v20, %v1732_v37  ;;  %v3027_v37 = vor.u32 %v3670_v16, %v3024_v17  ;;  %v3066_v16 = vld [vmem:[%s3919_s9 + $0x290] sm:$0xf]  ;;  %v3684_v17 = vld [vmem:[%s3919_s9 + $0x2b0] sm:$0xf0] }
  0xd2   : > { %v4225_v40 = vpop.f32.mrf.mxu0 }
  0xd6   : > { %v1752_v54 = vpop.f32.mrf.mxu2 }
  0xd7   : > { %v4242_v55 = vadd.f32 %v4123_v20, %v1752_v54  ;;  %v1772_v57 = vpop.f32.mrf.mxu3 }
  0xd8   : > { %v4245_v61 = vadd.f32 %v4123_v20, %v1772_v57  ;;  %v1735_v62 = vpop.f32.mrf.mxu1 }
  0xd9   : > { %v4248_v4 = vadd.f32 %v4123_v20, %v1735_v62 }
  0xda   : > { %v4250_v6 = vpop.f32.mrf.mxu0 }
  0xdb   : > { %1823 = vmatmul.bf16.gmra.mxu1 %v2991_v58  ;;  %1912 = vmatmul.bf16.gmra.mxu2 %v2995_v59 }
  0xdc   : > { %2001 = vmatmul.bf16.gmra.mxu3 %v2999_v63 }
  0xdd   : > { %2090 = vmatmul.bf16.gmra.mxu0 %v3003_v2  ;;  %v3784_v2 = vld [vmem:[%s4680_s1 + $0x150] sm:$0xff] }
  0xde   : > { %v1755_v9 = vpop.f32.mrf.mxu2  ;;  %2141 = vmatpush.bf16.msra.mxu1 %v3784_v2  ;;  %v3096_v2 = vld [vmem:[%s3919_s9 + $0x2f4] sm:$0xf0] }
  0xdf   : > { %v4253_v10 = vadd.f32 %v4123_v20, %v1755_v9  ;;  %v1775_v11 = vpop.f32.mrf.mxu3  ;;  %v3808_v9 = vld [vmem:[%s4680_s1 + $0x210] sm:$0xff] }
  0xe0   : > { %v4256_v12 = vadd.f32 %v4123_v20, %v1775_v11  ;;  %v1737_v13 = vpop.f32.mrf.mxu1  ;;  %v3679_v11 = vld [vmem:[%s3919_s9 + $0x28c] sm:$0xf]  ;;  %2408 = vmatpush.bf16.msra.mxu0 %v3808_v9  ;;  %v3102_v9 = vld [vmem:[%s3919_s9 + $0x2d8] sm:$0xf] }
  0xe1   : > { %v4259_v14 = vadd.f32 %v4123_v20, %v1737_v13 }
  0xe2   : > { %v4261_v15 = vpop.f32.mrf.mxu0 }
  0xe6   : > { %v1757_v29 = vpop.f32.mrf.mxu2 }
  0xe7   : > { %v4274_v31 = vadd.f32 %v4123_v20, %v1757_v29  ;;  %v1777_v33 = vpop.f32.mrf.mxu3 }
  0xe8   : > { %v4277_v43 = vadd.f32 %v4123_v20, %v1777_v33  ;;  %v1789_v46 = vpop.f32.mrf.mxu1  ;;  %v3063_v33 = vor.u32 %v3679_v11, %v3060_v45  ;;  %v3693_v11 = vld [vmem:[%s3919_s9 + $0x2f8] sm:$0xf0] }
  0xe9   : > { %v1790_v49 = vadd.f32 %v1789_v46, %v1701_v30  ;;  %v3071_v46 = vor.u32 %v3680_v19, %v3068_v21  ;;  %v3689_v45 = vld [vmem:[%s3919_s9 + $0x2dc] sm:$0xf]  ;;  %v3694_v19 = vld [vmem:[%s3919_s9 + $0x300] sm:$0xf0] }
  0xea   : > { %v2056_v50 = vpop.f32.mrf.mxu0 }
  0xeb   : > { %1828 = vmatmul.bf16.gmra.mxu1 %v3027_v37  ;;  %1917 = vmatmul.bf16.gmra.mxu2 %v3031_v42  ;;  %v3067_v37 = vor.u32 %v3684_v17, %v3066_v16  ;;  %v3104_v16 = vld [vmem:[%s3919_s9 + $0x2fc] sm:$0xf0] }
  0xec   : > { %2006 = vmatmul.bf16.gmra.mxu3 %v3035_v47  ;;  %v3075_v47 = vor.u32 %v3685_v24, %v3074_v22  ;;  %v3110_v17 = vld [vmem:[%s3919_s9 + $0x2e0] sm:$0xf] }
  0xed   : > { %2095 = vmatmul.bf16.gmra.mxu0 %v3039_v48 }
  0xee   : > { %v1878_v52 = vpop.f32.mrf.mxu2 }
  0xef   : > { %v1879_v54 = vadd.f32 %v1878_v52, %v1790_v49  ;;  %v1967_v57 = vpop.f32.mrf.mxu3 }
  0xf0   : > { %v1791_v58 = vpop.f32.mrf.mxu1 }
  0xf1   : > { %v1968_v59 = vadd.f32 %v1967_v57, %v1879_v54  ;;  %v1792_v62 = vadd.f32 %v1791_v58, %v1703_v53 }
  0xf2   : > { %v2058_v63 = vpop.f32.mrf.mxu0 }
  0xf3   : > { %v4295_v13 = vadd.f32 %v2056_v50, %v1968_v59 }
  0xf6   : > { %v1880_v25 = vpop.f32.mrf.mxu2 }
  0xf7   : > { %v1881_v29 = vadd.f32 %v1880_v25, %v1792_v62  ;;  %v1969_v30 = vpop.f32.mrf.mxu3  ;;  %v3688_v62 = vld [vmem:[%s3919_s9 + $0x2d4] sm:$0xf] }
  0xf8   : > { %v1794_v42 = vpop.f32.mrf.mxu1  ;;  %v3099_v25 = vor.u32 %v3688_v62, %v3096_v2  ;;  %v3697_v62 = vld [vmem:[%s3919_s9 + $0x31c] sm:$0xf] }
  0xf9   : > { %v1970_v48 = vadd.f32 %v1969_v30, %v1881_v29  ;;  %v1795_v49 = vadd.f32 %v1794_v42, %v1706_v26  ;;  %v3103_v26 = vor.u32 %v3693_v11, %v3102_v9  ;;  %v3107_v30 = vor.u32 %v3689_v45, %v3104_v16  ;;  %v3138_v9 = vld [vmem:[%s3919_s9 + $0x320] sm:$0xf]  ;;  %v3702_v11 = vld [vmem:[%s3919_s9 + $0x340] sm:$0xf0]  ;;  %v3140_v16 = vld [vmem:[%s3919_s9 + $0x344] sm:$0xf0] }
  0xfa   : > { %v2061_v50 = vpop.f32.mrf.mxu0  ;;  %v3698_v45 = vld [vmem:[%s3919_s9 + $0x324] sm:$0xf] }
  0xfb   : > { %1833 = vmatmul.bf16.gmra.mxu1 %v3063_v33  ;;  %1922 = vmatmul.bf16.gmra.mxu2 %v3067_v37  ;;  %v4305_v35 = vadd.f32 %v2058_v63, %v1970_v48  ;;  %v3111_v33 = vor.u32 %v3694_v19, %v3110_v17  ;;  %v3799_v48 = vld [vmem:[%s4680_s1 + $0x1c8] sm:$0xff] }
  0xfc   : > { %2011 = vmatmul.bf16.gmra.mxu3 %v3071_v46  ;;  %v3146_v17 = vld [vmem:[%s3919_s9 + $0x328] sm:$0xf]  ;;  %v3703_v19 = vld [vmem:[%s3919_s9 + $0x348] sm:$0xf0] }
  0xfd   : > { %2100 = vmatmul.bf16.gmra.mxu0 %v3075_v47  ;;  %2320 = vmatpush.bf16.msra.mxu3 %v3799_v48  ;;  %v1718_v48 = vadd.f32 %v4123_v20, %v4261_v15 }
  0xfe   : > { %v1883_v1 = vpop.f32.mrf.mxu2 }
  0xff   : > { %v1884_v52 = vadd.f32 %v1883_v1, %v1795_v49  ;;  %v1972_v53 = vpop.f32.mrf.mxu3 }
 0x100   : > { %v1796_v54 = vpop.f32.mrf.mxu1 }
 0x101   : > { %v1973_v57 = vadd.f32 %v1972_v53, %v1884_v52  ;;  %v1797_v58 = vadd.f32 %v1796_v54, %v1708_v51 }
 0x102   : > { %v2063_v59 = vpop.f32.mrf.mxu0 }
 0x103   : > { %v4311_v63 = vadd.f32 %v2061_v50, %v1973_v57  ;;  %v1713_v50 = vadd.f32 %v4123_v20, %v4225_v40  ;;  %v3132_v40 = vld [vmem:[%s3919_s9 + $0x33c] sm:$0xf0] }
 0x106   : > { %v1885_v21 = vpop.f32.mrf.mxu2 }
 0x107   : > { %v1886_v22 = vadd.f32 %v1885_v21, %v1797_v58  ;;  %v1974_v24 = vpop.f32.mrf.mxu3  ;;  %v3783_v58 = vld [vmem:[%s4680_s1 + $0x148] sm:$0xff] }
 0x108   : > { %v1799_v29 = vpop.f32.mrf.mxu1  ;;  %2142 = vmatpush.bf16.msra.mxu1 %v3783_v58  ;;  %v3168_v58 = vld [vmem:[%s3919_s9 + $0x384] sm:$0xf0] }
 0x109   : > { %v1975_v37 = vadd.f32 %v1974_v24, %v1886_v22  ;;  %v1800_v42 = vadd.f32 %v1799_v29, %v1711_v8  ;;  %v1716_v8 = vadd.f32 %v4123_v20, %v4250_v6 }
 0x10a   : > { %v2066_v46 = vpop.f32.mrf.mxu0 }
 0x10b   : > { %1838 = vmatmul.bf16.gmra.mxu1 %v3099_v25  ;;  %1927 = vmatmul.bf16.gmra.mxu2 %v3103_v26  ;;  %v4321_v47 = vadd.f32 %v2063_v59, %v1975_v37  ;;  %v3807_v59 = vld [vmem:[%s4680_s1 + $0x208] sm:$0xff]  ;;  %v3135_v25 = vor.u32 %v3697_v62, %v3132_v40  ;;  %v3139_v26 = vor.u32 %v3702_v11, %v3138_v9  ;;  %v3176_v9 = vld [vmem:[%s3919_s9 + $0x38c] sm:$0xf0] }
 0x10c   : > { %2016 = vmatmul.bf16.gmra.mxu3 %v3107_v30  ;;  %2409 = vmatpush.bf16.msra.mxu0 %v3807_v59  ;;  %v3143_v30 = vor.u32 %v3698_v45, %v3140_v16  ;;  %v3174_v59 = vld [vmem:[%s3919_s9 + $0x368] sm:$0xf]  ;;  %v3711_v62 = vld [vmem:[%s3919_s9 + $0x388] sm:$0xf0]  ;;  %v3182_v11 = vld [vmem:[%s3919_s9 + $0x370] sm:$0xf] }
 0x10d   : > { %2105 = vmatmul.bf16.gmra.mxu0 %v3111_v33  ;;  %v3147_v33 = vor.u32 %v3703_v19, %v3146_v17  ;;  %v3707_v40 = vld [vmem:[%s3919_s9 + $0x36c] sm:$0xf]  ;;  %v3712_v45 = vld [vmem:[%s3919_s9 + $0x390] sm:$0xf0]  ;;  %v3175_v15 = vor.u32 %v3711_v62, %v3174_v59  ;;  %v3212_v62 = vld [vmem:[%s3919_s9 + $0x3d4] sm:$0xf0] }
 0x10e   : > { %v1888_v49 = vpop.f32.mrf.mxu2  ;;  %v3716_v59 = vld [vmem:[%s3919_s9 + $0x3b4] sm:$0xf] }
 0x10f   : > { %v1889_v1 = vadd.f32 %v1888_v49, %v1800_v42  ;;  %v1977_v51 = vpop.f32.mrf.mxu3 }
 0x110   : > { %v1801_v52 = vpop.f32.mrf.mxu1 }
 0x111   : > { %v1978_v53 = vadd.f32 %v1977_v51, %v1889_v1  ;;  %v1802_v54 = vadd.f32 %v1801_v52, %v1713_v50 }
 0x112   : > { %v2068_v57 = vpop.f32.mrf.mxu0 }
 0x113   : > { %v4339_v2 = vadd.f32 %v2066_v46, %v1978_v53 }
 0x116   : > { %v1890_v21 = vpop.f32.mrf.mxu2 }
 0x117   : > { %v1891_v22 = vadd.f32 %v1890_v21, %v1802_v54  ;;  %v1979_v24 = vpop.f32.mrf.mxu3  ;;  %v3706_v54 = vld [vmem:[%s3919_s9 + $0x364] sm:$0xf] }
 0x118   : > { %v1804_v29 = vpop.f32.mrf.mxu1  ;;  %v3171_v20 = vor.u32 %v3706_v54, %v3168_v58  ;;  %v3210_v54 = vld [vmem:[%s3919_s9 + $0x3b0] sm:$0xf]  ;;  %v3720_v58 = vld [vmem:[%s3919_s9 + $0x3d0] sm:$0xf0] }
 0x119   : > { %v1980_v37 = vadd.f32 %v1979_v24, %v1891_v22  ;;  %v1805_v42 = vadd.f32 %v1804_v29, %v1716_v8  ;;  %v3179_v8 = vor.u32 %v3707_v40, %v3176_v9  ;;  %v3183_v22 = vor.u32 %v3712_v45, %v3182_v11  ;;  %v3721_v40 = vld [vmem:[%s3919_s9 + $0x3d8] sm:$0xf0] }
 0x11a   : > { %v2071_v46 = vpop.f32.mrf.mxu0 }
 0x11b   : > { %1843 = vmatmul.bf16.gmra.mxu1 %v3135_v25  ;;  %1932 = vmatmul.bf16.gmra.mxu2 %v3139_v26  ;;  %v4349_v28 = vadd.f32 %v2068_v57, %v1980_v37 }
 0x11c   : > { %2021 = vmatmul.bf16.gmra.mxu3 %v3143_v30  ;;  %v3790_v30 = vld [vmem:[%s4680_s1 + $0x180] sm:$0xff] }
 0x11d   : > { %2110 = vmatmul.bf16.gmra.mxu0 %v3147_v33  ;;  %v3798_v33 = vld [vmem:[%s4680_s1 + $0x1c0] sm:$0xff]  ;;  %2232 = vmatpush.bf16.msra.mxu2 %v3790_v30 }
 0x11e   : > { %v1893_v6 = vpop.f32.mrf.mxu2  ;;  %2321 = vmatpush.bf16.msra.mxu3 %v3798_v33 }
 0x11f   : > { %v1894_v49 = vadd.f32 %v1893_v6, %v1805_v42  ;;  %v1982_v50 = vpop.f32.mrf.mxu3 }
 0x120   : > { %v1806_v1 = vpop.f32.mrf.mxu1 }
 0x121   : > { %v1983_v51 = vadd.f32 %v1982_v50, %v1894_v49  ;;  %v1807_v52 = vadd.f32 %v1806_v1, %v1718_v48  ;;  %v3782_v50 = vld [vmem:[%s4680_s1 + $0x140] sm:$0xff] }
 0x122   : > { %v2073_v53 = vpop.f32.mrf.mxu0  ;;  %v3806_v1 = vld [vmem:[%s4680_s1 + $0x200] sm:$0xff]  ;;  %2143 = vmatpush.bf16.msra.mxu1 %v3782_v50  ;;  %v3725_v50 = vld [vmem:[%s3919_s9 + $0x3fc] sm:$0xf] }
 0x123   : > { %v4355_v57 = vadd.f32 %v2071_v46, %v1983_v51  ;;  %v3715_v51 = vld [vmem:[%s3919_s9 + $0x3ac] sm:$0xf]  ;;  %2410 = vmatpush.bf16.msra.mxu0 %v3806_v1  ;;  %v3248_v1 = vld [vmem:[%s3919_s9 + $0x41c] sm:$0xf0] }
 0x126   : > { %v1895_v16 = vpop.f32.mrf.mxu2 }
 0x127   : > { %v1896_v17 = vadd.f32 %v1895_v16, %v1807_v52  ;;  %v1984_v19 = vpop.f32.mrf.mxu3  ;;  %v3204_v52 = vld [vmem:[%s3919_s9 + $0x3cc] sm:$0xf0] }
 0x128   : > { %v1809_v21 = vpop.f32.mrf.mxu1  ;;  %v3207_v16 = vor.u32 %v3715_v51, %v3204_v52  ;;  %v3254_v51 = vld [vmem:[%s3919_s9 + $0x400] sm:$0xf]  ;;  %v3730_v52 = vld [vmem:[%s3919_s9 + $0x420] sm:$0xf0] }
 0x129   : > { %v1985_v24 = vadd.f32 %v1984_v19, %v1896_v17  ;;  %v1810_v25 = vadd.f32 %v1809_v21, %v4134_v34  ;;  %v3211_v17 = vor.u32 %v3720_v58, %v3210_v54 }
 0x12a   : > { %v2076_v26 = vpop.f32.mrf.mxu0 }
 0x12b   : > { %1848 = vmatmul.bf16.gmra.mxu1 %v3171_v20  ;;  %1937 = vmatmul.bf16.gmra.mxu2 %v3175_v15  ;;  %v4364_v29 = vadd.f32 %v2073_v53, %v1985_v24  ;;  %v3215_v20 = vor.u32 %v3716_v59, %v3212_v62 }
 0x12c   : > { %2026 = vmatmul.bf16.gmra.mxu3 %v3179_v8 }
 0x12d   : > { %2115 = vmatmul.bf16.gmra.mxu0 %v3183_v22 }
 0x12e   : > { %v1898_v37 = vpop.f32.mrf.mxu2 }
 0x12f   : > { %v1899_v34 = vadd.f32 %v1898_v37, %v1810_v25  ;;  %v1987_v42 = vpop.f32.mrf.mxu3 }
 0x130   : > { %v1811_v46 = vpop.f32.mrf.mxu1 }
 0x131   : > { %v1988_v6 = vadd.f32 %v1987_v42, %v1899_v34  ;;  %v1812_v48 = vadd.f32 %v1811_v46, %v4154_v44  ;;  %v3218_v44 = vld [vmem:[%s3919_s9 + $0x3b8] sm:$0xf]  ;;  %v3724_v42 = vld [vmem:[%s3919_s9 + $0x3f4] sm:$0xf] }
 0x132   : > { %v2078_v49 = vpop.f32.mrf.mxu0  ;;  %v3219_v15 = vor.u32 %v3721_v40, %v3218_v44  ;;  %v3240_v46 = vld [vmem:[%s3919_s9 + $0x414] sm:$0xf0] }
 0x133   : > { %v4381_v53 = vadd.f32 %v2076_v26, %v1988_v6  ;;  %v3243_v62 = vor.u32 %v3724_v42, %v3240_v46  ;;  %v3290_v42 = vld [vmem:[%s3919_s9 + $0x448] sm:$0xf]  ;;  %v3739_v46 = vld [vmem:[%s3919_s9 + $0x468] sm:$0xf0] }
 0x136   : > { %v1900_v9 = vpop.f32.mrf.mxu2 }
 0x137   : > { %v1901_v11 = vadd.f32 %v1900_v9, %v1812_v48  ;;  %v1989_v45 = vpop.f32.mrf.mxu3  ;;  %v3246_v48 = vld [vmem:[%s3919_s9 + $0x3f8] sm:$0xf]  ;;  %v3251_v9 = vor.u32 %v3725_v50, %v3248_v1 }
 0x138   : > { %v1814_v19 = vpop.f32.mrf.mxu1 }
 0x139   : > { %v1990_v21 = vadd.f32 %v1989_v45, %v1901_v11  ;;  %v1815_v8 = vadd.f32 %v1814_v19, %v4176_v0  ;;  %v3255_v11 = vor.u32 %v3730_v52, %v3254_v51 }
 0x13a   : > { %v2081_v22 = vpop.f32.mrf.mxu0 }
 0x13b   : > { %1853 = vmatmul.bf16.gmra.mxu1 %v3207_v16  ;;  %1942 = vmatmul.bf16.gmra.mxu2 %v3211_v17  ;;  %v4390_v24 = vadd.f32 %v2078_v49, %v1990_v21  ;;  %v3729_v49 = vld [vmem:[%s3919_s9 + $0x418] sm:$0xf0] }
 0x13c   : > { %2031 = vmatmul.bf16.gmra.mxu3 %v3215_v20  ;;  %v3247_v44 = vor.u32 %v3729_v49, %v3246_v48 }
 0x13d   : > { %2120 = vmatmul.bf16.gmra.mxu0 %v3219_v15 }
 0x13e   : > { %v1903_v25 = vpop.f32.mrf.mxu2 }
 0x13f   : > { %v1904_v26 = vadd.f32 %v1903_v25, %v1815_v8  ;;  %v1992_v30 = vpop.f32.mrf.mxu3  ;;  %v3733_v25 = vld [vmem:[%s3919_s9 + $0x43c] sm:$0xf] }
 0x140   : > { %v1816_v33 = vpop.f32.mrf.mxu1 }
 0x141   : > { %v1993_v37 = vadd.f32 %v1992_v30, %v1904_v26  ;;  %v1817_v0 = vadd.f32 %v1816_v33, %v4187_v7  ;;  %v3276_v26 = vld [vmem:[%s3919_s9 + $0x45c] sm:$0xf0] }
 0x142   : > { %v2083_v34 = vpop.f32.mrf.mxu0  ;;  %v3282_v33 = vld [vmem:[%s3919_s9 + $0x440] sm:$0xf]  ;;  %v3279_v1 = vor.u32 %v3733_v25, %v3276_v26  ;;  %v3606_v26 = vld [vmem:[%s3919_s9 + $0x40] sm:$0xf0] }
 0x143   : > { %v4395_v6 = vadd.f32 %v2081_v22, %v1993_v37  ;;  %v3738_v37 = vld [vmem:[%s3919_s9 + $0x460] sm:$0xf0]  ;;  %v2766_v25 = vld [vmem:[%s3919_s9 + $0x20] sm:$0xf] }
 0x144   : > { %v3283_v51 = vor.u32 %v3738_v37, %v3282_v33 }
 0x146   : > { %v1905_v54 = vpop.f32.mrf.mxu2 }
 0x147   : > { %v1906_v58 = vadd.f32 %v1905_v54, %v1817_v0  ;;  %v1994_v59 = vpop.f32.mrf.mxu3  ;;  %v3734_v0 = vld [vmem:[%s3919_s9 + $0x444] sm:$0xf] }
 0x148   : > { %v1819_v40 = vpop.f32.mrf.mxu1 }
 0x149   : > { %v1995_v7 = vadd.f32 %v1994_v59, %v1906_v58  ;;  %v1820_v45 = vadd.f32 %v1819_v40, %v4206_v27  ;;  %v3291_v58 = vor.u32 %v3739_v46, %v3290_v42 }
 0x14a   : > { %v2086_v16 = vpop.f32.mrf.mxu0 }
 0x14b   : > { %1858 = vmatmul.bf16.gmra.mxu1 %v3243_v62  ;;  %1947 = vmatmul.bf16.gmra.mxu2 %v3247_v44  ;;  %v4404_v17 = vadd.f32 %v2083_v34, %v1995_v7  ;;  %v3284_v34 = vld [vmem:[%s3919_s9 + $0x464] sm:$0xf0] }
 0x14c   : > { %2036 = vmatmul.bf16.gmra.mxu3 %v3251_v9  ;;  %v3287_v54 = vor.u32 %v3734_v0, %v3284_v34 }
 0x14d   : > { %2125 = vmatmul.bf16.gmra.mxu0 %v3255_v11 }
 0x14e   : > { %v1908_v19 = vpop.f32.mrf.mxu2 }
 0x14f   : > { %v1909_v20 = vadd.f32 %v1908_v19, %v1820_v45  ;;  %v1997_v15 = vpop.f32.mrf.mxu3  ;;  %v3600_v19 = vld [vmem:[%s3919_s9 + $0x14] sm:$0xf] }
 0x150   : > { %v1821_v21 = vpop.f32.mrf.mxu1 }
 0x151   : > { %v1998_v8 = vadd.f32 %v1997_v15, %v1909_v20  ;;  %v1822_v27 = vadd.f32 %v1821_v21, %v4223_v38  ;;  %v2752_v20 = vld [vmem:[%s3919_s9 + $0x34] sm:$0xf0] }
 0x152   : > { %v2088_v22 = vpop.f32.mrf.mxu0  ;;  %v2758_v21 = vld [vmem:[%s3919_s9 + $0x18] sm:$0xf]  ;;  %v2755_v34 = vor.u32 %v3600_v19, %v2752_v20  ;;  %v2802_v19 = vld [vmem:[%s3919_s9 + $0x68] sm:$0xf]  ;;  %v3615_v20 = vld [vmem:[%s3919_s9 + $0x88] sm:$0xf0] }
 0x153   : > { %v4409_v30 = vadd.f32 %v2086_v16, %v1998_v8  ;;  %v3605_v8 = vld [vmem:[%s3919_s9 + $0x38] sm:$0xf0] }
 0x154   : > { %v2759_v42 = vor.u32 %v3605_v8, %v2758_v21 }
 0x156   : > { %v1910_v48 = vpop.f32.mrf.mxu2 }
 0x157   : > { %v1911_v49 = vadd.f32 %v1910_v48, %v1822_v27  ;;  %v1999_v50 = vpop.f32.mrf.mxu3  ;;  %v3601_v27 = vld [vmem:[%s3919_s9 + $0x1c] sm:$0xf] }
 0x158   : > { %v1824_v52 = vpop.f32.mrf.mxu1 }
 0x159   : > { %v2000_v38 = vadd.f32 %v1999_v50, %v1911_v49  ;;  %v1825_v59 = vadd.f32 %v1824_v52, %v4248_v4  ;;  %v2767_v49 = vor.u32 %v3606_v26, %v2766_v25 }
 0x15a   : > { %v2091_v62 = vpop.f32.mrf.mxu0 }
 0x15b   : > { %1863 = vmatmul.bf16.gmra.mxu1 %v3279_v1  ;;  %1952 = vmatmul.bf16.gmra.mxu2 %v3283_v51  ;;  %v4418_v44 = vadd.f32 %v2088_v22, %v2000_v38  ;;  %v2760_v22 = vld [vmem:[%s3919_s9 + $0x3c] sm:$0xf0] }
 0x15c   : > { %2041 = vmatmul.bf16.gmra.mxu3 %v3287_v54  ;;  %v2763_v48 = vor.u32 %v3601_v27, %v2760_v22 }
 0x15d   : > { %2130 = vmatmul.bf16.gmra.mxu0 %v3291_v58 }
 0x15e   : > { %v1913_v40 = vpop.f32.mrf.mxu2 }
 0x15f   : > { %v1914_v9 = vadd.f32 %v1913_v40, %v1825_v59  ;;  %v2002_v11 = vpop.f32.mrf.mxu3  ;;  %v3609_v40 = vld [vmem:[%s3919_s9 + $0x5c] sm:$0xf] }
 0x160   : > { %v1826_v7 = vpop.f32.mrf.mxu1 }
 0x161   : > { %v2003_v45 = vadd.f32 %v2002_v11, %v1914_v9  ;;  %v1827_v4 = vadd.f32 %v1826_v7, %v4259_v14  ;;  %v2788_v9 = vld [vmem:[%s3919_s9 + $0x7c] sm:$0xf0] }
 0x162   : > { %v2093_v16 = vpop.f32.mrf.mxu0  ;;  %v2794_v7 = vld [vmem:[%s3919_s9 + $0x60] sm:$0xf]  ;;  %v2791_v22 = vor.u32 %v3609_v40, %v2788_v9  ;;  %v2838_v40 = vld [vmem:[%s3919_s9 + $0xb0] sm:$0xf]  ;;  %v3624_v9 = vld [vmem:[%s3919_s9 + $0xd0] sm:$0xf0] }
 0x163   : > { %v4423_v15 = vadd.f32 %v2091_v62, %v2003_v45  ;;  %v3614_v45 = vld [vmem:[%s3919_s9 + $0x80] sm:$0xf0] }
 0x164   : > { %v2795_v25 = vor.u32 %v3614_v45, %v2794_v7 }
 0x166   : > { %v1915_v33 = vpop.f32.mrf.mxu2 }
 0x167   : > { %v1916_v37 = vadd.f32 %v1915_v33, %v1827_v4  ;;  %v2004_v0 = vpop.f32.mrf.mxu3  ;;  %v3610_v4 = vld [vmem:[%s3919_s9 + $0x64] sm:$0xf] }
 0x168   : > { %v1829_v46 = vpop.f32.mrf.mxu1 }
 0x169   : > { %v2005_v14 = vadd.f32 %v2004_v0, %v1916_v37  ;;  %v1830_v50 = vadd.f32 %v1829_v46, %v4145_v39  ;;  %v2803_v37 = vor.u32 %v3615_v20, %v2802_v19 }
 0x16a   : > { %v2096_v1 = vpop.f32.mrf.mxu0 }
 0x16b   : > { %2144 = vmatmul.bf16.vlgmr.msra.gmra.mxu1 %v2755_v34  ;;  %2233 = vmatmul.bf16.vlgmr.msra.gmra.mxu2 %v2759_v42  ;;  %v4432_v51 = vadd.f32 %v2093_v16, %v2005_v14  ;;  %v2796_v16 = vld [vmem:[%s3919_s9 + $0x84] sm:$0xf0] }
 0x16c   : > { %2322 = vmatmul.bf16.vlgmr.msra.gmra.mxu3 %v2763_v48  ;;  %v2799_v33 = vor.u32 %v3610_v4, %v2796_v16 }
 0x16d   : > { %2411 = vmatmul.bf16.vlgmr.msra.gmra.mxu0 %v2767_v49 }
 0x16e   : > { %v1918_v52 = vpop.f32.mrf.mxu2 }
 0x16f   : > { %v1919_v54 = vadd.f32 %v1918_v52, %v1830_v50  ;;  %v2007_v58 = vpop.f32.mrf.mxu3  ;;  %v3618_v52 = vld [vmem:[%s3919_s9 + $0xa4] sm:$0xf] }
 0x170   : > { %v1831_v38 = vpop.f32.mrf.mxu1 }
 0x171   : > { %v2008_v59 = vadd.f32 %v2007_v58, %v1919_v54  ;;  %v1832_v39 = vadd.f32 %v1831_v38, %v4170_v56  ;;  %v2824_v54 = vld [vmem:[%s3919_s9 + $0xc4] sm:$0xf0] }
 0x172   : > { %v2098_v62 = vpop.f32.mrf.mxu0  ;;  %v2830_v38 = vld [vmem:[%s3919_s9 + $0xa8] sm:$0xf]  ;;  %v2827_v16 = vor.u32 %v3618_v52, %v2824_v54  ;;  %v2874_v52 = vld [vmem:[%s3919_s9 + $0xf8] sm:$0xf]  ;;  %v3633_v54 = vld [vmem:[%s3919_s9 + $0x118] sm:$0xf0] }
 0x173   : > { %v4437_v11 = vadd.f32 %v2096_v1, %v2008_v59  ;;  %v3623_v59 = vld [vmem:[%s3919_s9 + $0xc8] sm:$0xf0] }
 0x174   : > { %v2831_v19 = vor.u32 %v3623_v59, %v2830_v38 }
 0x176   : > { %v1920_v21 = vpop.f32.mrf.mxu2 }
 0x177   : > { %v1921_v8 = vadd.f32 %v1920_v21, %v1832_v39  ;;  %v2009_v27 = vpop.f32.mrf.mxu3  ;;  %v3619_v39 = vld [vmem:[%s3919_s9 + $0xac] sm:$0xf] }
 0x178   : > { %v1834_v26 = vpop.f32.mrf.mxu1 }
 0x179   : > { %v2010_v56 = vadd.f32 %v2009_v27, %v1921_v8  ;;  %v1835_v0 = vadd.f32 %v1834_v26, %v4181_v3  ;;  %v2839_v8 = vor.u32 %v3624_v9, %v2838_v40 }
 0x17a   : > { %v2101_v34 = vpop.f32.mrf.mxu0 }
 0x17b   : > { %2149 = vmatmul.bf16.gmra.mxu1 %v2791_v22  ;;  %2238 = vmatmul.bf16.gmra.mxu2 %v2795_v25  ;;  %v4446_v42 = vadd.f32 %v2098_v62, %v2010_v56  ;;  %v2832_v62 = vld [vmem:[%s3919_s9 + $0xcc] sm:$0xf0] }
 0x17c   : > { %2327 = vmatmul.bf16.gmra.mxu3 %v2799_v33  ;;  %v2835_v21 = vor.u32 %v3619_v39, %v2832_v62 }
 0x17d   : > { %2416 = vmatmul.bf16.gmra.mxu0 %v2803_v37 }
 0x17e   : > { %v1923_v46 = vpop.f32.mrf.mxu2 }
 0x17f   : > { %v1924_v48 = vadd.f32 %v1923_v46, %v1835_v0  ;;  %v2012_v49 = vpop.f32.mrf.mxu3  ;;  %v3627_v46 = vld [vmem:[%s3919_s9 + $0xec] sm:$0xf] }
 0x180   : > { %v1836_v14 = vpop.f32.mrf.mxu1 }
 0x181   : > { %v2013_v50 = vadd.f32 %v2012_v49, %v1924_v48  ;;  %v1837_v3 = vadd.f32 %v1836_v14, %v4200_v18  ;;  %v2860_v48 = vld [vmem:[%s3919_s9 + $0x10c] sm:$0xf0] }
 0x182   : > { %v2103_v1 = vpop.f32.mrf.mxu0  ;;  %v2866_v14 = vld [vmem:[%s3919_s9 + $0xf0] sm:$0xf]  ;;  %v2863_v62 = vor.u32 %v3627_v46, %v2860_v48  ;;  %v2910_v46 = vld [vmem:[%s3919_s9 + $0x140] sm:$0xf]  ;;  %v3642_v48 = vld [vmem:[%s3919_s9 + $0x160] sm:$0xf0] }
 0x183   : > { %v4451_v58 = vadd.f32 %v2101_v34, %v2013_v50  ;;  %v3632_v50 = vld [vmem:[%s3919_s9 + $0x110] sm:$0xf0] }
 0x184   : > { %v2867_v40 = vor.u32 %v3632_v50, %v2866_v14 }
 0x186   : > { %v1925_v7 = vpop.f32.mrf.mxu2 }
 0x187   : > { %v1926_v45 = vadd.f32 %v1925_v7, %v1837_v3  ;;  %v2014_v4 = vpop.f32.mrf.mxu3  ;;  %v3628_v3 = vld [vmem:[%s3919_s9 + $0xf4] sm:$0xf] }
 0x188   : > { %v1839_v20 = vpop.f32.mrf.mxu1 }
 0x189   : > { %v2015_v18 = vadd.f32 %v2014_v4, %v1926_v45  ;;  %v1840_v27 = vadd.f32 %v1839_v20, %v4217_v32  ;;  %v2875_v45 = vor.u32 %v3633_v54, %v2874_v52 }
 0x18a   : > { %v2106_v22 = vpop.f32.mrf.mxu0 }
 0x18b   : > { %2154 = vmatmul.bf16.gmra.mxu1 %v2827_v16  ;;  %2243 = vmatmul.bf16.gmra.mxu2 %v2831_v19  ;;  %v4460_v25 = vadd.f32 %v2103_v1, %v2015_v18  ;;  %v2868_v1 = vld [vmem:[%s3919_s9 + $0x114] sm:$0xf0] }
 0x18c   : > { %2332 = vmatmul.bf16.gmra.mxu3 %v2835_v21  ;;  %v2871_v7 = vor.u32 %v3628_v3, %v2868_v1 }
 0x18d   : > { %2421 = vmatmul.bf16.gmra.mxu0 %v2839_v8 }
 0x18e   : > { %v1928_v26 = vpop.f32.mrf.mxu2 }
 0x18f   : > { %v1929_v33 = vadd.f32 %v1928_v26, %v1840_v27  ;;  %v2017_v37 = vpop.f32.mrf.mxu3  ;;  %v3636_v26 = vld [vmem:[%s3919_s9 + $0x134] sm:$0xf] }
 0x190   : > { %v1841_v56 = vpop.f32.mrf.mxu1 }
 0x191   : > { %v2018_v0 = vadd.f32 %v2017_v37, %v1929_v33  ;;  %v1842_v32 = vadd.f32 %v1841_v56, %v4242_v55  ;;  %v2896_v33 = vld [vmem:[%s3919_s9 + $0x154] sm:$0xf0] }
 0x192   : > { %v2108_v34 = vpop.f32.mrf.mxu0  ;;  %v2902_v56 = vld [vmem:[%s3919_s9 + $0x138] sm:$0xf]  ;;  %v2899_v1 = vor.u32 %v3636_v26, %v2896_v33  ;;  %v2946_v26 = vld [vmem:[%s3919_s9 + $0x188] sm:$0xf]  ;;  %v3651_v33 = vld [vmem:[%s3919_s9 + $0x1a8] sm:$0xf0] }
 0x193   : > { %v4465_v49 = vadd.f32 %v2106_v22, %v2018_v0  ;;  %v3641_v0 = vld [vmem:[%s3919_s9 + $0x158] sm:$0xf0] }
 0x194   : > { %v2903_v52 = vor.u32 %v3641_v0, %v2902_v56 }
 0x196   : > { %v1930_v38 = vpop.f32.mrf.mxu2 }
 0x197   : > { %v1931_v59 = vadd.f32 %v1930_v38, %v1842_v32  ;;  %v2019_v39 = vpop.f32.mrf.mxu3  ;;  %v3637_v32 = vld [vmem:[%s3919_s9 + $0x13c] sm:$0xf] }
 0x198   : > { %v1844_v9 = vpop.f32.mrf.mxu1 }
 0x199   : > { %v2020_v55 = vadd.f32 %v2019_v39, %v1931_v59  ;;  %v1845_v4 = vadd.f32 %v1844_v9, %v4253_v10  ;;  %v2911_v59 = vor.u32 %v3642_v48, %v2910_v46 }
 0x19a   : > { %v2111_v16 = vpop.f32.mrf.mxu0 }
 0x19b   : > { %2159 = vmatmul.bf16.gmra.mxu1 %v2863_v62  ;;  %2248 = vmatmul.bf16.gmra.mxu2 %v2867_v40  ;;  %v4474_v19 = vadd.f32 %v2108_v34, %v2020_v55  ;;  %v2904_v34 = vld [vmem:[%s3919_s9 + $0x15c] sm:$0xf0] }
 0x19c   : > { %2337 = vmatmul.bf16.gmra.mxu3 %v2871_v7  ;;  %v2907_v38 = vor.u32 %v3637_v32, %v2904_v34 }
 0x19d   : > { %2426 = vmatmul.bf16.gmra.mxu0 %v2875_v45 }
 0x19e   : > { %v1933_v20 = vpop.f32.mrf.mxu2 }
 0x19f   : > { %v1934_v21 = vadd.f32 %v1933_v20, %v1845_v4  ;;  %v2022_v8 = vpop.f32.mrf.mxu3  ;;  %v3645_v20 = vld [vmem:[%s3919_s9 + $0x17c] sm:$0xf] }
 0x1a0   : > { %v1846_v18 = vpop.f32.mrf.mxu1 }
 0x1a1   : > { %v2023_v27 = vadd.f32 %v2022_v8, %v1934_v21  ;;  %v1847_v10 = vadd.f32 %v1846_v18, %v4274_v31  ;;  %v2932_v21 = vld [vmem:[%s3919_s9 + $0x19c] sm:$0xf0] }
 0x1a2   : > { %v2113_v22 = vpop.f32.mrf.mxu0  ;;  %v2938_v18 = vld [vmem:[%s3919_s9 + $0x180] sm:$0xf]  ;;  %v2935_v34 = vor.u32 %v3645_v20, %v2932_v21  ;;  %v2982_v20 = vld [vmem:[%s3919_s9 + $0x1d0] sm:$0xf]  ;;  %v3660_v21 = vld [vmem:[%s3919_s9 + $0x1f0] sm:$0xf0] }
 0x1a3   : > { %v4479_v37 = vadd.f32 %v2111_v16, %v2023_v27  ;;  %v3650_v27 = vld [vmem:[%s3919_s9 + $0x1a0] sm:$0xf0] }
 0x1a4   : > { %v2939_v46 = vor.u32 %v3650_v27, %v2938_v18 }
 0x1a6   : > { %v1935_v14 = vpop.f32.mrf.mxu2 }
 0x1a7   : > { %v1936_v50 = vadd.f32 %v1935_v14, %v1847_v10  ;;  %v2024_v3 = vpop.f32.mrf.mxu3  ;;  %v3646_v10 = vld [vmem:[%s3919_s9 + $0x184] sm:$0xf] }
 0x1a8   : > { %v1849_v54 = vpop.f32.mrf.mxu1 }
 0x1a9   : > { %v2025_v31 = vadd.f32 %v2024_v3, %v1936_v50  ;;  %v1850_v39 = vadd.f32 %v1849_v54, %v4148_v41  ;;  %v2947_v50 = vor.u32 %v3651_v33, %v2946_v26 }
 0x1aa   : > { %v2116_v62 = vpop.f32.mrf.mxu0 }
 0x1ab   : > { %2164 = vmatmul.bf16.gmra.mxu1 %v2899_v1  ;;  %2253 = vmatmul.bf16.gmra.mxu2 %v2903_v52  ;;  %v4488_v40 = vadd.f32 %v2113_v22, %v2025_v31  ;;  %v2940_v22 = vld [vmem:[%s3919_s9 + $0x1a4] sm:$0xf0] }
 0x1ac   : > { %2342 = vmatmul.bf16.gmra.mxu3 %v2907_v38  ;;  %v2943_v14 = vor.u32 %v3646_v10, %v2940_v22 }
 0x1ad   : > { %2431 = vmatmul.bf16.gmra.mxu0 %v2911_v59 }
 0x1ae   : > { %v1938_v9 = vpop.f32.mrf.mxu2 }
 0x1af   : > { %v1939_v7 = vadd.f32 %v1938_v9, %v1850_v39  ;;  %v2027_v45 = vpop.f32.mrf.mxu3  ;;  %v3654_v9 = vld [vmem:[%s3919_s9 + $0x1c4] sm:$0xf] }
 0x1b0   : > { %v1851_v55 = vpop.f32.mrf.mxu1 }
 0x1b1   : > { %v2028_v4 = vadd.f32 %v2027_v45, %v1939_v7  ;;  %v1852_v41 = vadd.f32 %v1851_v55, %v4173_v60  ;;  %v2968_v7 = vld [vmem:[%s3919_s9 + $0x1e4] sm:$0xf0] }
 0x1b2   : > { %v2118_v16 = vpop.f32.mrf.mxu0  ;;  %v2974_v55 = vld [vmem:[%s3919_s9 + $0x1c8] sm:$0xf]  ;;  %v2971_v22 = vor.u32 %v3654_v9, %v2968_v7  ;;  %v3018_v9 = vld [vmem:[%s3919_s9 + $0x218] sm:$0xf]  ;;  %v3669_v7 = vld [vmem:[%s3919_s9 + $0x238] sm:$0xf0] }
 0x1b3   : > { %v4493_v8 = vadd.f32 %v2116_v62, %v2028_v4  ;;  %v3659_v4 = vld [vmem:[%s3919_s9 + $0x1e8] sm:$0xf0] }
 0x1b4   : > { %v2975_v26 = vor.u32 %v3659_v4, %v2974_v55 }
 0x1b6   : > { %v1940_v56 = vpop.f32.mrf.mxu2 }
 0x1b7   : > { %v1941_v0 = vadd.f32 %v1940_v56, %v1852_v41  ;;  %v2029_v32 = vpop.f32.mrf.mxu3  ;;  %v3655_v41 = vld [vmem:[%s3919_s9 + $0x1cc] sm:$0xf] }
 0x1b8   : > { %v1854_v48 = vpop.f32.mrf.mxu1 }
 0x1b9   : > { %v2030_v60 = vadd.f32 %v2029_v32, %v1941_v0  ;;  %v1855_v3 = vadd.f32 %v1854_v48, %v4184_v5  ;;  %v2983_v0 = vor.u32 %v3660_v21, %v2982_v20 }
 0x1ba   : > { %v2121_v1 = vpop.f32.mrf.mxu0 }
 0x1bb   : > { %2169 = vmatmul.bf16.gmra.mxu1 %v2935_v34  ;;  %2258 = vmatmul.bf16.gmra.mxu2 %v2939_v46  ;;  %v4502_v52 = vadd.f32 %v2118_v16, %v2030_v60  ;;  %v2976_v16 = vld [vmem:[%s3919_s9 + $0x1ec] sm:$0xf0] }
 0x1bc   : > { %2347 = vmatmul.bf16.gmra.mxu3 %v2943_v14  ;;  %v2979_v56 = vor.u32 %v3655_v41, %v2976_v16 }
 0x1bd   : > { %2436 = vmatmul.bf16.gmra.mxu0 %v2947_v50 }
 0x1be   : > { %v1943_v54 = vpop.f32.mrf.mxu2 }
 0x1bf   : > { %v1944_v38 = vadd.f32 %v1943_v54, %v1855_v3  ;;  %v2032_v59 = vpop.f32.mrf.mxu3  ;;  %v3663_v54 = vld [vmem:[%s3919_s9 + $0x20c] sm:$0xf] }
 0x1c0   : > { %v1856_v31 = vpop.f32.mrf.mxu1 }
 0x1c1   : > { %v2033_v39 = vadd.f32 %v2032_v59, %v1944_v38  ;;  %v1857_v5 = vadd.f32 %v1856_v31, %v4203_v23  ;;  %v3004_v38 = vld [vmem:[%s3919_s9 + $0x22c] sm:$0xf0] }
 0x1c2   : > { %v2123_v62 = vpop.f32.mrf.mxu0  ;;  %v3010_v31 = vld [vmem:[%s3919_s9 + $0x210] sm:$0xf]  ;;  %v3007_v16 = vor.u32 %v3663_v54, %v3004_v38  ;;  %v3054_v54 = vld [vmem:[%s3919_s9 + $0x260] sm:$0xf]  ;;  %v3678_v38 = vld [vmem:[%s3919_s9 + $0x280] sm:$0xf0] }
 0x1c3   : > { %v4507_v45 = vadd.f32 %v2121_v1, %v2033_v39  ;;  %v3668_v39 = vld [vmem:[%s3919_s9 + $0x230] sm:$0xf0] }
 0x1c4   : > { %v3011_v20 = vor.u32 %v3668_v39, %v3010_v31 }
 0x1c6   : > { %v1945_v18 = vpop.f32.mrf.mxu2 }
 0x1c7   : > { %v1946_v27 = vadd.f32 %v1945_v18, %v1857_v5  ;;  %v2034_v10 = vpop.f32.mrf.mxu3  ;;  %v3664_v5 = vld [vmem:[%s3919_s9 + $0x214] sm:$0xf] }
 0x1c8   : > { %v1859_v33 = vpop.f32.mrf.mxu1 }
 0x1c9   : > { %v2035_v23 = vadd.f32 %v2034_v10, %v1946_v27  ;;  %v1860_v32 = vadd.f32 %v1859_v33, %v4220_v36  ;;  %v3019_v27 = vor.u32 %v3669_v7, %v3018_v9 }
 0x1ca   : > { %v2126_v34 = vpop.f32.mrf.mxu0 }
 0x1cb   : > { %2174 = vmatmul.bf16.gmra.mxu1 %v2971_v22  ;;  %2263 = vmatmul.bf16.gmra.mxu2 %v2975_v26  ;;  %v4516_v46 = vadd.f32 %v2123_v62, %v2035_v23  ;;  %v3012_v62 = vld [vmem:[%s3919_s9 + $0x234] sm:$0xf0] }
 0x1cc   : > { %2352 = vmatmul.bf16.gmra.mxu3 %v2979_v56  ;;  %v3015_v18 = vor.u32 %v3664_v5, %v3012_v62 }
 0x1cd   : > { %2441 = vmatmul.bf16.gmra.mxu0 %v2983_v0 }
 0x1ce   : > { %v1948_v48 = vpop.f32.mrf.mxu2 }
 0x1cf   : > { %v1949_v14 = vadd.f32 %v1948_v48, %v1860_v32  ;;  %v2037_v50 = vpop.f32.mrf.mxu3  ;;  %v3672_v48 = vld [vmem:[%s3919_s9 + $0x254] sm:$0xf] }
 0x1d0   : > { %v1861_v60 = vpop.f32.mrf.mxu1 }
 0x1d1   : > { %v2038_v3 = vadd.f32 %v2037_v50, %v1949_v14  ;;  %v1862_v36 = vadd.f32 %v1861_v60, %v4245_v61  ;;  %v3040_v14 = vld [vmem:[%s3919_s9 + $0x274] sm:$0xf0] }
 0x1d2   : > { %v2128_v1 = vpop.f32.mrf.mxu0  ;;  %v3046_v60 = vld [vmem:[%s3919_s9 + $0x258] sm:$0xf]  ;;  %v3043_v62 = vor.u32 %v3672_v48, %v3040_v14  ;;  %v3090_v48 = vld [vmem:[%s3919_s9 + $0x2a8] sm:$0xf]  ;;  %v3687_v14 = vld [vmem:[%s3919_s9 + $0x2c8] sm:$0xf0] }
 0x1d3   : > { %v4521_v59 = vadd.f32 %v2126_v34, %v2038_v3  ;;  %v3677_v3 = vld [vmem:[%s3919_s9 + $0x278] sm:$0xf0] }
 0x1d4   : > { %v3047_v9 = vor.u32 %v3677_v3, %v3046_v60 }
 0x1d6   : > { %v1950_v55 = vpop.f32.mrf.mxu2 }
 0x1d7   : > { %v1951_v4 = vadd.f32 %v1950_v55, %v1862_v36  ;;  %v2039_v41 = vpop.f32.mrf.mxu3  ;;  %v3673_v36 = vld [vmem:[%s3919_s9 + $0x25c] sm:$0xf] }
 0x1d8   : > { %v1864_v21 = vpop.f32.mrf.mxu1 }
 0x1d9   : > { %v2040_v61 = vadd.f32 %v2039_v41, %v1951_v4  ;;  %v1865_v10 = vadd.f32 %v1864_v21, %v4256_v12 }
 0x1da   : > { %v2131_v22 = vpop.f32.mrf.mxu0 }
 0x1db   : > { %2179 = vmatmul.bf16.gmra.mxu1 %v3007_v16  ;;  %2268 = vmatmul.bf16.gmra.mxu2 %v3011_v20  ;;  %v4530_v26 = vadd.f32 %v2128_v1, %v2040_v61  ;;  %v3048_v1 = vld [vmem:[%s3919_s9 + $0x27c] sm:$0xf0] }
 0x1dc   : > { %2357 = vmatmul.bf16.gmra.mxu3 %v3015_v18  ;;  %v3051_v55 = vor.u32 %v3673_v36, %v3048_v1 }
 0x1dd   : > { %2446 = vmatmul.bf16.gmra.mxu0 %v3019_v27 }
 0x1de   : > { %v1953_v33 = vpop.f32.mrf.mxu2 }
 0x1df   : > { %v1954_v56 = vadd.f32 %v1953_v33, %v1865_v10  ;;  %v2042_v0 = vpop.f32.mrf.mxu3 }
 0x1e0   : > { %v1866_v23 = vpop.f32.mrf.mxu1 }
 0x1e1   : > { %v2043_v32 = vadd.f32 %v2042_v0, %v1954_v56  ;;  %v1867_v12 = vadd.f32 %v1866_v23, %v4277_v43  ;;  %v3055_v43 = vor.u32 %v3678_v38, %v3054_v54  ;;  %v3681_v56 = vld [vmem:[%s3919_s9 + $0x29c] sm:$0xf]  ;;  %v3076_v0 = vld [vmem:[%s3919_s9 + $0x2bc] sm:$0xf0]  ;;  %v3686_v23 = vld [vmem:[%s3919_s9 + $0x2c0] sm:$0xf0] }
 0x1e2   : > { %v2133_v34 = vpop.f32.mrf.mxu0  ;;  %v3079_v1 = vor.u32 %v3681_v56, %v3076_v0  ;;  %v3112_v56 = vld [vmem:[%s3919_s9 + $0x304] sm:$0xf0] }
 0x1e3   : > { %v4535_v50 = vadd.f32 %v2131_v22, %v2043_v32  ;;  %v3682_v32 = vld [vmem:[%s3919_s9 + $0x2a4] sm:$0xf]  ;;  %v3118_v0 = vld [vmem:[%s3919_s9 + $0x2e8] sm:$0xf] }
 0x1e6   : > { %v1955_v31 = vpop.f32.mrf.mxu2 }
 0x1e7   : > { %v1956_v39 = vadd.f32 %v1955_v31, %v1867_v12  ;;  %v2044_v5 = vpop.f32.mrf.mxu3 }
 0x1e8   : > { %v2145_v7 = vpop.f32.mrf.mxu1 }
 0x1e9   : > { %v2045_v4 = vadd.f32 %v2044_v5, %v1956_v39  ;;  %v2146_v20 = vadd.f32 %v2145_v7, %v4295_v13  ;;  %v3082_v13 = vld [vmem:[%s3919_s9 + $0x2a0] sm:$0xf]  ;;  %v3091_v39 = vor.u32 %v3687_v14, %v3090_v48  ;;  %v3696_v48 = vld [vmem:[%s3919_s9 + $0x310] sm:$0xf0] }
 0x1ea   : > { %v2412_v41 = vpop.f32.mrf.mxu0  ;;  %v3083_v54 = vor.u32 %v3686_v23, %v3082_v13  ;;  %v3695_v13 = vld [vmem:[%s3919_s9 + $0x308] sm:$0xf0]  ;;  %v3120_v23 = vld [vmem:[%s3919_s9 + $0x30c] sm:$0xf0] }
 0x1eb   : > { %2184 = vmatmul.bf16.gmra.mxu1 %v3043_v62  ;;  %2273 = vmatmul.bf16.gmra.mxu2 %v3047_v9  ;;  %v4543_v16 = vadd.f32 %v2133_v34, %v2045_v4  ;;  %v3084_v34 = vld [vmem:[%s3919_s9 + $0x2c4] sm:$0xf0] }
 0x1ec   : > { %2362 = vmatmul.bf16.gmra.mxu3 %v3051_v55  ;;  %v3087_v31 = vor.u32 %v3682_v32, %v3084_v34  ;;  %v3126_v34 = vld [vmem:[%s3919_s9 + $0x2f0] sm:$0xf] }
 0x1ed   : > { %2451 = vmatmul.bf16.gmra.mxu0 %v3055_v43 }
 0x1ee   : > { %v2234_v21 = vpop.f32.mrf.mxu2 }
 0x1ef   : > { %v2235_v18 = vadd.f32 %v2234_v21, %v2146_v20  ;;  %v2323_v27 = vpop.f32.mrf.mxu3 }
 0x1f0   : > { %v2147_v61 = vpop.f32.mrf.mxu1 }
 0x1f1   : > { %v2324_v10 = vadd.f32 %v2323_v27, %v2235_v18  ;;  %v2148_v12 = vadd.f32 %v2147_v61, %v4305_v35 }
 0x1f2   : > { %v2414_v22 = vpop.f32.mrf.mxu0 }
 0x1f3   : > { %v2413_v33 = vadd.f32 %v2412_v41, %v2324_v10 }
 0x1f5   : > { %2492 = vst [vmem:[%s4550_s13] sm:$0xff] %v2413_v33  ;;  %v2561_v35 = vmul.f32 %v2413_v33, %v2413_v33 }
 0x1f6   : > { %v2236_v60 = vpop.f32.mrf.mxu2 }
 0x1f7   : > { %v2237_v3 = vadd.f32 %v2236_v60, %v2148_v12  ;;  %v2325_v36 = vpop.f32.mrf.mxu3 }
 0x1f8   : > { %v2150_v38 = vpop.f32.mrf.mxu1 }
 0x1f9   : > { %v2326_v5 = vadd.f32 %v2325_v36, %v2237_v3  ;;  %v2151_v43 = vadd.f32 %v2150_v38, %v4311_v63 }
 0x1fa   : > { %v2417_v62 = vpop.f32.mrf.mxu0 }
 0x1fb   : > { %v2415_v9 = vadd.f32 %v2414_v22, %v2326_v5  ;;  %2189 = vmatmul.bf16.gmra.mxu1 %v3079_v1  ;;  %2278 = vmatmul.bf16.gmra.mxu2 %v3083_v54  ;;  %v3690_v22 = vld [vmem:[%s3919_s9 + $0x2e4] sm:$0xf]  ;;  %v3119_v54 = vor.u32 %v3695_v13, %v3118_v0  ;;  %v3700_v0 = vld [vmem:[%s3919_s9 + $0x334] sm:$0xf]  ;;  %v3156_v13 = vld [vmem:[%s3919_s9 + $0x354] sm:$0xf0] }
 0x1fc   : > { %2367 = vmatmul.bf16.gmra.mxu3 %v3087_v31  ;;  %v3115_v1 = vor.u32 %v3690_v22, %v3112_v56  ;;  %v3154_v22 = vld [vmem:[%s3919_s9 + $0x330] sm:$0xf]  ;;  %v3704_v56 = vld [vmem:[%s3919_s9 + $0x350] sm:$0xf0] }
 0x1fd   : > { %2456 = vmatmul.bf16.gmra.mxu0 %v3091_v39  ;;  %2493 = vst [vmem:[%s4550_s13 + $0x8] sm:$0xff] %v2415_v9  ;;  %v2524_v7 = vadd.f32 %v2415_v9, %v2413_v33  ;;  %v2562_v55 = vmul.f32 %v2415_v9, %v2415_v9  ;;  %v3691_v33 = vld [vmem:[%s3919_s9 + $0x2ec] sm:$0xf]  ;;  %v3127_v39 = vor.u32 %v3696_v48, %v3126_v34 }
 0x1fe   : > { %v2239_v4 = vpop.f32.mrf.mxu2  ;;  %v3123_v31 = vor.u32 %v3691_v33, %v3120_v23 }
 0x1ff   : > { %v2593_v41 = vadd.f32 %v2562_v55, %v2561_v35  ;;  %v2240_v20 = vadd.f32 %v2239_v4, %v2151_v43  ;;  %v2328_v21 = vpop.f32.mrf.mxu3 }
 0x200   : > { %v2152_v18 = vpop.f32.mrf.mxu1 }
 0x201   : > { %v2329_v27 = vadd.f32 %v2328_v21, %v2240_v20  ;;  %v2153_v63 = vadd.f32 %v2152_v18, %v4321_v47 }
 0x202   : > { %v2419_v61 = vpop.f32.mrf.mxu0 }
 0x203   : > { %v2418_v10 = vadd.f32 %v2417_v62, %v2329_v27 }
 0x205   : > { %2494 = vst [vmem:[%s4550_s13 + $0x10] sm:$0xff] %v2418_v10  ;;  %v2525_v32 = vadd.f32 %v2524_v7, %v2418_v10  ;;  %v2563_v12 = vmul.f32 %v2418_v10, %v2418_v10  ;;  %v3148_v10 = vld [vmem:[%s3919_s9 + $0x34c] sm:$0xf0] }
 0x206   : > { %v2241_v14 = vpop.f32.mrf.mxu2 }
 0x207   : > { %v2594_v60 = vadd.f32 %v2593_v41, %v2563_v12  ;;  %v2242_v3 = vadd.f32 %v2241_v14, %v2153_v63  ;;  %v2330_v36 = vpop.f32.mrf.mxu3  ;;  %v3705_v12 = vld [vmem:[%s3919_s9 + $0x358] sm:$0xf0] }
 0x208   : > { %v2155_v38 = vpop.f32.mrf.mxu1 }
 0x209   : > { %v2331_v5 = vadd.f32 %v2330_v36, %v2242_v3  ;;  %v2156_v7 = vadd.f32 %v2155_v38, %v4339_v2  ;;  %v3155_v3 = vor.u32 %v3704_v56, %v3154_v22 }
 0x20a   : > { %v2422_v62 = vpop.f32.mrf.mxu0 }
 0x20b   : > { %v2420_v9 = vadd.f32 %v2419_v61, %v2331_v5  ;;  %2194 = vmatmul.bf16.gmra.mxu1 %v3115_v1  ;;  %2283 = vmatmul.bf16.gmra.mxu2 %v3119_v54  ;;  %v3699_v61 = vld [vmem:[%s3919_s9 + $0x32c] sm:$0xf]  ;;  %v3159_v1 = vor.u32 %v3700_v0, %v3156_v13  ;;  %v3198_v0 = vld [vmem:[%s3919_s9 + $0x380] sm:$0xf]  ;;  %v3714_v13 = vld [vmem:[%s3919_s9 + $0x3a0] sm:$0xf0] }
 0x20c   : > { %2372 = vmatmul.bf16.gmra.mxu3 %v3123_v31 }
 0x20d   : > { %2461 = vmatmul.bf16.gmra.mxu0 %v3127_v39  ;;  %2495 = vst [vmem:[%s4550_s13 + $0x18] sm:$0xff] %v2420_v9  ;;  %v2526_v47 = vadd.f32 %v2525_v32, %v2420_v9  ;;  %v2564_v35 = vmul.f32 %v2420_v9, %v2420_v9  ;;  %v3162_v32 = vld [vmem:[%s3919_s9 + $0x338] sm:$0xf] }
 0x20e   : > { %v2244_v55 = vpop.f32.mrf.mxu2  ;;  %v3163_v54 = vor.u32 %v3705_v12, %v3162_v32 }
 0x20f   : > { %v2595_v43 = vadd.f32 %v2594_v60, %v2564_v35  ;;  %v2245_v4 = vadd.f32 %v2244_v55, %v2156_v7  ;;  %v2333_v41 = vpop.f32.mrf.mxu3  ;;  %v3151_v60 = vor.u32 %v3699_v61, %v3148_v10  ;;  %v3709_v61 = vld [vmem:[%s3919_s9 + $0x37c] sm:$0xf]  ;;  %v3192_v10 = vld [vmem:[%s3919_s9 + $0x39c] sm:$0xf0] }
 0x210   : > { %v2157_v20 = vpop.f32.mrf.mxu1 }
 0x211   : > { %v2334_v21 = vadd.f32 %v2333_v41, %v2245_v4  ;;  %v2158_v2 = vadd.f32 %v2157_v20, %v4349_v28  ;;  %v3708_v20 = vld [vmem:[%s3919_s9 + $0x374] sm:$0xf] }
 0x212   : > { %v2424_v18 = vpop.f32.mrf.mxu0 }
 0x213   : > { %v2423_v27 = vadd.f32 %v2422_v62, %v2334_v21  ;;  %v3184_v21 = vld [vmem:[%s3919_s9 + $0x394] sm:$0xf0] }
 0x214   : > { %v3187_v12 = vor.u32 %v3708_v20, %v3184_v21 }
 0x215   : > { %2496 = vst [vmem:[%s4550_s13 + $0x20] sm:$0xff] %v2423_v27  ;;  %v2527_v33 = vadd.f32 %v2526_v47, %v2423_v27  ;;  %v2565_v23 = vmul.f32 %v2423_v27, %v2423_v27  ;;  %v3713_v27 = vld [vmem:[%s3919_s9 + $0x398] sm:$0xf0] }
 0x216   : > { %v2246_v63 = vpop.f32.mrf.mxu2 }
 0x217   : > { %v2596_v34 = vadd.f32 %v2595_v43, %v2565_v23  ;;  %v2247_v48 = vadd.f32 %v2246_v63, %v2158_v2  ;;  %v2335_v14 = vpop.f32.mrf.mxu3 }
 0x218   : > { %v2160_v36 = vpop.f32.mrf.mxu1 }
 0x219   : > { %v2336_v38 = vadd.f32 %v2335_v14, %v2247_v48  ;;  %v2161_v62 = vadd.f32 %v2160_v36, %v4355_v57  ;;  %v3195_v48 = vor.u32 %v3709_v61, %v3192_v10  ;;  %v3199_v14 = vor.u32 %v3714_v13, %v3198_v0 }
 0x21a   : > { %v2427_v31 = vpop.f32.mrf.mxu0 }
 0x21b   : > { %v2425_v39 = vadd.f32 %v2424_v18, %v2336_v38  ;;  %2199 = vmatmul.bf16.gmra.mxu1 %v3151_v60  ;;  %2288 = vmatmul.bf16.gmra.mxu2 %v3155_v3  ;;  %v3190_v18 = vld [vmem:[%s3919_s9 + $0x378] sm:$0xf] }
 0x21c   : > { %2377 = vmatmul.bf16.gmra.mxu3 %v3159_v1  ;;  %v3191_v63 = vor.u32 %v3713_v27, %v3190_v18  ;;  %v3234_v18 = vld [vmem:[%s3919_s9 + $0x3c8] sm:$0xf]  ;;  %v3723_v27 = vld [vmem:[%s3919_s9 + $0x3e8] sm:$0xf0] }
 0x21d   : > { %2466 = vmatmul.bf16.gmra.mxu0 %v3163_v54  ;;  %2497 = vst [vmem:[%s4550_s13 + $0x28] sm:$0xff] %v2425_v39  ;;  %v2528_v28 = vadd.f32 %v2527_v33, %v2425_v39  ;;  %v2566_v5 = vmul.f32 %v2425_v39, %v2425_v39 }
 0x21e   : > { %v2249_v9 = vpop.f32.mrf.mxu2 }
 0x21f   : > { %v2597_v47 = vadd.f32 %v2596_v34, %v2566_v5  ;;  %v2250_v35 = vadd.f32 %v2249_v9, %v2161_v62  ;;  %v2338_v7 = vpop.f32.mrf.mxu3 }
 0x220   : > { %v2162_v55 = vpop.f32.mrf.mxu1 }
 0x221   : > { %v2339_v43 = vadd.f32 %v2338_v7, %v2250_v35  ;;  %v2163_v57 = vadd.f32 %v2162_v55, %v4364_v29  ;;  %v3717_v35 = vld [vmem:[%s3919_s9 + $0x3bc] sm:$0xf]  ;;  %v3220_v7 = vld [vmem:[%s3919_s9 + $0x3dc] sm:$0xf0] }
 0x222   : > { %v2429_v4 = vpop.f32.mrf.mxu0  ;;  %v3226_v55 = vld [vmem:[%s3919_s9 + $0x3c0] sm:$0xf] }
 0x223   : > { %v2428_v41 = vadd.f32 %v2427_v31, %v2339_v43  ;;  %v3722_v43 = vld [vmem:[%s3919_s9 + $0x3e0] sm:$0xf0] }
 0x224   : > { %v3227_v0 = vor.u32 %v3722_v43, %v3226_v55 }
 0x225   : > { %2498 = vst [vmem:[%s4550_s13 + $0x30] sm:$0xff] %v2428_v41  ;;  %v2529_v22 = vadd.f32 %v2528_v28, %v2428_v41  ;;  %v2567_v56 = vmul.f32 %v2428_v41, %v2428_v41  ;;  %v3228_v41 = vld [vmem:[%s3919_s9 + $0x3e4] sm:$0xf0] }
 0x226   : > { %v2251_v33 = vpop.f32.mrf.mxu2 }
 0x227   : > { %v2598_v23 = vadd.f32 %v2597_v47, %v2567_v56  ;;  %v2252_v2 = vadd.f32 %v2251_v33, %v2163_v57  ;;  %v2340_v32 = vpop.f32.mrf.mxu3  ;;  %v3223_v57 = vor.u32 %v3717_v35, %v3220_v7  ;;  %v3270_v35 = vld [vmem:[%s3919_s9 + $0x410] sm:$0xf]  ;;  %v3732_v7 = vld [vmem:[%s3919_s9 + $0x430] sm:$0xf0] }
 0x228   : > { %v2165_v34 = vpop.f32.mrf.mxu1 }
 0x229   : > { %v2341_v60 = vadd.f32 %v2340_v32, %v2252_v2  ;;  %v2166_v54 = vadd.f32 %v2165_v34, %v4381_v53 }
 0x22a   : > { %v2432_v3 = vpop.f32.mrf.mxu0 }
 0x22b   : > { %v2430_v36 = vadd.f32 %v2429_v4, %v2341_v60  ;;  %2204 = vmatmul.bf16.gmra.mxu1 %v3187_v12  ;;  %2293 = vmatmul.bf16.gmra.mxu2 %v3191_v63  ;;  %v3718_v4 = vld [vmem:[%s3919_s9 + $0x3c4] sm:$0xf] }
 0x22c   : > { %2382 = vmatmul.bf16.gmra.mxu3 %v3195_v48  ;;  %v3231_v33 = vor.u32 %v3718_v4, %v3228_v41 }
 0x22d   : > { %2471 = vmatmul.bf16.gmra.mxu0 %v3199_v14  ;;  %2499 = vst [vmem:[%s4550_s13 + $0x38] sm:$0xff] %v2430_v36  ;;  %v2530_v29 = vadd.f32 %v2529_v22, %v2430_v36  ;;  %v2568_v1 = vmul.f32 %v2430_v36, %v2430_v36 }
 0x22e   : > { %v2254_v38 = vpop.f32.mrf.mxu2 }
 0x22f   : > { %v2599_v31 = vadd.f32 %v2598_v23, %v2568_v1  ;;  %v2255_v39 = vadd.f32 %v2254_v38, %v2166_v54  ;;  %v2343_v28 = vpop.f32.mrf.mxu3  ;;  %v3235_v23 = vor.u32 %v3723_v27, %v3234_v18  ;;  %v3726_v38 = vld [vmem:[%s3919_s9 + $0x404] sm:$0xf]  ;;  %v3271_v27 = vor.u32 %v3732_v7, %v3270_v35 }
 0x230   : > { %v2167_v5 = vpop.f32.mrf.mxu1 }
 0x231   : > { %v2344_v62 = vadd.f32 %v2343_v28, %v2255_v39  ;;  %v2168_v53 = vadd.f32 %v2167_v5, %v4390_v24  ;;  %v3262_v39 = vld [vmem:[%s3919_s9 + $0x408] sm:$0xf]  ;;  %v3731_v28 = vld [vmem:[%s3919_s9 + $0x428] sm:$0xf0] }
 0x232   : > { %v2434_v9 = vpop.f32.mrf.mxu0  ;;  %v3727_v5 = vld [vmem:[%s3919_s9 + $0x40c] sm:$0xf] }
 0x233   : > { %v2433_v47 = vadd.f32 %v2432_v3, %v2344_v62  ;;  %v3264_v62 = vld [vmem:[%s3919_s9 + $0x42c] sm:$0xf0] }
 0x234   : > { %v3267_v18 = vor.u32 %v3727_v5, %v3264_v62 }
 0x235   : > { %2500 = vst [vmem:[%s4550_s13 + $0x40] sm:$0xff] %v2433_v47  ;;  %v2531_v20 = vadd.f32 %v2530_v29, %v2433_v47  ;;  %v2569_v21 = vmul.f32 %v2433_v47, %v2433_v47 }
 0x236   : > { %v2256_v61 = vpop.f32.mrf.mxu2 }
 0x237   : > { %v2600_v10 = vadd.f32 %v2599_v31, %v2569_v21  ;;  %v2257_v22 = vadd.f32 %v2256_v61, %v2168_v53  ;;  %v2345_v56 = vpop.f32.mrf.mxu3  ;;  %v3256_v31 = vld [vmem:[%s3919_s9 + $0x424] sm:$0xf0]  ;;  %v3263_v21 = vor.u32 %v3731_v28, %v3262_v39 }
 0x238   : > { %v2170_v13 = vpop.f32.mrf.mxu1 }
 0x239   : > { %v2346_v2 = vadd.f32 %v2345_v56, %v2257_v22  ;;  %v2171_v34 = vadd.f32 %v2170_v13, %v4395_v6 }
 0x23a   : > { %v2437_v32 = vpop.f32.mrf.mxu0 }
 0x23b   : > { %v2435_v12 = vadd.f32 %v2434_v9, %v2346_v2  ;;  %2209 = vmatmul.bf16.gmra.mxu1 %v3223_v57  ;;  %2298 = vmatmul.bf16.gmra.mxu2 %v3227_v0 }
 0x23c   : > { %2387 = vmatmul.bf16.gmra.mxu3 %v3231_v33 }
 0x23d   : > { %2476 = vmatmul.bf16.gmra.mxu0 %v3235_v23  ;;  %2501 = vst [vmem:[%s4550_s13 + $0x48] sm:$0xff] %v2435_v12  ;;  %v2532_v24 = vadd.f32 %v2531_v20, %v2435_v12  ;;  %v2570_v63 = vmul.f32 %v2435_v12, %v2435_v12  ;;  %v3259_v20 = vor.u32 %v3726_v38, %v3256_v31 }
 0x23e   : > { %v2259_v48 = vpop.f32.mrf.mxu2 }
 0x23f   : > { %v2601_v14 = vadd.f32 %v2600_v10, %v2570_v63  ;;  %v2260_v60 = vadd.f32 %v2259_v48, %v2171_v34  ;;  %v2348_v3 = vpop.f32.mrf.mxu3  ;;  %v3735_v63 = vld [vmem:[%s3919_s9 + $0x44c] sm:$0xf]  ;;  %v3292_v34 = vld [vmem:[%s3919_s9 + $0x46c] sm:$0xf0] }
 0x240   : > { %v2172_v36 = vpop.f32.mrf.mxu1  ;;  %v3298_v48 = vld [vmem:[%s3919_s9 + $0x450] sm:$0xf]  ;;  %v3295_v5 = vor.u32 %v3735_v63, %v3292_v34 }
 0x241   : > { %v2349_v29 = vadd.f32 %v2348_v3, %v2260_v60  ;;  %v2173_v6 = vadd.f32 %v2172_v36, %v4404_v17  ;;  %v3736_v60 = vld [vmem:[%s3919_s9 + $0x454] sm:$0xf]  ;;  %v3300_v3 = vld [vmem:[%s3919_s9 + $0x474] sm:$0xf0] }
 0x242   : > { %v2439_v1 = vpop.f32.mrf.mxu0 }
 0x243   : > { %v2438_v54 = vadd.f32 %v2437_v32, %v2349_v29 }
 0x245   : > { %2502 = vst [vmem:[%s4550_s13 + $0x50] sm:$0xff] %v2438_v54  ;;  %v2533_v9 = vadd.f32 %v2532_v24, %v2438_v54  ;;  %v2571_v47 = vmul.f32 %v2438_v54, %v2438_v54  ;;  %v3741_v54 = vld [vmem:[%s3919_s9 + $0x478] sm:$0xf0] }
 0x246   : > { %v2261_v55 = vpop.f32.mrf.mxu2 }
 0x247   : > { %v2602_v43 = vadd.f32 %v2601_v14, %v2571_v47  ;;  %v2262_v4 = vadd.f32 %v2261_v55, %v2173_v6  ;;  %v2350_v41 = vpop.f32.mrf.mxu3  ;;  %v3740_v14 = vld [vmem:[%s3919_s9 + $0x470] sm:$0xf0]  ;;  %v3303_v47 = vor.u32 %v3736_v60, %v3300_v3 }
 0x248   : > { %v2175_v53 = vpop.f32.mrf.mxu1  ;;  %v3299_v62 = vor.u32 %v3740_v14, %v3298_v48 }
 0x249   : > { %v2351_v61 = vadd.f32 %v2350_v41, %v2262_v4  ;;  %v2176_v57 = vadd.f32 %v2175_v53, %v4409_v30 }
 0x24a   : > { %v2442_v10 = vpop.f32.mrf.mxu0 }
 0x24b   : > { %v2440_v22 = vadd.f32 %v2439_v1, %v2351_v61  ;;  %2214 = vmatmul.bf16.gmra.mxu1 %v3259_v20  ;;  %2303 = vmatmul.bf16.gmra.mxu2 %v3263_v21  ;;  %v3306_v1 = vld [vmem:[%s3919_s9 + $0x458] sm:$0xf] }
 0x24c   : > { %2392 = vmatmul.bf16.gmra.mxu3 %v3267_v18  ;;  %v3307_v6 = vor.u32 %v3741_v54, %v3306_v1 }
 0x24d   : > { %2481 = vmatmul.bf16.gmra.mxu0 %v3271_v27  ;;  %2503 = vst [vmem:[%s4550_s13 + $0x58] sm:$0xff] %v2440_v22  ;;  %v2534_v17 = vadd.f32 %v2533_v9, %v2440_v22  ;;  %v2572_v56 = vmul.f32 %v2440_v22, %v2440_v22 }
 0x24e   : > { %v2264_v0 = vpop.f32.mrf.mxu2 }
 0x24f   : > { %v2603_v13 = vadd.f32 %v2602_v43, %v2572_v56  ;;  %v2265_v33 = vadd.f32 %v2264_v0, %v2176_v57  ;;  %v2353_v23 = vpop.f32.mrf.mxu3 }
 0x250   : > { %v2177_v2 = vpop.f32.mrf.mxu1 }
 0x251   : > { %v2354_v32 = vadd.f32 %v2353_v23, %v2265_v33  ;;  %v2178_v30 = vadd.f32 %v2177_v2, %v4418_v44 }
 0x252   : > { %v2444_v12 = vpop.f32.mrf.mxu0 }
 0x253   : > { %v2443_v24 = vadd.f32 %v2442_v10, %v2354_v32 }
 0x255   : > { %2504 = vst [vmem:[%s4550_s13 + $0x60] sm:$0xff] %v2443_v24  ;;  %v2535_v36 = vadd.f32 %v2534_v17, %v2443_v24  ;;  %v2573_v29 = vmul.f32 %v2443_v24, %v2443_v24 }
 0x256   : > { %v2266_v38 = vpop.f32.mrf.mxu2 }
 0x257   : > { %v2604_v31 = vadd.f32 %v2603_v13, %v2573_v29  ;;  %v2267_v39 = vadd.f32 %v2266_v38, %v2178_v30  ;;  %v2355_v28 = vpop.f32.mrf.mxu3 }
 0x258   : > { %v2180_v9 = vpop.f32.mrf.mxu1 }
 0x259   : > { %v2356_v35 = vadd.f32 %v2355_v28, %v2267_v39  ;;  %v2181_v4 = vadd.f32 %v2180_v9, %v4423_v15 }
 0x25a   : > { %v2447_v7 = vpop.f32.mrf.mxu0 }
 0x25b   : > { %v2445_v55 = vadd.f32 %v2444_v12, %v2356_v35  ;;  %2219 = vmatmul.bf16.gmra.mxu1 %v3295_v5  ;;  %2308 = vmatmul.bf16.gmra.mxu2 %v3299_v62 }
 0x25c   : > { %2397 = vmatmul.bf16.gmra.mxu3 %v3303_v47 }
 0x25d   : > { %2486 = vmatmul.bf16.gmra.mxu0 %v3307_v6  ;;  %2505 = vst [vmem:[%s4550_s13 + $0x68] sm:$0xff] %v2445_v55  ;;  %v2536_v44 = vadd.f32 %v2535_v36, %v2445_v55  ;;  %v2574_v43 = vmul.f32 %v2445_v55, %v2445_v55 }
 0x25e   : > { %v2269_v41 = vpop.f32.mrf.mxu2 }
 0x25f   : > { %v2605_v20 = vadd.f32 %v2604_v31, %v2574_v43  ;;  %v2270_v21 = vadd.f32 %v2269_v41, %v2181_v4  ;;  %v2358_v53 = vpop.f32.mrf.mxu3 }
 0x260   : > { %v2182_v18 = vpop.f32.mrf.mxu1 }
 0x261   : > { %v2359_v27 = vadd.f32 %v2358_v53, %v2270_v21  ;;  %v2183_v56 = vadd.f32 %v2182_v18, %v4432_v51 }
 0x262   : > { %v2449_v61 = vpop.f32.mrf.mxu0 }
 0x263   : > { %v2448_v10 = vadd.f32 %v2447_v7, %v2359_v27 }
 0x265   : > { %2506 = vst [vmem:[%s4550_s13 + $0x70] sm:$0xff] %v2448_v10  ;;  %v2537_v22 = vadd.f32 %v2536_v44, %v2448_v10  ;;  %v2575_v17 = vmul.f32 %v2448_v10, %v2448_v10 }
 0x266   : > { %v2271_v57 = vpop.f32.mrf.mxu2 }
 0x267   : > { %v2606_v0 = vadd.f32 %v2605_v20, %v2575_v17  ;;  %v2272_v13 = vadd.f32 %v2271_v57, %v2183_v56  ;;  %v2360_v33 = vpop.f32.mrf.mxu3 }
 0x268   : > { %v2185_v23 = vpop.f32.mrf.mxu1 }
 0x269   : > { %v2361_v15 = vadd.f32 %v2360_v33, %v2272_v13  ;;  %v2186_v63 = vadd.f32 %v2185_v23, %v4437_v11 }
 0x26a   : > { %v2452_v2 = vpop.f32.mrf.mxu0 }
 0x26b   : > { %v2450_v32 = vadd.f32 %v2449_v61, %v2361_v15 }
 0x26d   : > { %2507 = vst [vmem:[%s4550_s13 + $0x78] sm:$0xff] %v2450_v32  ;;  %v2538_v12 = vadd.f32 %v2537_v22, %v2450_v32  ;;  %v2576_v24 = vmul.f32 %v2450_v32, %v2450_v32 }
 0x26e   : > { %v2274_v34 = vpop.f32.mrf.mxu2 }
 0x26f   : > { %v2607_v48 = vadd.f32 %v2606_v0, %v2576_v24  ;;  %v2275_v14 = vadd.f32 %v2274_v34, %v2186_v63  ;;  %v2363_v60 = vpop.f32.mrf.mxu3 }
 0x270   : > { %v2187_v3 = vpop.f32.mrf.mxu1 }
 0x271   : > { %v2364_v51 = vadd.f32 %v2363_v60, %v2275_v14  ;;  %v2188_v54 = vadd.f32 %v2187_v3, %v4446_v42 }
 0x272   : > { %v2454_v36 = vpop.f32.mrf.mxu0 }
 0x273   : > { %v2453_v29 = vadd.f32 %v2452_v2, %v2364_v51 }
 0x275   : > { %2508 = vst [vmem:[%s4550_s13 + $0x80] sm:$0xff] %v2453_v29  ;;  %v2539_v30 = vadd.f32 %v2538_v12, %v2453_v29  ;;  %v2577_v1 = vmul.f32 %v2453_v29, %v2453_v29 }
 0x276   : > { %v2276_v38 = vpop.f32.mrf.mxu2 }
 0x277   : > { %v2608_v31 = vadd.f32 %v2607_v48, %v2577_v1  ;;  %v2277_v39 = vadd.f32 %v2276_v38, %v2188_v54  ;;  %v2365_v28 = vpop.f32.mrf.mxu3 }
 0x278   : > { %v2190_v5 = vpop.f32.mrf.mxu1 }
 0x279   : > { %v2366_v11 = vadd.f32 %v2365_v28, %v2277_v39  ;;  %v2191_v35 = vadd.f32 %v2190_v5, %v4451_v58 }
 0x27a   : > { %v2457_v62 = vpop.f32.mrf.mxu0 }
 0x27b   : > { %v2455_v9 = vadd.f32 %v2454_v36, %v2366_v11 }
 0x27d   : > { %2509 = vst [vmem:[%s4550_s13 + $0x88] sm:$0xff] %v2455_v9  ;;  %v2540_v47 = vadd.f32 %v2539_v30, %v2455_v9  ;;  %v2578_v6 = vmul.f32 %v2455_v9, %v2455_v9 }
 0x27e   : > { %v2279_v7 = vpop.f32.mrf.mxu2 }
 0x27f   : > { %v2609_v55 = vadd.f32 %v2608_v31, %v2578_v6  ;;  %v2280_v44 = vadd.f32 %v2279_v7, %v2191_v35  ;;  %v2368_v43 = vpop.f32.mrf.mxu3 }
 0x280   : > { %v2192_v4 = vpop.f32.mrf.mxu1 }
 0x281   : > { %v2369_v42 = vadd.f32 %v2368_v43, %v2280_v44  ;;  %v2193_v18 = vadd.f32 %v2192_v4, %v4460_v25 }
 0x282   : > { %v2459_v41 = vpop.f32.mrf.mxu0 }
 0x283   : > { %v2458_v20 = vadd.f32 %v2457_v62, %v2369_v42 }
 0x285   : > { %2510 = vst [vmem:[%s4550_s13 + $0x90] sm:$0xff] %v2458_v20  ;;  %v2541_v21 = vadd.f32 %v2540_v47, %v2458_v20  ;;  %v2579_v53 = vmul.f32 %v2458_v20, %v2458_v20 }
 0x286   : > { %v2281_v27 = vpop.f32.mrf.mxu2 }
 0x287   : > { %v2610_v61 = vadd.f32 %v2609_v55, %v2579_v53  ;;  %v2282_v10 = vadd.f32 %v2281_v27, %v2193_v18  ;;  %v2370_v22 = vpop.f32.mrf.mxu3 }
 0x288   : > { %v2195_v17 = vpop.f32.mrf.mxu1 }
 0x289   : > { %v2371_v58 = vadd.f32 %v2370_v22, %v2282_v10  ;;  %v2196_v33 = vadd.f32 %v2195_v17, %v4465_v49 }
 0x28a   : > { %v2462_v56 = vpop.f32.mrf.mxu0 }
 0x28b   : > { %v2460_v57 = vadd.f32 %v2459_v41, %v2371_v58 }
 0x28d   : > { %2511 = vst [vmem:[%s4550_s13 + $0x98] sm:$0xff] %v2460_v57  ;;  %v2542_v0 = vadd.f32 %v2541_v21, %v2460_v57  ;;  %v2580_v13 = vmul.f32 %v2460_v57, %v2460_v57 }
 0x28e   : > { %v2284_v23 = vpop.f32.mrf.mxu2 }
 0x28f   : > { %v2611_v15 = vadd.f32 %v2610_v61, %v2580_v13  ;;  %v2285_v2 = vadd.f32 %v2284_v23, %v2196_v33  ;;  %v2373_v32 = vpop.f32.mrf.mxu3 }
 0x290   : > { %v2197_v12 = vpop.f32.mrf.mxu1 }
 0x291   : > { %v2374_v25 = vadd.f32 %v2373_v32, %v2285_v2  ;;  %v2198_v14 = vadd.f32 %v2197_v12, %v4474_v19 }
 0x292   : > { %v2464_v24 = vpop.f32.mrf.mxu0 }
 0x293   : > { %v2463_v63 = vadd.f32 %v2462_v56, %v2374_v25 }
 0x295   : > { %2512 = vst [vmem:[%s4550_s13 + $0xa0] sm:$0xff] %v2463_v63  ;;  %v2543_v34 = vadd.f32 %v2542_v0, %v2463_v63  ;;  %v2581_v48 = vmul.f32 %v2463_v63, %v2463_v63 }
 0x296   : > { %v2286_v60 = vpop.f32.mrf.mxu2 }
 0x297   : > { %v2612_v3 = vadd.f32 %v2611_v15, %v2581_v48  ;;  %v2287_v51 = vadd.f32 %v2286_v60, %v2198_v14  ;;  %v2375_v36 = vpop.f32.mrf.mxu3 }
 0x298   : > { %v2200_v29 = vpop.f32.mrf.mxu1 }
 0x299   : > { %v2376_v49 = vadd.f32 %v2375_v36, %v2287_v51  ;;  %v2201_v31 = vadd.f32 %v2200_v29, %v4479_v37 }
 0x29a   : > { %v2467_v30 = vpop.f32.mrf.mxu0 }
 0x29b   : > { %v2465_v1 = vadd.f32 %v2464_v24, %v2376_v49 }
 0x29d   : > { %2513 = vst [vmem:[%s4550_s13 + $0xa8] sm:$0xff] %v2465_v1  ;;  %v2544_v54 = vadd.f32 %v2543_v34, %v2465_v1  ;;  %v2582_v38 = vmul.f32 %v2465_v1, %v2465_v1 }
 0x29e   : > { %v2289_v39 = vpop.f32.mrf.mxu2 }
 0x29f   : > { %v2613_v28 = vadd.f32 %v2612_v3, %v2582_v38  ;;  %v2290_v5 = vadd.f32 %v2289_v39, %v2201_v31  ;;  %v2378_v11 = vpop.f32.mrf.mxu3 }
 0x2a0   : > { %v2202_v62 = vpop.f32.mrf.mxu1 }
 0x2a1   : > { %v2379_v19 = vadd.f32 %v2378_v11, %v2290_v5  ;;  %v2203_v7 = vadd.f32 %v2202_v62, %v4488_v40 }
 0x2a2   : > { %v2469_v9 = vpop.f32.mrf.mxu0 }
 0x2a3   : > { %v2468_v47 = vadd.f32 %v2467_v30, %v2379_v19 }
 0x2a5   : > { %2514 = vst [vmem:[%s4550_s13 + $0xb0] sm:$0xff] %v2468_v47  ;;  %v2545_v6 = vadd.f32 %v2544_v54, %v2468_v47  ;;  %v2583_v35 = vmul.f32 %v2468_v47, %v2468_v47 }
 0x2a6   : > { %v2291_v55 = vpop.f32.mrf.mxu2 }
 0x2a7   : > { %v2614_v44 = vadd.f32 %v2613_v28, %v2583_v35  ;;  %v2292_v43 = vadd.f32 %v2291_v55, %v2203_v7  ;;  %v2380_v4 = vpop.f32.mrf.mxu3 }
 0x2a8   : > { %v2205_v42 = vpop.f32.mrf.mxu1 }
 0x2a9   : > { %v2381_v37 = vadd.f32 %v2380_v4, %v2292_v43  ;;  %v2206_v18 = vadd.f32 %v2205_v42, %v4493_v8 }
 0x2aa   : > { %v2472_v41 = vpop.f32.mrf.mxu0 }
 0x2ab   : > { %v2470_v20 = vadd.f32 %v2469_v9, %v2381_v37 }
 0x2ad   : > { %2515 = vst [vmem:[%s4550_s13 + $0xb8] sm:$0xff] %v2470_v20  ;;  %v2546_v21 = vadd.f32 %v2545_v6, %v2470_v20  ;;  %v2584_v53 = vmul.f32 %v2470_v20, %v2470_v20 }
 0x2ae   : > { %v2294_v27 = vpop.f32.mrf.mxu2 }
 0x2af   : > { %v2615_v61 = vadd.f32 %v2614_v44, %v2584_v53  ;;  %v2295_v10 = vadd.f32 %v2294_v27, %v2206_v18  ;;  %v2383_v22 = vpop.f32.mrf.mxu3 }
 0x2b0   : > { %v2207_v17 = vpop.f32.mrf.mxu1 }
 0x2b1   : > { %v2384_v40 = vadd.f32 %v2383_v22, %v2295_v10  ;;  %v2208_v13 = vadd.f32 %v2207_v17, %v4502_v52 }
 0x2b2   : > { %v2474_v58 = vpop.f32.mrf.mxu0 }
 0x2b3   : > { %v2473_v56 = vadd.f32 %v2472_v41, %v2384_v40 }
 0x2b5   : > { %2516 = vst [vmem:[%s4550_s13 + $0xc0] sm:$0xff] %v2473_v56  ;;  %v2547_v57 = vadd.f32 %v2546_v21, %v2473_v56  ;;  %v2585_v0 = vmul.f32 %v2473_v56, %v2473_v56 }
 0x2b6   : > { %v2296_v33 = vpop.f32.mrf.mxu2 }
 0x2b7   : > { %v2616_v23 = vadd.f32 %v2615_v61, %v2585_v0  ;;  %v2297_v15 = vadd.f32 %v2296_v33, %v2208_v13  ;;  %v2385_v2 = vpop.f32.mrf.mxu3 }
 0x2b8   : > { %v2210_v32 = vpop.f32.mrf.mxu1 }
 0x2b9   : > { %v2386_v8 = vadd.f32 %v2385_v2, %v2297_v15  ;;  %v2211_v34 = vadd.f32 %v2210_v32, %v4507_v45 }
 0x2ba   : > { %v2477_v12 = vpop.f32.mrf.mxu0 }
 0x2bb   : > { %v2475_v25 = vadd.f32 %v2474_v58, %v2386_v8 }
 0x2bd   : > { %2517 = vst [vmem:[%s4550_s13 + $0xc8] sm:$0xff] %v2475_v25  ;;  %v2548_v24 = vadd.f32 %v2547_v57, %v2475_v25  ;;  %v2586_v63 = vmul.f32 %v2475_v25, %v2475_v25 }
 0x2be   : > { %v2299_v48 = vpop.f32.mrf.mxu2 }
 0x2bf   : > { %v2617_v14 = vadd.f32 %v2616_v23, %v2586_v63  ;;  %v2300_v60 = vadd.f32 %v2299_v48, %v2211_v34  ;;  %v2388_v3 = vpop.f32.mrf.mxu3 }
 0x2c0   : > { %v2212_v51 = vpop.f32.mrf.mxu1 }
 0x2c1   : > { %v2389_v52 = vadd.f32 %v2388_v3, %v2300_v60  ;;  %v2213_v1 = vadd.f32 %v2212_v51, %v4516_v46 }
 0x2c2   : > { %v2479_v36 = vpop.f32.mrf.mxu0 }
 0x2c3   : > { %v2478_v29 = vadd.f32 %v2477_v12, %v2389_v52 }
 0x2c5   : > { %2518 = vst [vmem:[%s4550_s13 + $0xd0] sm:$0xff] %v2478_v29  ;;  %v2549_v49 = vadd.f32 %v2548_v24, %v2478_v29  ;;  %v2587_v30 = vmul.f32 %v2478_v29, %v2478_v29 }
 0x2c6   : > { %v2301_v54 = vpop.f32.mrf.mxu2 }
 0x2c7   : > { %v2618_v38 = vadd.f32 %v2617_v14, %v2587_v30  ;;  %v2302_v31 = vadd.f32 %v2301_v54, %v2213_v1  ;;  %v2390_v39 = vpop.f32.mrf.mxu3 }
 0x2c8   : > { %v2215_v45 = vpop.f32.mrf.mxu1 }
 0x2c9   : > { %v2391_v28 = vadd.f32 %v2390_v39, %v2302_v31  ;;  %v2216_v9 = vadd.f32 %v2215_v45, %v4521_v59 }
 0x2ca   : > { %v2482_v11 = vpop.f32.mrf.mxu0 }
 0x2cb   : > { %v2480_v5 = vadd.f32 %v2479_v36, %v2391_v28 }
 0x2cd   : > { %2519 = vst [vmem:[%s4550_s13 + $0xd8] sm:$0xff] %v2480_v5  ;;  %v2550_v62 = vadd.f32 %v2549_v49, %v2480_v5  ;;  %v2588_v19 = vmul.f32 %v2480_v5, %v2480_v5 }
 0x2ce   : > { %v2304_v47 = vpop.f32.mrf.mxu2 }
 0x2cf   : > { %v2619_v6 = vadd.f32 %v2618_v38, %v2588_v19  ;;  %v2305_v35 = vadd.f32 %v2304_v47, %v2216_v9  ;;  %v2393_v7 = vpop.f32.mrf.mxu3 }
 0x2d0   : > { %v2217_v46 = vpop.f32.mrf.mxu1 }
 0x2d1   : > { %v2394_v55 = vadd.f32 %v2393_v7, %v2305_v35  ;;  %v2218_v42 = vadd.f32 %v2217_v46, %v4530_v26 }
 0x2d2   : > { %v2484_v37 = vpop.f32.mrf.mxu0 }
 0x2d3   : > { %v2483_v44 = vadd.f32 %v2482_v11, %v2394_v55 }
 0x2d5   : > { %2520 = vst [vmem:[%s4550_s13 + $0xe0] sm:$0xff] %v2483_v44  ;;  %v2551_v43 = vadd.f32 %v2550_v62, %v2483_v44  ;;  %v2589_v4 = vmul.f32 %v2483_v44, %v2483_v44 }
 0x2d6   : > { %v2306_v41 = vpop.f32.mrf.mxu2 }
 0x2d7   : > { %v2620_v20 = vadd.f32 %v2619_v6, %v2589_v4  ;;  %v2307_v21 = vadd.f32 %v2306_v41, %v2218_v42  ;;  %v2395_v53 = vpop.f32.mrf.mxu3 }
 0x2d8   : > { %v2220_v59 = vpop.f32.mrf.mxu1 }
 0x2d9   : > { %v2396_v18 = vadd.f32 %v2395_v53, %v2307_v21  ;;  %v2221_v22 = vadd.f32 %v2220_v59, %v4535_v50 }
 0x2da   : > { %v2487_v26 = vpop.f32.mrf.mxu0 }
 0x2db   : > { %v2485_v27 = vadd.f32 %v2484_v37, %v2396_v18 }
 0x2dd   : > { %2521 = vst [vmem:[%s4550_s13 + $0xe8] sm:$0xff] %v2485_v27  ;;  %v2552_v61 = vadd.f32 %v2551_v43, %v2485_v27  ;;  %v2590_v10 = vmul.f32 %v2485_v27, %v2485_v27 }
 0x2de   : > { %v2309_v17 = vpop.f32.mrf.mxu2 }
 0x2df   : > { %v2621_v40 = vadd.f32 %v2620_v20, %v2590_v10  ;;  %v2310_v58 = vadd.f32 %v2309_v17, %v2221_v22  ;;  %v2398_v56 = vpop.f32.mrf.mxu3 }
 0x2e0   : > { %v2222_v0 = vpop.f32.mrf.mxu1 }
 0x2e1   : > { %v2399_v57 = vadd.f32 %v2398_v56, %v2310_v58  ;;  %v2223_v15 = vadd.f32 %v2222_v0, %v4543_v16 }
 0x2e2   : > { %v2489_v25 = vpop.f32.mrf.mxu0 }
 0x2e3   : > { %v2488_v13 = vadd.f32 %v2487_v26, %v2399_v57 }
 0x2e5   : > { %2522 = vst [vmem:[%s4550_s13 + $0xf0] sm:$0xff] %v2488_v13  ;;  %v2553_v33 = vadd.f32 %v2552_v61, %v2488_v13  ;;  %v2591_v23 = vmul.f32 %v2488_v13, %v2488_v13 }
 0x2e6   : > { %v2311_v2 = vpop.f32.mrf.mxu2 }
 0x2e7   : > { %v2622_v32 = vadd.f32 %v2621_v40, %v2591_v23  ;;  %v2312_v8 = vadd.f32 %v2311_v2, %v2223_v15  ;;  %v2400_v50 = vpop.f32.mrf.mxu3 }
 0x2e9   : > { %v2401_v12 = vadd.f32 %v2400_v50, %v2312_v8 }
 0x2eb   : > { %v2490_v24 = vadd.f32 %v2489_v25, %v2401_v12 }
 0x2ed   : > { %2523 = vst [vmem:[%s4550_s13 + $0xf8] sm:$0xff] %v2490_v24  ;;  %v2554_v63 = vadd.f32 %v2553_v33, %v2490_v24  ;;  %v2592_v34 = vmul.f32 %v2490_v24, %v2490_v24 }
 0x2ef   : > { %v2555_v48 = vrot.slane %v2554_v63, 4  ;;  %v2623_v14 = vadd.f32 %v2622_v32, %v2592_v34 }
 0x2f1   : > { %v2556_v60 = vadd.f32 %v2555_v48, %v2554_v63  ;;  %v2624_v3 = vrot.slane %v2623_v14, 4 }
 0x2f3   : > { %v2557_v51 = vrot.slane %v2556_v60, 2  ;;  %v2625_v52 = vadd.f32 %v2624_v3, %v2623_v14 }
 0x2f5   : > { %v2558_v16 = vadd.f32 %v2557_v51, %v2556_v60  ;;  %v2626_v36 = vrot.slane %v2625_v52, 2 }
 0x2f7   : > { %v2559_v29 = vrot.slane %v2558_v16, 1  ;;  %v2627_v49 = vadd.f32 %v2626_v36, %v2625_v52 }
 0x2f9   : > { %v2628_v30 = vrot.slane %v2627_v49, 1  ;;  %v2560_v1 = vadd.f32 %v2559_v29, %v2558_v16 }
 0x2fb   : > { %v2629_v54 = vadd.f32 %v2628_v30, %v2627_v49 }
 0x2fd   : > { %v2631_v38 = vsel %vm2630_vm0, %v2560_v1, %v2629_v54 }
 0x2fe   : > { %v2633_v31 = vsel %vm2632_vm1, %v2631_v38, 0.0 }
 0x2ff   : > { %2634 = vst [vmem:[%s214_s17] sm:$0xff] %v2633_v31 }
 0x300 PF: > { %s15_s15 = sadd.s32 1, %s3854_s15  }
 0x301   : > { %p12_p5 = scmp.ge.s32.totalorder %s15_s15, 4  }
 0x303   :  { %14 = sbr.rel (!%p12_p5) target bundleno = 1 (0x1), region = 74 }

// kernel: resblock_forward.7
= control target key start
LH: loop header
LB: loop body
LE: loop exit
PB: predicated region body
PF: predicated region fallthrough
CT: control target
= control target key end

     0   :  { %s579_s15 = smov 0   ;;  %s780_s0 = inlined_call_operand.vmem [shape: f32[512,128], index: 0, kind: input, shape index: {}]   ;;  %s781_s1 = inlined_call_operand.vmem [shape: f32[1,128], index: 1, kind: input, shape index: {}]   ;;  %s782_s2 = inlined_call_operand.vmem [shape: f32[1,128], index: 2, kind: input, shape index: {}]   ;;  %s783_s3 = inlined_call_operand.vmem [shape: f32[512,128], index: 3, kind: input, shape index: {}]   ;;  %s784_s4 = inlined_call_operand.vmem [shape: f32[512,128], index: 4, kind: output, shape index: {}]  }
   0x1 LB: > { %s523_s16 = sadd.s32 4294967295, %s552_s15   ;;  %p527_p0 = scmp.ge.s32.totalorder %s552_s15, 1  ;;  %s552_s15 = sphi %s579_s15, %s14_s15  }
   0x2   : > { %p174_p1 = scmp.lt.s32.totalorder %s552_s15, 3 }
   0x4   : > { %p175_p2 = pnand %p527_p0, %p174_p1 }
   0x5   : > { %s528_s17 = sshll.u32 (!%p175_p2), %s523_s16, 5 }
   0x6   : > { %178 = sbr.rel (%p175_p2) target bundleno = 55 (0x37), region = 36  ;;  %p206_p3 = scmp.lt.s32.totalorder (!%p175_p2), %s528_s17, 63 }
   0xb   : > { %s786_s17 = smov (!%p206_p3, %s528_s17), 63  ;;  %v590_v0 = vld [vmem:[%s781_s1] ss:$0 sm:$0xff] }
   0xc   : > { %s592_s20 = sshll.u32 %s786_s17, 3  ;;  %v609_v1 = vld [vmem:[%s782_s2] ss:$0 sm:$0xff] }
   0xd   : > { %s598_s23 = scalar_lea.vmem %s780_s0, %s592_s20  ;;  %s604_s26 = scalar_lea.vmem %s783_s3, %s592_s20 }
   0xe   : > { %v223_v2 = vld [vmem:[%s598_s23] sm:$0xff]  ;;  %v224_v3 = vld [vmem:[%s598_s23 + $0x8] sm:$0xff]  ;;  %v225_v7 = vld [vmem:[%s598_s23 + $0x10] sm:$0xff]  ;;  %s640_s5 = scalar_lea.vmem %s784_s4, %s592_s20 }
   0xf   : > { %v259_v4 = vmul.f32 %v590_v0, %v223_v2  ;;  %v327_v5 = vld [vmem:[%s604_s26] sm:$0xff]  ;;  %v260_v6 = vmul.f32 %v590_v0, %v224_v3  ;;  %v328_v8 = vld [vmem:[%s604_s26 + $0x8] sm:$0xff]  ;;  %v261_v9 = vmul.f32 %v590_v0, %v225_v7  ;;  %v226_v10 = vld [vmem:[%s598_s23 + $0x18] sm:$0xff] }
  0x10   : > { %v227_v11 = vld [vmem:[%s598_s23 + $0x20] sm:$0xff]  ;;  %v329_v14 = vld [vmem:[%s604_s26 + $0x10] sm:$0xff]  ;;  %v262_v15 = vmul.f32 %v590_v0, %v226_v10  ;;  %v330_v16 = vld [vmem:[%s604_s26 + $0x18] sm:$0xff] }
  0x11   : > { %v295_v12 = vadd.f32 %v609_v1, %v259_v4  ;;  %v296_v13 = vadd.f32 %v609_v1, %v260_v6  ;;  %v263_v17 = vmul.f32 %v590_v0, %v227_v11  ;;  %v228_v18 = vld [vmem:[%s598_s23 + $0x28] sm:$0xff]  ;;  %v297_v19 = vadd.f32 %v609_v1, %v261_v9  ;;  %v331_v20 = vld [vmem:[%s604_s26 + $0x20] sm:$0xff]  ;;  %v229_v22 = vld [vmem:[%s598_s23 + $0x30] sm:$0xff] }
  0x12   : > { %v264_v21 = vmul.f32 %v590_v0, %v228_v18  ;;  %v230_v23 = vld [vmem:[%s598_s23 + $0x38] sm:$0xff]  ;;  %v298_v26 = vadd.f32 %v609_v1, %v262_v15  ;;  %v332_v28 = vld [vmem:[%s604_s26 + $0x28] sm:$0xff]  ;;  %v265_v31 = vmul.f32 %v590_v0, %v229_v22  ;;  %v231_v33 = vld [vmem:[%s598_s23 + $0x40] sm:$0xff] }
  0x13   : > { %v359_v24 = vadd.f32 %v327_v5, %v295_v12  ;;  %v360_v25 = vadd.f32 %v328_v8, %v296_v13  ;;  %v299_v27 = vadd.f32 %v609_v1, %v263_v17  ;;  %v361_v29 = vadd.f32 %v329_v14, %v297_v19  ;;  %v232_v34 = vld [vmem:[%s598_s23 + $0x48] sm:$0xff]  ;;  %v333_v39 = vld [vmem:[%s604_s26 + $0x30] sm:$0xff]  ;;  %v334_v40 = vld [vmem:[%s604_s26 + $0x38] sm:$0xff] }
  0x14   : > { %v300_v30 = vadd.f32 %v609_v1, %v264_v21  ;;  %v266_v32 = vmul.f32 %v590_v0, %v230_v23  ;;  %v362_v37 = vadd.f32 %v330_v16, %v298_v26  ;;  %v233_v41 = vld [vmem:[%s598_s23 + $0x50] sm:$0xff]  ;;  %v301_v44 = vadd.f32 %v609_v1, %v265_v31  ;;  %v234_v46 = vld [vmem:[%s598_s23 + $0x58] sm:$0xff]  ;;  %v235_v47 = vld [vmem:[%s598_s23 + $0x60] sm:$0xff] }
  0x15   : > { %v391_v35 = vmax.f32 %v359_v24, 0.0  ;;  %v392_v36 = vmax.f32 %v360_v25, 0.0  ;;  %v363_v38 = vadd.f32 %v331_v20, %v299_v27  ;;  %v393_v42 = vmax.f32 %v361_v29, 0.0  ;;  %v236_v52 = vld [vmem:[%s598_s23 + $0x68] sm:$0xff]  ;;  %v335_v56 = vld [vmem:[%s604_s26 + $0x40] sm:$0xff]  ;;  %v337_v61 = vld [vmem:[%s604_s26 + $0x50] sm:$0xff] }
  0x16   : > { %v364_v43 = vadd.f32 %v332_v28, %v300_v30  ;;  %v302_v45 = vadd.f32 %v609_v1, %v266_v32  ;;  %v394_v48 = vmax.f32 %v362_v37, 0.0  ;;  %v267_v50 = vmul.f32 %v590_v0, %v231_v33  ;;  %v336_v57 = vld [vmem:[%s604_s26 + $0x48] sm:$0xff]  ;;  %v237_v2 = vld [vmem:[%s598_s23 + $0x70] sm:$0xff]  ;;  %v238_v3 = vld [vmem:[%s598_s23 + $0x78] sm:$0xff] }
  0x17   : > { %423 = vst [vmem:[%s640_s5] sm:$0xff] %v391_v35  ;;  %v395_v49 = vmax.f32 %v363_v38, 0.0  ;;  %v268_v51 = vmul.f32 %v590_v0, %v232_v34  ;;  %v365_v54 = vadd.f32 %v333_v39, %v301_v44  ;;  %v269_v58 = vmul.f32 %v590_v0, %v233_v41  ;;  %v338_v7 = vld [vmem:[%s604_s26 + $0x58] sm:$0xff]  ;;  %v339_v8 = vld [vmem:[%s604_s26 + $0x60] sm:$0xff]  ;;  %v340_v14 = vld [vmem:[%s604_s26 + $0x68] sm:$0xff] }
  0x18   : > { %424 = vst [vmem:[%s640_s5 + $0x8] sm:$0xff] %v392_v36  ;;  %v396_v53 = vmax.f32 %v364_v43, 0.0  ;;  %v366_v55 = vadd.f32 %v334_v40, %v302_v45  ;;  %v303_v59 = vadd.f32 %v609_v1, %v267_v50  ;;  %v270_v62 = vmul.f32 %v590_v0, %v234_v46  ;;  %v239_v19 = vld [vmem:[%s598_s23 + $0x80] sm:$0xff]  ;;  %v240_v20 = vld [vmem:[%s598_s23 + $0x88] sm:$0xff]  ;;  %v341_v25 = vld [vmem:[%s604_s26 + $0x70] sm:$0xff] }
  0x19   : > { %425 = vst [vmem:[%s640_s5 + $0x10] sm:$0xff] %v393_v42  ;;  %v304_v60 = vadd.f32 %v609_v1, %v268_v51  ;;  %v271_v63 = vmul.f32 %v590_v0, %v235_v47  ;;  %v397_v4 = vmax.f32 %v365_v54, 0.0  ;;  %v305_v6 = vadd.f32 %v609_v1, %v269_v58  ;;  %v342_v26 = vld [vmem:[%s604_s26 + $0x78] sm:$0xff]  ;;  %v241_v27 = vld [vmem:[%s598_s23 + $0x90] sm:$0xff]  ;;  %v243_v33 = vld [vmem:[%s598_s23 + $0xa0] sm:$0xff] }
  0x1a   : > { %426 = vst [vmem:[%s640_s5 + $0x18] sm:$0xff] %v394_v48  ;;  %v398_v5 = vmax.f32 %v366_v55, 0.0  ;;  %v272_v9 = vmul.f32 %v590_v0, %v236_v52  ;;  %v367_v10 = vadd.f32 %v335_v56, %v303_v59  ;;  %v306_v12 = vadd.f32 %v609_v1, %v270_v62  ;;  %v242_v32 = vld [vmem:[%s598_s23 + $0x98] sm:$0xff]  ;;  %v244_v38 = vld [vmem:[%s598_s23 + $0xa8] sm:$0xff]  ;;  %v343_v42 = vld [vmem:[%s604_s26 + $0x80] sm:$0xff] }
  0x1b   : > { %427 = vst [vmem:[%s640_s5 + $0x20] sm:$0xff] %v395_v49  ;;  %v368_v11 = vadd.f32 %v336_v57, %v304_v60  ;;  %v307_v13 = vadd.f32 %v609_v1, %v271_v63  ;;  %v369_v15 = vadd.f32 %v337_v61, %v305_v6  ;;  %v273_v17 = vmul.f32 %v590_v0, %v237_v2  ;;  %v344_v43 = vld [vmem:[%s604_s26 + $0x88] sm:$0xff]  ;;  %v345_v47 = vld [vmem:[%s604_s26 + $0x90] sm:$0xff]  ;;  %v246_v51 = vld [vmem:[%s598_s23 + $0xb8] sm:$0xff] }
  0x1c   : > { %428 = vst [vmem:[%s640_s5 + $0x28] sm:$0xff] %v396_v53  ;;  %v308_v16 = vadd.f32 %v609_v1, %v272_v9  ;;  %v274_v18 = vmul.f32 %v590_v0, %v238_v3  ;;  %v399_v21 = vmax.f32 %v367_v10, 0.0  ;;  %v370_v23 = vadd.f32 %v338_v7, %v306_v12  ;;  %v245_v50 = vld [vmem:[%s598_s23 + $0xb0] sm:$0xff]  ;;  %v346_v55 = vld [vmem:[%s604_s26 + $0x98] sm:$0xff]  ;;  %v347_v56 = vld [vmem:[%s604_s26 + $0xa0] sm:$0xff] }
  0x1d   : > { %429 = vst [vmem:[%s640_s5 + $0x30] sm:$0xff] %v397_v4  ;;  %v400_v22 = vmax.f32 %v368_v11, 0.0  ;;  %v371_v24 = vadd.f32 %v339_v8, %v307_v13  ;;  %v401_v28 = vmax.f32 %v369_v15, 0.0  ;;  %v309_v30 = vadd.f32 %v609_v1, %v273_v17  ;;  %v348_v62 = vld [vmem:[%s604_s26 + $0xa8] sm:$0xff]  ;;  %v349_v11 = vld [vmem:[%s604_s26 + $0xb0] sm:$0xff]  ;;  %v350_v12 = vld [vmem:[%s604_s26 + $0xb8] sm:$0xff] }
  0x1e   : > { %430 = vst [vmem:[%s640_s5 + $0x38] sm:$0xff] %v398_v5  ;;  %v372_v29 = vadd.f32 %v340_v14, %v308_v16  ;;  %v310_v31 = vadd.f32 %v609_v1, %v274_v18  ;;  %v402_v34 = vmax.f32 %v370_v23, 0.0  ;;  %v275_v36 = vmul.f32 %v590_v0, %v239_v19  ;;  %v247_v5 = vld [vmem:[%s598_s23 + $0xc0] sm:$0xff]  ;;  %v248_v6 = vld [vmem:[%s598_s23 + $0xc8] sm:$0xff]  ;;  %v249_v13 = vld [vmem:[%s598_s23 + $0xd0] sm:$0xff] }
  0x1f   : > { %431 = vst [vmem:[%s640_s5 + $0x40] sm:$0xff] %v399_v21  ;;  %v403_v35 = vmax.f32 %v371_v24, 0.0  ;;  %v276_v37 = vmul.f32 %v590_v0, %v240_v20  ;;  %v373_v40 = vadd.f32 %v341_v25, %v309_v30  ;;  %v277_v44 = vmul.f32 %v590_v0, %v241_v27  ;;  %v250_v18 = vld [vmem:[%s598_s23 + $0xd8] sm:$0xff]  ;;  %v251_v19 = vld [vmem:[%s598_s23 + $0xe0] sm:$0xff]  ;;  %v252_v24 = vld [vmem:[%s598_s23 + $0xe8] sm:$0xff] }
  0x20   : > { %432 = vst [vmem:[%s640_s5 + $0x48] sm:$0xff] %v400_v22  ;;  %v404_v39 = vmax.f32 %v372_v29, 0.0  ;;  %v374_v41 = vadd.f32 %v342_v26, %v310_v31  ;;  %v311_v45 = vadd.f32 %v609_v1, %v275_v36  ;;  %v278_v48 = vmul.f32 %v590_v0, %v242_v32  ;;  %v352_v29 = vld [vmem:[%s604_s26 + $0xc8] sm:$0xff]  ;;  %v253_v36 = vld [vmem:[%s598_s23 + $0xf0] sm:$0xff] }
  0x21   : > { %433 = vst [vmem:[%s640_s5 + $0x50] sm:$0xff] %v401_v28  ;;  %v312_v46 = vadd.f32 %v609_v1, %v276_v37  ;;  %v279_v49 = vmul.f32 %v590_v0, %v243_v33  ;;  %v405_v52 = vmax.f32 %v373_v40, 0.0  ;;  %v313_v54 = vadd.f32 %v609_v1, %v277_v44  ;;  %v351_v28 = vld [vmem:[%s604_s26 + $0xc0] sm:$0xff]  ;;  %v353_v33 = vld [vmem:[%s604_s26 + $0xd0] sm:$0xff]  ;;  %v254_v37 = vld [vmem:[%s598_s23 + $0xf8] sm:$0xff] }
  0x22   : > { %434 = vst [vmem:[%s640_s5 + $0x58] sm:$0xff] %v402_v34  ;;  %v406_v53 = vmax.f32 %v374_v41, 0.0  ;;  %v280_v57 = vmul.f32 %v590_v0, %v244_v38  ;;  %v375_v58 = vadd.f32 %v343_v42, %v311_v45  ;;  %v314_v60 = vadd.f32 %v609_v1, %v278_v48  ;;  %v354_v41 = vld [vmem:[%s604_s26 + $0xd8] sm:$0xff]  ;;  %v355_v42 = vld [vmem:[%s604_s26 + $0xe0] sm:$0xff]  ;;  %v356_v48 = vld [vmem:[%s604_s26 + $0xe8] sm:$0xff] }
  0x23   : > { %435 = vst [vmem:[%s640_s5 + $0x60] sm:$0xff] %v403_v35  ;;  %v376_v59 = vadd.f32 %v344_v43, %v312_v46  ;;  %v315_v61 = vadd.f32 %v609_v1, %v279_v49  ;;  %v377_v63 = vadd.f32 %v345_v47, %v313_v54  ;;  %v281_v3 = vmul.f32 %v590_v0, %v245_v50 }
  0x24   : > { %436 = vst [vmem:[%s640_s5 + $0x68] sm:$0xff] %v404_v39  ;;  %v316_v2 = vadd.f32 %v609_v1, %v280_v57  ;;  %v282_v4 = vmul.f32 %v590_v0, %v246_v51  ;;  %v407_v7 = vmax.f32 %v375_v58, 0.0  ;;  %v378_v9 = vadd.f32 %v346_v55, %v314_v60  ;;  %v357_v57 = vld [vmem:[%s604_s26 + $0xf0] sm:$0xff]  ;;  %v358_v58 = vld [vmem:[%s604_s26 + $0xf8] sm:$0xff] }
  0x25   : > { %437 = vst [vmem:[%s640_s5 + $0x70] sm:$0xff] %v405_v52  ;;  %v408_v8 = vmax.f32 %v376_v59, 0.0  ;;  %v379_v10 = vadd.f32 %v347_v56, %v315_v61  ;;  %v409_v14 = vmax.f32 %v377_v63, 0.0  ;;  %v317_v16 = vadd.f32 %v609_v1, %v281_v3 }
  0x26   : > { %438 = vst [vmem:[%s640_s5 + $0x78] sm:$0xff] %v406_v53  ;;  %v380_v15 = vadd.f32 %v348_v62, %v316_v2  ;;  %v318_v17 = vadd.f32 %v609_v1, %v282_v4  ;;  %v410_v20 = vmax.f32 %v378_v9, 0.0  ;;  %v283_v22 = vmul.f32 %v590_v0, %v247_v5 }
  0x27   : > { %439 = vst [vmem:[%s640_s5 + $0x80] sm:$0xff] %v407_v7  ;;  %v411_v21 = vmax.f32 %v379_v10, 0.0  ;;  %v284_v23 = vmul.f32 %v590_v0, %v248_v6  ;;  %v381_v26 = vadd.f32 %v349_v11, %v317_v16  ;;  %v285_v30 = vmul.f32 %v590_v0, %v249_v13 }
  0x28   : > { %440 = vst [vmem:[%s640_s5 + $0x88] sm:$0xff] %v408_v8  ;;  %v412_v25 = vmax.f32 %v380_v15, 0.0  ;;  %v382_v27 = vadd.f32 %v350_v12, %v318_v17  ;;  %v319_v31 = vadd.f32 %v609_v1, %v283_v22  ;;  %v286_v34 = vmul.f32 %v590_v0, %v250_v18 }
  0x29   : > { %441 = vst [vmem:[%s640_s5 + $0x90] sm:$0xff] %v409_v14  ;;  %v320_v32 = vadd.f32 %v609_v1, %v284_v23  ;;  %v287_v35 = vmul.f32 %v590_v0, %v251_v19  ;;  %v413_v38 = vmax.f32 %v381_v26, 0.0  ;;  %v321_v40 = vadd.f32 %v609_v1, %v285_v30 }
  0x2a   : > { %442 = vst [vmem:[%s640_s5 + $0x98] sm:$0xff] %v410_v20  ;;  %v414_v39 = vmax.f32 %v382_v27, 0.0  ;;  %v288_v43 = vmul.f32 %v590_v0, %v252_v24  ;;  %v383_v44 = vadd.f32 %v351_v28, %v319_v31  ;;  %v322_v46 = vadd.f32 %v609_v1, %v286_v34 }
  0x2b   : > { %443 = vst [vmem:[%s640_s5 + $0xa0] sm:$0xff] %v411_v21  ;;  %v384_v45 = vadd.f32 %v352_v29, %v320_v32  ;;  %v323_v47 = vadd.f32 %v609_v1, %v287_v35  ;;  %v385_v49 = vadd.f32 %v353_v33, %v321_v40  ;;  %v289_v51 = vmul.f32 %v590_v0, %v253_v36 }
  0x2c   : > { %444 = vst [vmem:[%s640_s5 + $0xa8] sm:$0xff] %v412_v25  ;;  %v324_v50 = vadd.f32 %v609_v1, %v288_v43  ;;  %v290_v52 = vmul.f32 %v590_v0, %v254_v37  ;;  %v415_v53 = vmax.f32 %v383_v44, 0.0  ;;  %v386_v55 = vadd.f32 %v354_v41, %v322_v46 }
  0x2d   : > { %445 = vst [vmem:[%s640_s5 + $0xb0] sm:$0xff] %v413_v38  ;;  %v416_v54 = vmax.f32 %v384_v45, 0.0  ;;  %v387_v56 = vadd.f32 %v355_v42, %v323_v47  ;;  %v417_v59 = vmax.f32 %v385_v49, 0.0  ;;  %v325_v61 = vadd.f32 %v609_v1, %v289_v51 }
  0x2e   : > { %446 = vst [vmem:[%s640_s5 + $0xb8] sm:$0xff] %v414_v39  ;;  %v388_v60 = vadd.f32 %v356_v48, %v324_v50  ;;  %v326_v0 = vadd.f32 %v609_v1, %v290_v52  ;;  %v418_v62 = vmax.f32 %v386_v55, 0.0 }
  0x2f   : > { %447 = vst [vmem:[%s640_s5 + $0xc0] sm:$0xff] %v415_v53  ;;  %v419_v63 = vmax.f32 %v387_v56, 0.0  ;;  %v389_v3 = vadd.f32 %v357_v57, %v325_v61 }
  0x30   : > { %448 = vst [vmem:[%s640_s5 + $0xc8] sm:$0xff] %v416_v54  ;;  %v420_v2 = vmax.f32 %v388_v60, 0.0  ;;  %v390_v4 = vadd.f32 %v358_v58, %v326_v0 }
  0x31   : > { %449 = vst [vmem:[%s640_s5 + $0xd0] sm:$0xff] %v417_v59  ;;  %v421_v5 = vmax.f32 %v389_v3, 0.0 }
  0x32   : > { %450 = vst [vmem:[%s640_s5 + $0xd8] sm:$0xff] %v418_v62  ;;  %v422_v6 = vmax.f32 %v390_v4, 0.0 }
  0x33   : > { %451 = vst [vmem:[%s640_s5 + $0xe0] sm:$0xff] %v419_v63 }
  0x34   : > { %452 = vst [vmem:[%s640_s5 + $0xe8] sm:$0xff] %v420_v2 }
  0x35   : > { %453 = vst [vmem:[%s640_s5 + $0xf0] sm:$0xff] %v421_v5 }
  0x36   : > { %454 = vst [vmem:[%s640_s5 + $0xf8] sm:$0xff] %v422_v6 }
  0x37 PF: > { %s14_s15 = sadd.s32 1, %s552_s15  }
  0x38   : > { %p11_p4 = scmp.ge.s32.totalorder %s14_s15, 4  }
  0x3a   :  { %13 = sbr.rel (!%p11_p4) target bundleno = 1 (0x1), region = 69 }

</bundles_post_ra>
